<compile_context>
chip_gen: v5e
topology: v5e:2x2
jax: 0.10.0
libtpu: 0.0.40
codegen_flags: <defaults>
</compile_context>

<pallas_src>
import math
import numpy as np
import jax
import jax.numpy as jnp
from jax.experimental import pallas as pl
from jax.experimental.pallas import tpu as pltpu

STYLESPACE_DIMENSIONS = [512 for _ in range(15)] + [256, 256, 256] + [128, 128, 128] + [64, 64, 64] + [32, 32]
NUM_MAPPERS = len(STYLESPACE_DIMENSIONS)        # 26
TOTAL_DIM = sum(STYLESPACE_DIMENSIONS)          # 9088

LR_MUL = 0.01
NEG_SLOPE = 0.2
FL_SCALE = math.sqrt(2.0)
MIN_D = 128                                     # lane-tile width; sub-128 mappers are packed up to this
ROW_TILE_ELEMS = 512 * 1024                     # row_tile cap = ROW_TILE_ELEMS // D
VMEM_LIMIT = 40 * 1024 * 1024                   # v7x-safe scoped VMEM limit


def _build_buckets():
    """Group mappers into block-aligned buckets over the flat (bs, 9088) layout.

    1) pseudo-mappers: width max(cd, MIN_D); mappers with cd < MIN_D are packed
       block-diagonally into exact MIN_D-wide groups (64+64, 64+32+32).
    2) buckets: contiguous pseudo-mappers of equal width D; each bucket's start
       feature offset is a multiple of D so BlockSpecs index the flat slab
       directly (no relayout).
    """
    dims = STYLESPACE_DIMENSIONS
    starts, s = [], 0
    for d in dims:
        starts.append(s)
        s += d

    pms = []   # (width, feat_start, [(mapper_idx, cd, local_col), ...])
    c = 0
    while c < NUM_MAPPERS:
        cd = dims[c]
        if cd >= MIN_D:
            pms.append((cd, starts[c], [(c, cd, 0)]))
            c += 1
        else:
            fstart, local, members = starts[c], 0, []
            while local < MIN_D:
                assert c < NUM_MAPPERS and dims[c] <= MIN_D - local, \
                    "sub-128 mappers must pack exactly into 128-wide groups"
                members.append((c, dims[c], local))
                local += dims[c]
                c += 1
            pms.append((MIN_D, fstart, members))

    buckets = []
    i = 0
    while i < len(pms):
        D = pms[i][0]
        j = i
        while j < len(pms) and pms[j][0] == D:
            j += 1
        fstart = pms[i][1]
        assert fstart % D == 0, "bucket start must be block aligned"
        buckets.append(dict(D=D, n=j - i, base_block=fstart // D, pms=pms[i:j]))
        i = j
    return buckets


BUCKETS = _build_buckets()
# -> D=512 n=15 base_block=0 | D=256 n=3 base_block=30 | D=128 n=5 base_block=66


# ----------------------------------------------------------------------------- kernels
def mapper_kernel(x_ref, ctx_ref, wl_ref, bl_ref, wg_ref, bg_ref, wb_ref, bb_ref, o_ref):
    # x_ref  : (rows, D)      bf16 slice of the flat activation slab
    # ctx_ref: (rows, CPAD)   bf16 conditioning (zero-padded past ctx_dim)
    # wl_ref : (1, D, D)      bf16, EqualLinear scale * sqrt(2) folded in, transposed
    # wg/wb  : (1, CPAD, D)   bf16 hyper gate / hyper bias weights (same folding)
    # bl/bg/bb: (1, 1, D)     f32 biases (lr_mul * sqrt(2) folded in)
    x = x_ref[...]
    ctx = ctx_ref[...]

    # main EqualLinear + fused_lrelu (sqrt(2) already folded into the weights/biases)
    y = jnp.dot(x, wl_ref[0], preferred_element_type=jnp.float32) + bl_ref[0]
    y = jnp.where(y >= 0.0, y, NEG_SLOPE * y)

    # hyper gate
    g = jnp.dot(ctx, wg_ref[0], preferred_element_type=jnp.float32) + bg_ref[0]
    g = jax.nn.sigmoid(jnp.where(g >= 0.0, g, NEG_SLOPE * g))

    # hyper bias
    b = jnp.dot(ctx, wb_ref[0], preferred_element_type=jnp.float32) + bb_ref[0]
    b = jnp.where(b >= 0.0, b, NEG_SLOPE * b)

    o_ref[...] = (y * g + b).astype(o_ref.dtype)


def mapper_kernel_aliased(x_ref, ctx_ref, wl_ref, bl_ref, wg_ref, bg_ref, wb_ref, bb_ref,
                          slab_ref, o_ref):
    # slab_ref is the running (bs, 9088) output slab aliased to o_ref; it stays in
    # HBM (memory_space=pl.ANY) and is never touched — this call only writes its
    # own column blocks, everything else passes through untouched.
    del slab_ref
    mapper_kernel(x_ref, ctx_ref, wl_ref, bl_ref, wg_ref, bg_ref, wb_ref, bb_ref, o_ref)


# ----------------------------------------------------------------------------- bucket launcher
def _run_bucket(x_flat, ctx, pk, bk, out_slab):
    bs, total = x_flat.shape
    D, n, base = bk["D"], bk["n"], bk["base_block"]
    cpad = ctx.shape[1]

    cap = max(256, ROW_TILE_ELEMS // D)            # 1024 @ D=512, 2048 @ 256, 4096 @ 128
    if bs <= cap:
        row_tile, n_rows = bs, 1                   # full-dim row block (always legal)
    else:
        row_tile, n_rows = cap, pl.cdiv(bs, cap)   # masked edge block if not divisible

    wmap = lambda i, r: (i, 0, 0)
    in_specs = [
        pl.BlockSpec((row_tile, D), lambda i, r: (r, base + i)),     # x, native layout
        pl.BlockSpec((row_tile, cpad), lambda i, r: (r, 0)),         # ctx
        pl.BlockSpec((1, D, D), wmap),                               # wl
        pl.BlockSpec((1, 1, D), wmap),                               # bl
        pl.BlockSpec((1, cpad, D), wmap),                            # wg
        pl.BlockSpec((1, 1, D), wmap),                               # bg
        pl.BlockSpec((1, cpad, D), wmap),                            # wb
        pl.BlockSpec((1, 1, D), wmap),                               # bb
    ]
    args = [x_flat, ctx, pk["wl"], pk["bl"], pk["wg"], pk["bg"], pk["wb"], pk["bb"]]

    if out_slab is None:
        kernel, io_alias = mapper_kernel, {}
    else:
        # Chain buckets through one (bs, 9088) slab: alias the running slab to the
        # output so this call only writes its own column blocks in place.
        kernel, io_alias = mapper_kernel_aliased, {8: 0}
        in_specs.append(pl.BlockSpec(memory_space=pl.ANY))
        args.append(out_slab)

    return pl.pallas_call(
        kernel,
        out_shape=jax.ShapeDtypeStruct((bs, total), jnp.float32),
        grid=(n, n_rows),
        in_specs=in_specs,
        out_specs=pl.BlockSpec((row_tile, D), lambda i, r: (r, base + i)),
        input_output_aliases=io_alias,
        compiler_params=pltpu.CompilerParams(
            # Mapper axis is the only parallel axis -> megacore splits on mappers
            # (disjoint weights per core).  Rows iterate innermost/sequentially,
            # so each mapper's weights are fetched once and reused across row tiles.
            dimension_semantics=("parallel", "arbitrary"),
            vmem_limit_bytes=VMEM_LIMIT,
        ),
    )(*args)


# ----------------------------------------------------------------------------- parameters
def build_params(key, dim_ctx):
    """Deterministic parameter init mirroring EqualLinear.__init__ shapes:
    weight ~ randn(out, in) / lr_mul, bias (out,)."""
    ctx_dim = dim_ctx + 3
    params = []
    for c, cd in enumerate(STYLESPACE_DIMENSIONS):
        key, k1, k2, k3, k4, k5, k6 = jax.random.split(key, 7)
        params.append(dict(
            wl=np.asarray(jax.random.normal(k1, (cd, cd), jnp.float32)) / LR_MUL,
            bl=np.asarray(jax.random.normal(k2, (cd,), jnp.float32)) * 0.1,
            wg=np.asarray(jax.random.normal(k3, (cd, ctx_dim), jnp.float32)) / LR_MUL,
            bg=np.asarray(jax.random.normal(k4, (cd,), jnp.float32)) * 0.1,
            wb=np.asarray(jax.random.normal(k5, (cd, ctx_dim), jnp.float32)) / LR_MUL,
            bb=np.asarray(jax.random.normal(k6, (cd,), jnp.float32)) * 0.1,
        ))
    return params


def pack_params(params, dim_ctx):
    """Pack per-bucket weight slabs: EqualLinear scale and the fused_lrelu sqrt(2)
    folded in, weights transposed, sub-128 mappers placed block-diagonally inside
    their 128-wide pseudo-mapper, bf16 storage for weights / f32 for biases."""
    ctx_dim = dim_ctx + 3
    cpad = max(8, ((ctx_dim + 7) // 8) * 8)
    ctx_scale = (1.0 / math.sqrt(ctx_dim)) * LR_MUL
    packed = []
    for bk in BUCKETS:
        D, n = bk["D"], bk["n"]
        wl = np.zeros((n, D, D), np.float32)
        bl = np.zeros((n, 1, D), np.float32)
        wg = np.zeros((n, cpad, D), np.float32)
        bg = np.zeros((n, 1, D), np.float32)
        wb = np.zeros((n, cpad, D), np.float32)
        bb = np.zeros((n, 1, D), np.float32)
        for j, (_width, _fstart, members) in enumerate(bk["pms"]):
            for (c, cd, loc) in members:
                p = params[c]
                in_scale = (1.0 / math.sqrt(cd)) * LR_MUL
                wl[j, loc:loc + cd, loc:loc + cd] = (p["wl"] * (in_scale * FL_SCALE)).T
                bl[j, 0, loc:loc + cd] = p["bl"] * (LR_MUL * FL_SCALE)
                wg[j, :ctx_dim, loc:loc + cd] = (p["wg"] * (ctx_scale * FL_SCALE)).T
                bg[j, 0, loc:loc + cd] = p["bg"] * (LR_MUL * FL_SCALE)
                wb[j, :ctx_dim, loc:loc + cd] = (p["wb"] * (ctx_scale * FL_SCALE)).T
                bb[j, 0, loc:loc + cd] = p["bb"] * (LR_MUL * FL_SCALE)
        packed.append(dict(
            wl=jnp.asarray(wl, jnp.bfloat16), bl=jnp.asarray(bl, jnp.float32),
            wg=jnp.asarray(wg, jnp.bfloat16), bg=jnp.asarray(bg, jnp.float32),
            wb=jnp.asarray(wb, jnp.bfloat16), bb=jnp.asarray(bb, jnp.float32),
        ))
    return packed


# ----------------------------------------------------------------------------- forward
def time_stylespace_mapper(x, beta, context, packed):
    """x: (B, S, TOTAL_DIM), beta: (B,), context: (B, dim_ctx) -> (B, S, TOTAL_DIM) f32."""
    B, S, F = x.shape
    bs = B * S
    cpad = packed[0]["wg"].shape[1]

    beta_r = beta.reshape(B, 1, 1).astype(jnp.float32)
    context_r = context.reshape(B, 1, -1).astype(jnp.float32)
    time_emb = jnp.concatenate([beta_r, jnp.sin(beta_r), jnp.cos(beta_r)], axis=-1)
    ctx_emb = jnp.concatenate([time_emb, context_r], axis=-1)            # (B, 1, ctx_dim)
    ctx_dim = ctx_emb.shape[-1]
    ctx_bs = jnp.broadcast_to(ctx_emb, (B, S, ctx_dim)).reshape(bs, ctx_dim)
    ctx_pad = jnp.pad(ctx_bs, ((0, 0), (0, cpad - ctx_dim))).astype(jnp.bfloat16)

    # Native layout, bf16 activations into the kernels (halves input DMA bytes).
    x_flat = x.reshape(bs, F).astype(jnp.bfloat16)

    out_slab = None    # (bs, TOTAL_DIM) f32, assembled in place bucket by bucket
    for bk, pk in zip(BUCKETS, packed):
        out_slab = _run_bucket(x_flat, ctx_pad, pk, bk, out_slab)
    return out_slab.reshape(B, S, F)


# ----------------------------------------------------------------------------- reference
def reference_numpy(x, beta, context, params):
    """Pure-numpy reproduction of the PyTorch forward."""
    B, S, _ = x.shape
    beta_r = beta.reshape(B, 1, 1)
    context_r = context.reshape(B, 1, -1)
    time_emb = np.concatenate([beta_r, np.sin(beta_r), np.cos(beta_r)], axis=-1)
    ctx_emb = np.concatenate([time_emb, context_r], axis=-1)
    ctx_dim = ctx_emb.shape[-1]

    def equal_linear(inp, W, b, in_dim):
        scale = (1.0 / math.sqrt(in_dim)) * LR_MUL
        out = inp @ (W * scale).T + b * LR_MUL
        return FL_SCALE * np.where(out >= 0.0, out, NEG_SLOPE * out)

    outs, off = [], 0
    for c, cd in enumerate(STYLESPACE_DIMENSIONS):
        p = params[c]
        x_c = x[:, :, off:off + cd]
        off += cd
        y = equal_linear(x_c, p["wl"], p["bl"], cd)
        g = 1.0 / (1.0 + np.exp(-equal_linear(ctx_emb, p["wg"], p["bg"], ctx_dim)))
        b = equal_linear(ctx_emb, p["wb"], p["bb"], ctx_dim)
        outs.append((y * g + b).reshape(x_c.shape))
    return np.concatenate(outs, axis=-1)


if __name__ == "__main__":
    B, S = 2, 1
    dim_ctx = 13                 # ctx_emb dim = dim_ctx + 3 = 16

    key = jax.random.PRNGKey(0)
    kx, kb, kc, kp = jax.random.split(key, 4)
    x = jax.random.normal(kx, (B, S, TOTAL_DIM), jnp.float32)
    beta = jax.random.uniform(kb, (B,), jnp.float32)
    context = jax.random.normal(kc, (B, dim_ctx), jnp.float32)

    params = build_params(kp, dim_ctx)
    packed = pack_params(params, dim_ctx)

    fwd = jax.jit(time_stylespace_mapper)
    out = jax.block_until_ready(fwd(x, beta, context, packed))

    ref = reference_numpy(np.asarray(x), np.asarray(beta), np.asarray(context), params)
    np.testing.assert_allclose(np.asarray(out), ref, rtol=2e-2, atol=2e-2)

    print("KERNEL_OK")
</pallas_src>

<mosaic_0001>
module attributes {stable_mosaic.version = 11 : i64} {
  func.func @mapper_kernel_aliased(%arg0: i32, %arg1: i32, %arg2: memref<2x256xbf16, #tpu.memory_space<vmem>>, %arg3: memref<2x16xbf16, #tpu.memory_space<vmem>>, %arg4: memref<1x256x256xbf16, #tpu.memory_space<vmem>>, %arg5: memref<1x1x256xf32, #tpu.memory_space<vmem>>, %arg6: memref<1x16x256xbf16, #tpu.memory_space<vmem>>, %arg7: memref<1x1x256xf32, #tpu.memory_space<vmem>>, %arg8: memref<1x16x256xbf16, #tpu.memory_space<vmem>>, %arg9: memref<1x1x256xf32, #tpu.memory_space<vmem>>, %arg10: memref<2x9088xf32, #tpu.memory_space<any>>, %arg11: memref<2x256xf32, #tpu.memory_space<vmem>>) attributes {dimension_semantics = [#tpu.dimension_semantics<parallel>, #tpu.dimension_semantics<arbitrary>], iteration_bounds = array<i64: 3, 1>, scalar_prefetch = 0 : i64, scratch_operands = 0 : i64, tpu.core_type = #tpu.core_type<tc>, window_params = [{transform_indices = @transform_0, window_bounds = array<i64: 2, 256>}, {transform_indices = @transform_1, window_bounds = array<i64: 2, 16>}, {transform_indices = @transform_2, window_bounds = array<i64: 1, 256, 256>}, {transform_indices = @transform_3, window_bounds = array<i64: 1, 1, 256>}, {transform_indices = @transform_4, window_bounds = array<i64: 1, 16, 256>}, {transform_indices = @transform_5, window_bounds = array<i64: 1, 1, 256>}, {transform_indices = @transform_6, window_bounds = array<i64: 1, 16, 256>}, {transform_indices = @transform_7, window_bounds = array<i64: 1, 1, 256>}, {}, {transform_indices = @transform_9, window_bounds = array<i64: 2, 256>}]} {
    %c0 = arith.constant 0 : index
    %c0_0 = arith.constant 0 : index
    %0 = vector.load %arg2[%c0, %c0_0] : memref<2x256xbf16, #tpu.memory_space<vmem>>, vector<2x256xbf16>
    %c0_1 = arith.constant 0 : index
    %c0_2 = arith.constant 0 : index
    %1 = vector.load %arg3[%c0_1, %c0_2] : memref<2x16xbf16, #tpu.memory_space<vmem>>, vector<2x16xbf16>
    %c0_3 = arith.constant 0 : index
    %c0_4 = arith.constant 0 : index
    %c0_5 = arith.constant 0 : index
    %2 = vector.load %arg4[%c0_3, %c0_4, %c0_5] : memref<1x256x256xbf16, #tpu.memory_space<vmem>>, vector<1x256x256xbf16>
    %3 = vector.shape_cast %2 : vector<1x256x256xbf16> to vector<256x256xbf16>
    %cst = arith.constant dense<0.000000e+00> : vector<2x256xf32>
    %4 = tpu.matmul %0, %3, %cst {dimension_numbers = #tpu.dot_dimension_numbers<[1], [0], [0], [1], [0, 0, 1, 1], [], []>} : vector<2x256xbf16>, vector<256x256xbf16>, vector<2x256xf32> -> vector<2x256xf32>
    %c0_6 = arith.constant 0 : index
    %c0_7 = arith.constant 0 : index
    %c0_8 = arith.constant 0 : index
    %5 = vector.load %arg5[%c0_6, %c0_7, %c0_8] : memref<1x1x256xf32, #tpu.memory_space<vmem>>, vector<1x1x256xf32>
    %6 = vector.shape_cast %5 : vector<1x1x256xf32> to vector<1x256xf32>
    %7 = vector.broadcast %6 : vector<1x256xf32> to vector<2x256xf32>
    %8 = arith.addf %4, %7 : vector<2x256xf32>
    %cst_9 = arith.constant 0.000000e+00 : f32
    %9 = vector.broadcast %cst_9 : f32 to vector<2x256xf32>
    %10 = arith.cmpf oge, %8, %9 : vector<2x256xf32>
    %cst_10 = arith.constant 2.000000e-01 : f32
    %11 = vector.broadcast %cst_10 : f32 to vector<2x256xf32>
    %12 = arith.mulf %11, %8 : vector<2x256xf32>
    %13 = arith.select %10, %8, %12 : vector<2x256xi1>, vector<2x256xf32>
    %c0_11 = arith.constant 0 : index
    %c0_12 = arith.constant 0 : index
    %c0_13 = arith.constant 0 : index
    %14 = vector.load %arg6[%c0_11, %c0_12, %c0_13] : memref<1x16x256xbf16, #tpu.memory_space<vmem>>, vector<1x16x256xbf16>
    %15 = vector.shape_cast %14 : vector<1x16x256xbf16> to vector<16x256xbf16>
    %cst_14 = arith.constant dense<0.000000e+00> : vector<2x256xf32>
    %16 = tpu.matmul %1, %15, %cst_14 {dimension_numbers = #tpu.dot_dimension_numbers<[1], [0], [0], [1], [0, 0, 1, 1], [], []>} : vector<2x16xbf16>, vector<16x256xbf16>, vector<2x256xf32> -> vector<2x256xf32>
    %c0_15 = arith.constant 0 : index
    %c0_16 = arith.constant 0 : index
    %c0_17 = arith.constant 0 : index
    %17 = vector.load %arg7[%c0_15, %c0_16, %c0_17] : memref<1x1x256xf32, #tpu.memory_space<vmem>>, vector<1x1x256xf32>
    %18 = vector.shape_cast %17 : vector<1x1x256xf32> to vector<1x256xf32>
    %19 = vector.broadcast %18 : vector<1x256xf32> to vector<2x256xf32>
    %20 = arith.addf %16, %19 : vector<2x256xf32>
    %cst_18 = arith.constant 0.000000e+00 : f32
    %21 = vector.broadcast %cst_18 : f32 to vector<2x256xf32>
    %22 = arith.cmpf oge, %20, %21 : vector<2x256xf32>
    %cst_19 = arith.constant 2.000000e-01 : f32
    %23 = vector.broadcast %cst_19 : f32 to vector<2x256xf32>
    %24 = arith.mulf %23, %20 : vector<2x256xf32>
    %25 = arith.select %22, %20, %24 : vector<2x256xi1>, vector<2x256xf32>
    %26 = arith.negf %25 : vector<2x256xf32>
    %27 = math.exp %26 : vector<2x256xf32>
    %cst_20 = arith.constant 1.000000e+00 : f32
    %28 = vector.broadcast %cst_20 : f32 to vector<2x256xf32>
    %29 = arith.addf %28, %27 : vector<2x256xf32>
    %30 = arith.divf %28, %29 : vector<2x256xf32>
    %c0_21 = arith.constant 0 : index
    %c0_22 = arith.constant 0 : index
    %c0_23 = arith.constant 0 : index
    %31 = vector.load %arg8[%c0_21, %c0_22, %c0_23] : memref<1x16x256xbf16, #tpu.memory_space<vmem>>, vector<1x16x256xbf16>
    %32 = vector.shape_cast %31 : vector<1x16x256xbf16> to vector<16x256xbf16>
    %cst_24 = arith.constant dense<0.000000e+00> : vector<2x256xf32>
    %33 = tpu.matmul %1, %32, %cst_24 {dimension_numbers = #tpu.dot_dimension_numbers<[1], [0], [0], [1], [0, 0, 1, 1], [], []>} : vector<2x16xbf16>, vector<16x256xbf16>, vector<2x256xf32> -> vector<2x256xf32>
    %c0_25 = arith.constant 0 : index
    %c0_26 = arith.constant 0 : index
    %c0_27 = arith.constant 0 : index
    %34 = vector.load %arg9[%c0_25, %c0_26, %c0_27] : memref<1x1x256xf32, #tpu.memory_space<vmem>>, vector<1x1x256xf32>
    %35 = vector.shape_cast %34 : vector<1x1x256xf32> to vector<1x256xf32>
    %36 = vector.broadcast %35 : vector<1x256xf32> to vector<2x256xf32>
    %37 = arith.addf %33, %36 : vector<2x256xf32>
    %cst_28 = arith.constant 0.000000e+00 : f32
    %38 = vector.broadcast %cst_28 : f32 to vector<2x256xf32>
    %39 = arith.cmpf oge, %37, %38 : vector<2x256xf32>
    %cst_29 = arith.constant 2.000000e-01 : f32
    %40 = vector.broadcast %cst_29 : f32 to vector<2x256xf32>
    %41 = arith.mulf %40, %37 : vector<2x256xf32>
    %42 = arith.select %39, %37, %41 : vector<2x256xi1>, vector<2x256xf32>
    %43 = arith.mulf %13, %30 : vector<2x256xf32>
    %44 = arith.addf %43, %42 : vector<2x256xf32>
    %c0_30 = arith.constant 0 : index
    %c0_31 = arith.constant 0 : index
    %45 = vector.load %arg11[%c0_30, %c0_31] : memref<2x256xf32, #tpu.memory_space<vmem>>, vector<2x256xf32>
    tpu.vector_store %arg11[%c0_30, %c0_31], %44 {strides = array<i32>} : memref<2x256xf32, #tpu.memory_space<vmem>>, vector<2x256xf32>,
    return
  }
  func.func @transform_0(%arg0: i32, %arg1: i32) -> (i32, i32) {
    %c30_i32 = arith.constant 30 : i32
    %0 = arith.addi %c30_i32, %arg0 : i32
    %c0_i32 = arith.constant 0 : i32
    return %arg1, %0 : i32, i32
  }
  func.func @transform_1(%arg0: i32, %arg1: i32) -> (i32, i32) {
    %c0_i32 = arith.constant 0 : i32
    %c0_i32_0 = arith.constant 0 : i32
    return %arg1, %c0_i32 : i32, i32
  }
  func.func @transform_2(%arg0: i32, %arg1: i32) -> (i32, i32, i32) {
    %c0_i32 = arith.constant 0 : i32
    %c0_i32_0 = arith.constant 0 : i32
    %c0_i32_1 = arith.constant 0 : i32
    return %arg0, %c0_i32, %c0_i32_0 : i32, i32, i32
  }
  func.func @transform_3(%arg0: i32, %arg1: i32) -> (i32, i32, i32) {
    %c0_i32 = arith.constant 0 : i32
    %c0_i32_0 = arith.constant 0 : i32
    %c0_i32_1 = arith.constant 0 : i32
    return %arg0, %c0_i32, %c0_i32_0 : i32, i32, i32
  }
  func.func @transform_4(%arg0: i32, %arg1: i32) -> (i32, i32, i32) {
    %c0_i32 = arith.constant 0 : i32
    %c0_i32_0 = arith.constant 0 : i32
    %c0_i32_1 = arith.constant 0 : i32
    return %arg0, %c0_i32, %c0_i32_0 : i32, i32, i32
  }
  func.func @transform_5(%arg0: i32, %arg1: i32) -> (i32, i32, i32) {
    %c0_i32 = arith.constant 0 : i32
    %c0_i32_0 = arith.constant 0 : i32
    %c0_i32_1 = arith.constant 0 : i32
    return %arg0, %c0_i32, %c0_i32_0 : i32, i32, i32
  }
  func.func @transform_6(%arg0: i32, %arg1: i32) -> (i32, i32, i32) {
    %c0_i32 = arith.constant 0 : i32
    %c0_i32_0 = arith.constant 0 : i32
    %c0_i32_1 = arith.constant 0 : i32
    return %arg0, %c0_i32, %c0_i32_0 : i32, i32, i32
  }
  func.func @transform_7(%arg0: i32, %arg1: i32) -> (i32, i32, i32) {
    %c0_i32 = arith.constant 0 : i32
    %c0_i32_0 = arith.constant 0 : i32
    %c0_i32_1 = arith.constant 0 : i32
    return %arg0, %c0_i32, %c0_i32_0 : i32, i32, i32
  }
  func.func @transform_9(%arg0: i32, %arg1: i32) -> (i32, i32) {
    %c30_i32 = arith.constant 30 : i32
    %0 = arith.addi %c30_i32, %arg0 : i32
    %c0_i32 = arith.constant 0 : i32
    return %arg1, %0 : i32, i32
  }
}

module attributes {stable_mosaic.version = 11 : i64} {
  func.func @mapper_kernel(%arg0: i32, %arg1: i32, %arg2: memref<2x512xbf16, #tpu.memory_space<vmem>>, %arg3: memref<2x16xbf16, #tpu.memory_space<vmem>>, %arg4: memref<1x512x512xbf16, #tpu.memory_space<vmem>>, %arg5: memref<1x1x512xf32, #tpu.memory_space<vmem>>, %arg6: memref<1x16x512xbf16, #tpu.memory_space<vmem>>, %arg7: memref<1x1x512xf32, #tpu.memory_space<vmem>>, %arg8: memref<1x16x512xbf16, #tpu.memory_space<vmem>>, %arg9: memref<1x1x512xf32, #tpu.memory_space<vmem>>, %arg10: memref<2x512xf32, #tpu.memory_space<vmem>>) attributes {dimension_semantics = [#tpu.dimension_semantics<parallel>, #tpu.dimension_semantics<arbitrary>], iteration_bounds = array<i64: 15, 1>, scalar_prefetch = 0 : i64, scratch_operands = 0 : i64, tpu.core_type = #tpu.core_type<tc>, window_params = [{transform_indices = @transform_0, window_bounds = array<i64: 2, 512>}, {transform_indices = @transform_1, window_bounds = array<i64: 2, 16>}, {transform_indices = @transform_2, window_bounds = array<i64: 1, 512, 512>}, {transform_indices = @transform_3, window_bounds = array<i64: 1, 1, 512>}, {transform_indices = @transform_4, window_bounds = array<i64: 1, 16, 512>}, {transform_indices = @transform_5, window_bounds = array<i64: 1, 1, 512>}, {transform_indices = @transform_6, window_bounds = array<i64: 1, 16, 512>}, {transform_indices = @transform_7, window_bounds = array<i64: 1, 1, 512>}, {transform_indices = @transform_8, window_bounds = array<i64: 2, 512>}]} {
    %c0 = arith.constant 0 : index
    %c0_0 = arith.constant 0 : index
    %0 = vector.load %arg2[%c0, %c0_0] : memref<2x512xbf16, #tpu.memory_space<vmem>>, vector<2x512xbf16>
    %c0_1 = arith.constant 0 : index
    %c0_2 = arith.constant 0 : index
    %1 = vector.load %arg3[%c0_1, %c0_2] : memref<2x16xbf16, #tpu.memory_space<vmem>>, vector<2x16xbf16>
    %c0_3 = arith.constant 0 : index
    %c0_4 = arith.constant 0 : index
    %c0_5 = arith.constant 0 : index
    %2 = vector.load %arg4[%c0_3, %c0_4, %c0_5] : memref<1x512x512xbf16, #tpu.memory_space<vmem>>, vector<1x512x512xbf16>
    %3 = vector.shape_cast %2 : vector<1x512x512xbf16> to vector<512x512xbf16>
    %cst = arith.constant dense<0.000000e+00> : vector<2x512xf32>
    %4 = tpu.matmul %0, %3, %cst {dimension_numbers = #tpu.dot_dimension_numbers<[1], [0], [0], [1], [0, 0, 1, 1], [], []>} : vector<2x512xbf16>, vector<512x512xbf16>, vector<2x512xf32> -> vector<2x512xf32>
    %c0_6 = arith.constant 0 : index
    %c0_7 = arith.constant 0 : index
    %c0_8 = arith.constant 0 : index
    %5 = vector.load %arg5[%c0_6, %c0_7, %c0_8] : memref<1x1x512xf32, #tpu.memory_space<vmem>>, vector<1x1x512xf32>
    %6 = vector.shape_cast %5 : vector<1x1x512xf32> to vector<1x512xf32>
    %7 = vector.broadcast %6 : vector<1x512xf32> to vector<2x512xf32>
    %8 = arith.addf %4, %7 : vector<2x512xf32>
    %cst_9 = arith.constant 0.000000e+00 : f32
    %9 = vector.broadcast %cst_9 : f32 to vector<2x512xf32>
    %10 = arith.cmpf oge, %8, %9 : vector<2x512xf32>
    %cst_10 = arith.constant 2.000000e-01 : f32
    %11 = vector.broadcast %cst_10 : f32 to vector<2x512xf32>
    %12 = arith.mulf %11, %8 : vector<2x512xf32>
    %13 = arith.select %10, %8, %12 : vector<2x512xi1>, vector<2x512xf32>
    %c0_11 = arith.constant 0 : index
    %c0_12 = arith.constant 0 : index
    %c0_13 = arith.constant 0 : index
    %14 = vector.load %arg6[%c0_11, %c0_12, %c0_13] : memref<1x16x512xbf16, #tpu.memory_space<vmem>>, vector<1x16x512xbf16>
    %15 = vector.shape_cast %14 : vector<1x16x512xbf16> to vector<16x512xbf16>
    %cst_14 = arith.constant dense<0.000000e+00> : vector<2x512xf32>
    %16 = tpu.matmul %1, %15, %cst_14 {dimension_numbers = #tpu.dot_dimension_numbers<[1], [0], [0], [1], [0, 0, 1, 1], [], []>} : vector<2x16xbf16>, vector<16x512xbf16>, vector<2x512xf32> -> vector<2x512xf32>
    %c0_15 = arith.constant 0 : index
    %c0_16 = arith.constant 0 : index
    %c0_17 = arith.constant 0 : index
    %17 = vector.load %arg7[%c0_15, %c0_16, %c0_17] : memref<1x1x512xf32, #tpu.memory_space<vmem>>, vector<1x1x512xf32>
    %18 = vector.shape_cast %17 : vector<1x1x512xf32> to vector<1x512xf32>
    %19 = vector.broadcast %18 : vector<1x512xf32> to vector<2x512xf32>
    %20 = arith.addf %16, %19 : vector<2x512xf32>
    %cst_18 = arith.constant 0.000000e+00 : f32
    %21 = vector.broadcast %cst_18 : f32 to vector<2x512xf32>
    %22 = arith.cmpf oge, %20, %21 : vector<2x512xf32>
    %cst_19 = arith.constant 2.000000e-01 : f32
    %23 = vector.broadcast %cst_19 : f32 to vector<2x512xf32>
    %24 = arith.mulf %23, %20 : vector<2x512xf32>
    %25 = arith.select %22, %20, %24 : vector<2x512xi1>, vector<2x512xf32>
    %26 = arith.negf %25 : vector<2x512xf32>
    %27 = math.exp %26 : vector<2x512xf32>
    %cst_20 = arith.constant 1.000000e+00 : f32
    %28 = vector.broadcast %cst_20 : f32 to vector<2x512xf32>
    %29 = arith.addf %28, %27 : vector<2x512xf32>
    %30 = arith.divf %28, %29 : vector<2x512xf32>
    %c0_21 = arith.constant 0 : index
    %c0_22 = arith.constant 0 : index
    %c0_23 = arith.constant 0 : index
    %31 = vector.load %arg8[%c0_21, %c0_22, %c0_23] : memref<1x16x512xbf16, #tpu.memory_space<vmem>>, vector<1x16x512xbf16>
    %32 = vector.shape_cast %31 : vector<1x16x512xbf16> to vector<16x512xbf16>
    %cst_24 = arith.constant dense<0.000000e+00> : vector<2x512xf32>
    %33 = tpu.matmul %1, %32, %cst_24 {dimension_numbers = #tpu.dot_dimension_numbers<[1], [0], [0], [1], [0, 0, 1, 1], [], []>} : vector<2x16xbf16>, vector<16x512xbf16>, vector<2x512xf32> -> vector<2x512xf32>
    %c0_25 = arith.constant 0 : index
    %c0_26 = arith.constant 0 : index
    %c0_27 = arith.constant 0 : index
    %34 = vector.load %arg9[%c0_25, %c0_26, %c0_27] : memref<1x1x512xf32, #tpu.memory_space<vmem>>, vector<1x1x512xf32>
    %35 = vector.shape_cast %34 : vector<1x1x512xf32> to vector<1x512xf32>
    %36 = vector.broadcast %35 : vector<1x512xf32> to vector<2x512xf32>
    %37 = arith.addf %33, %36 : vector<2x512xf32>
    %cst_28 = arith.constant 0.000000e+00 : f32
    %38 = vector.broadcast %cst_28 : f32 to vector<2x512xf32>
    %39 = arith.cmpf oge, %37, %38 : vector<2x512xf32>
    %cst_29 = arith.constant 2.000000e-01 : f32
    %40 = vector.broadcast %cst_29 : f32 to vector<2x512xf32>
    %41 = arith.mulf %40, %37 : vector<2x512xf32>
    %42 = arith.select %39, %37, %41 : vector<2x512xi1>, vector<2x512xf32>
    %43 = arith.mulf %13, %30 : vector<2x512xf32>
    %44 = arith.addf %43, %42 : vector<2x512xf32>
    %c0_30 = arith.constant 0 : index
    %c0_31 = arith.constant 0 : index
    %45 = vector.load %arg10[%c0_30, %c0_31] : memref<2x512xf32, #tpu.memory_space<vmem>>, vector<2x512xf32>
    tpu.vector_store %arg10[%c0_30, %c0_31], %44 {strides = array<i32>} : memref<2x512xf32, #tpu.memory_space<vmem>>, vector<2x512xf32>,
    return
  }
  func.func @transform_0(%arg0: i32, %arg1: i32) -> (i32, i32) {
    %c0_i32 = arith.constant 0 : i32
    %0 = arith.addi %c0_i32, %arg0 : i32
    %c0_i32_0 = arith.constant 0 : i32
    return %arg1, %0 : i32, i32
  }
  func.func @transform_1(%arg0: i32, %arg1: i32) -> (i32, i32) {
    %c0_i32 = arith.constant 0 : i32
    %c0_i32_0 = arith.constant 0 : i32
    return %arg1, %c0_i32 : i32, i32
  }
  func.func @transform_2(%arg0: i32, %arg1: i32) -> (i32, i32, i32) {
    %c0_i32 = arith.constant 0 : i32
    %c0_i32_0 = arith.constant 0 : i32
    %c0_i32_1 = arith.constant 0 : i32
    return %arg0, %c0_i32, %c0_i32_0 : i32, i32, i32
  }
  func.func @transform_3(%arg0: i32, %arg1: i32) -> (i32, i32, i32) {
    %c0_i32 = arith.constant 0 : i32
    %c0_i32_0 = arith.constant 0 : i32
    %c0_i32_1 = arith.constant 0 : i32
    return %arg0, %c0_i32, %c0_i32_0 : i32, i32, i32
  }
  func.func @transform_4(%arg0: i32, %arg1: i32) -> (i32, i32, i32) {
    %c0_i32 = arith.constant 0 : i32
    %c0_i32_0 = arith.constant 0 : i32
    %c0_i32_1 = arith.constant 0 : i32
    return %arg0, %c0_i32, %c0_i32_0 : i32, i32, i32
  }
  func.func @transform_5(%arg0: i32, %arg1: i32) -> (i32, i32, i32) {
    %c0_i32 = arith.constant 0 : i32
    %c0_i32_0 = arith.constant 0 : i32
    %c0_i32_1 = arith.constant 0 : i32
    return %arg0, %c0_i32, %c0_i32_0 : i32, i32, i32
  }
  func.func @transform_6(%arg0: i32, %arg1: i32) -> (i32, i32, i32) {
    %c0_i32 = arith.constant 0 : i32
    %c0_i32_0 = arith.constant 0 : i32
    %c0_i32_1 = arith.constant 0 : i32
    return %arg0, %c0_i32, %c0_i32_0 : i32, i32, i32
  }
  func.func @transform_7(%arg0: i32, %arg1: i32) -> (i32, i32, i32) {
    %c0_i32 = arith.constant 0 : i32
    %c0_i32_0 = arith.constant 0 : i32
    %c0_i32_1 = arith.constant 0 : i32
    return %arg0, %c0_i32, %c0_i32_0 : i32, i32, i32
  }
  func.func @transform_8(%arg0: i32, %arg1: i32) -> (i32, i32) {
    %c0_i32 = arith.constant 0 : i32
    %0 = arith.addi %c0_i32, %arg0 : i32
    %c0_i32_0 = arith.constant 0 : i32
    return %arg1, %0 : i32, i32
  }
}

module attributes {stable_mosaic.version = 11 : i64} {
  func.func @mapper_kernel_aliased(%arg0: i32, %arg1: i32, %arg2: memref<2x128xbf16, #tpu.memory_space<vmem>>, %arg3: memref<2x16xbf16, #tpu.memory_space<vmem>>, %arg4: memref<1x128x128xbf16, #tpu.memory_space<vmem>>, %arg5: memref<1x1x128xf32, #tpu.memory_space<vmem>>, %arg6: memref<1x16x128xbf16, #tpu.memory_space<vmem>>, %arg7: memref<1x1x128xf32, #tpu.memory_space<vmem>>, %arg8: memref<1x16x128xbf16, #tpu.memory_space<vmem>>, %arg9: memref<1x1x128xf32, #tpu.memory_space<vmem>>, %arg10: memref<2x9088xf32, #tpu.memory_space<any>>, %arg11: memref<2x128xf32, #tpu.memory_space<vmem>>) attributes {dimension_semantics = [#tpu.dimension_semantics<parallel>, #tpu.dimension_semantics<arbitrary>], iteration_bounds = array<i64: 5, 1>, scalar_prefetch = 0 : i64, scratch_operands = 0 : i64, tpu.core_type = #tpu.core_type<tc>, window_params = [{transform_indices = @transform_0, window_bounds = array<i64: 2, 128>}, {transform_indices = @transform_1, window_bounds = array<i64: 2, 16>}, {transform_indices = @transform_2, window_bounds = array<i64: 1, 128, 128>}, {transform_indices = @transform_3, window_bounds = array<i64: 1, 1, 128>}, {transform_indices = @transform_4, window_bounds = array<i64: 1, 16, 128>}, {transform_indices = @transform_5, window_bounds = array<i64: 1, 1, 128>}, {transform_indices = @transform_6, window_bounds = array<i64: 1, 16, 128>}, {transform_indices = @transform_7, window_bounds = array<i64: 1, 1, 128>}, {}, {transform_indices = @transform_9, window_bounds = array<i64: 2, 128>}]} {
    %c0 = arith.constant 0 : index
    %c0_0 = arith.constant 0 : index
    %0 = vector.load %arg2[%c0, %c0_0] : memref<2x128xbf16, #tpu.memory_space<vmem>>, vector<2x128xbf16>
    %c0_1 = arith.constant 0 : index
    %c0_2 = arith.constant 0 : index
    %1 = vector.load %arg3[%c0_1, %c0_2] : memref<2x16xbf16, #tpu.memory_space<vmem>>, vector<2x16xbf16>
    %c0_3 = arith.constant 0 : index
    %c0_4 = arith.constant 0 : index
    %c0_5 = arith.constant 0 : index
    %2 = vector.load %arg4[%c0_3, %c0_4, %c0_5] : memref<1x128x128xbf16, #tpu.memory_space<vmem>>, vector<1x128x128xbf16>
    %3 = vector.shape_cast %2 : vector<1x128x128xbf16> to vector<128x128xbf16>
    %cst = arith.constant dense<0.000000e+00> : vector<2x128xf32>
    %4 = tpu.matmul %0, %3, %cst {dimension_numbers = #tpu.dot_dimension_numbers<[1], [0], [0], [1], [0, 0, 1, 1], [], []>} : vector<2x128xbf16>, vector<128x128xbf16>, vector<2x128xf32> -> vector<2x128xf32>
    %c0_6 = arith.constant 0 : index
    %c0_7 = arith.constant 0 : index
    %c0_8 = arith.constant 0 : index
    %5 = vector.load %arg5[%c0_6, %c0_7, %c0_8] : memref<1x1x128xf32, #tpu.memory_space<vmem>>, vector<1x1x128xf32>
    %6 = vector.shape_cast %5 : vector<1x1x128xf32> to vector<1x128xf32>
    %7 = vector.broadcast %6 : vector<1x128xf32> to vector<2x128xf32>
    %8 = arith.addf %4, %7 : vector<2x128xf32>
    %cst_9 = arith.constant 0.000000e+00 : f32
    %9 = vector.broadcast %cst_9 : f32 to vector<2x128xf32>
    %10 = arith.cmpf oge, %8, %9 : vector<2x128xf32>
    %cst_10 = arith.constant 2.000000e-01 : f32
    %11 = vector.broadcast %cst_10 : f32 to vector<2x128xf32>
    %12 = arith.mulf %11, %8 : vector<2x128xf32>
    %13 = arith.select %10, %8, %12 : vector<2x128xi1>, vector<2x128xf32>
    %c0_11 = arith.constant 0 : index
    %c0_12 = arith.constant 0 : index
    %c0_13 = arith.constant 0 : index
    %14 = vector.load %arg6[%c0_11, %c0_12, %c0_13] : memref<1x16x128xbf16, #tpu.memory_space<vmem>>, vector<1x16x128xbf16>
    %15 = vector.shape_cast %14 : vector<1x16x128xbf16> to vector<16x128xbf16>
    %cst_14 = arith.constant dense<0.000000e+00> : vector<2x128xf32>
    %16 = tpu.matmul %1, %15, %cst_14 {dimension_numbers = #tpu.dot_dimension_numbers<[1], [0], [0], [1], [0, 0, 1, 1], [], []>} : vector<2x16xbf16>, vector<16x128xbf16>, vector<2x128xf32> -> vector<2x128xf32>
    %c0_15 = arith.constant 0 : index
    %c0_16 = arith.constant 0 : index
    %c0_17 = arith.constant 0 : index
    %17 = vector.load %arg7[%c0_15, %c0_16, %c0_17] : memref<1x1x128xf32, #tpu.memory_space<vmem>>, vector<1x1x128xf32>
    %18 = vector.shape_cast %17 : vector<1x1x128xf32> to vector<1x128xf32>
    %19 = vector.broadcast %18 : vector<1x128xf32> to vector<2x128xf32>
    %20 = arith.addf %16, %19 : vector<2x128xf32>
    %cst_18 = arith.constant 0.000000e+00 : f32
    %21 = vector.broadcast %cst_18 : f32 to vector<2x128xf32>
    %22 = arith.cmpf oge, %20, %21 : vector<2x128xf32>
    %cst_19 = arith.constant 2.000000e-01 : f32
    %23 = vector.broadcast %cst_19 : f32 to vector<2x128xf32>
    %24 = arith.mulf %23, %20 : vector<2x128xf32>
    %25 = arith.select %22, %20, %24 : vector<2x128xi1>, vector<2x128xf32>
    %26 = arith.negf %25 : vector<2x128xf32>
    %27 = math.exp %26 : vector<2x128xf32>
    %cst_20 = arith.constant 1.000000e+00 : f32
    %28 = vector.broadcast %cst_20 : f32 to vector<2x128xf32>
    %29 = arith.addf %28, %27 : vector<2x128xf32>
    %30 = arith.divf %28, %29 : vector<2x128xf32>
    %c0_21 = arith.constant 0 : index
    %c0_22 = arith.constant 0 : index
    %c0_23 = arith.constant 0 : index
    %31 = vector.load %arg8[%c0_21, %c0_22, %c0_23] : memref<1x16x128xbf16, #tpu.memory_space<vmem>>, vector<1x16x128xbf16>
    %32 = vector.shape_cast %31 : vector<1x16x128xbf16> to vector<16x128xbf16>
    %cst_24 = arith.constant dense<0.000000e+00> : vector<2x128xf32>
    %33 = tpu.matmul %1, %32, %cst_24 {dimension_numbers = #tpu.dot_dimension_numbers<[1], [0], [0], [1], [0, 0, 1, 1], [], []>} : vector<2x16xbf16>, vector<16x128xbf16>, vector<2x128xf32> -> vector<2x128xf32>
    %c0_25 = arith.constant 0 : index
    %c0_26 = arith.constant 0 : index
    %c0_27 = arith.constant 0 : index
    %34 = vector.load %arg9[%c0_25, %c0_26, %c0_27] : memref<1x1x128xf32, #tpu.memory_space<vmem>>, vector<1x1x128xf32>
    %35 = vector.shape_cast %34 : vector<1x1x128xf32> to vector<1x128xf32>
    %36 = vector.broadcast %35 : vector<1x128xf32> to vector<2x128xf32>
    %37 = arith.addf %33, %36 : vector<2x128xf32>
    %cst_28 = arith.constant 0.000000e+00 : f32
    %38 = vector.broadcast %cst_28 : f32 to vector<2x128xf32>
    %39 = arith.cmpf oge, %37, %38 : vector<2x128xf32>
    %cst_29 = arith.constant 2.000000e-01 : f32
    %40 = vector.broadcast %cst_29 : f32 to vector<2x128xf32>
    %41 = arith.mulf %40, %37 : vector<2x128xf32>
    %42 = arith.select %39, %37, %41 : vector<2x128xi1>, vector<2x128xf32>
    %43 = arith.mulf %13, %30 : vector<2x128xf32>
    %44 = arith.addf %43, %42 : vector<2x128xf32>
    %c0_30 = arith.constant 0 : index
    %c0_31 = arith.constant 0 : index
    %45 = vector.load %arg11[%c0_30, %c0_31] : memref<2x128xf32, #tpu.memory_space<vmem>>, vector<2x128xf32>
    tpu.vector_store %arg11[%c0_30, %c0_31], %44 {strides = array<i32>} : memref<2x128xf32, #tpu.memory_space<vmem>>, vector<2x128xf32>,
    return
  }
  func.func @transform_0(%arg0: i32, %arg1: i32) -> (i32, i32) {
    %c66_i32 = arith.constant 66 : i32
    %0 = arith.addi %c66_i32, %arg0 : i32
    %c0_i32 = arith.constant 0 : i32
    return %arg1, %0 : i32, i32
  }
  func.func @transform_1(%arg0: i32, %arg1: i32) -> (i32, i32) {
    %c0_i32 = arith.constant 0 : i32
    %c0_i32_0 = arith.constant 0 : i32
    return %arg1, %c0_i32 : i32, i32
  }
  func.func @transform_2(%arg0: i32, %arg1: i32) -> (i32, i32, i32) {
    %c0_i32 = arith.constant 0 : i32
    %c0_i32_0 = arith.constant 0 : i32
    %c0_i32_1 = arith.constant 0 : i32
    return %arg0, %c0_i32, %c0_i32_0 : i32, i32, i32
  }
  func.func @transform_3(%arg0: i32, %arg1: i32) -> (i32, i32, i32) {
    %c0_i32 = arith.constant 0 : i32
    %c0_i32_0 = arith.constant 0 : i32
    %c0_i32_1 = arith.constant 0 : i32
    return %arg0, %c0_i32, %c0_i32_0 : i32, i32, i32
  }
  func.func @transform_4(%arg0: i32, %arg1: i32) -> (i32, i32, i32) {
    %c0_i32 = arith.constant 0 : i32
    %c0_i32_0 = arith.constant 0 : i32
    %c0_i32_1 = arith.constant 0 : i32
    return %arg0, %c0_i32, %c0_i32_0 : i32, i32, i32
  }
  func.func @transform_5(%arg0: i32, %arg1: i32) -> (i32, i32, i32) {
    %c0_i32 = arith.constant 0 : i32
    %c0_i32_0 = arith.constant 0 : i32
    %c0_i32_1 = arith.constant 0 : i32
    return %arg0, %c0_i32, %c0_i32_0 : i32, i32, i32
  }
  func.func @transform_6(%arg0: i32, %arg1: i32) -> (i32, i32, i32) {
    %c0_i32 = arith.constant 0 : i32
    %c0_i32_0 = arith.constant 0 : i32
    %c0_i32_1 = arith.constant 0 : i32
    return %arg0, %c0_i32, %c0_i32_0 : i32, i32, i32
  }
  func.func @transform_7(%arg0: i32, %arg1: i32) -> (i32, i32, i32) {
    %c0_i32 = arith.constant 0 : i32
    %c0_i32_0 = arith.constant 0 : i32
    %c0_i32_1 = arith.constant 0 : i32
    return %arg0, %c0_i32, %c0_i32_0 : i32, i32, i32
  }
  func.func @transform_9(%arg0: i32, %arg1: i32) -> (i32, i32) {
    %c66_i32 = arith.constant 66 : i32
    %0 = arith.addi %c66_i32, %arg0 : i32
    %c0_i32 = arith.constant 0 : i32
    return %arg1, %0 : i32, i32
  }
}

</mosaic_0001>

<bundles_post_ra>
// kernel: time_stylespace_mapper.5
= control target key start
LH: loop header
LB: loop body
LE: loop exit
PB: predicated region body
PF: predicated region fallthrough
CT: control target
= control target key end

     0   :  { %s1624_s0 = inlined_call_operand.vmem [shape: bf16[2,9088], index: 0, kind: input, shape index: {}]   ;;  %s1625_s1 = inlined_call_operand.vmem [shape: bf16[2,16], index: 1, kind: input, shape index: {}]   ;;  %s1626_s2 = inlined_call_operand.hbm [shape: bf16[5,128,128], index: 2, kind: input, shape index: {}]   ;;  %s1627_s3 = inlined_call_operand.hbm [shape: f32[5,1,128], index: 3, kind: input, shape index: {}]   ;;  %s1628_s4 = inlined_call_operand.hbm [shape: bf16[5,16,128], index: 4, kind: input, shape index: {}]   ;;  %s1629_s5 = inlined_call_operand.hbm [shape: f32[5,1,128], index: 5, kind: input, shape index: {}]   ;;  %s1630_s6 = inlined_call_operand.hbm [shape: bf16[5,16,128], index: 6, kind: input, shape index: {}]   ;;  %s1631_s7 = inlined_call_operand.hbm [shape: f32[5,1,128], index: 7, kind: input, shape index: {}]   ;;  %s1632_s8 = inlined_call_operand.vmem [shape: f32[2,9088], index: 8, kind: input, shape index: {}, may-alias: {8,9}]   ;;  %s1633_s9 = inlined_call_operand.vmem [shape: f32[2,9088], index: 9, kind: output, shape index: {}, may-alias: {8,9}]  }
   0x1   :  { %1637 = sst [smem:[#allocation19_spill]] %s1624_s0 }
   0x2   :  { %1638 = sst [smem:[#allocation20_spill]] %s1626_s2 }
   0x3   :  { %1639 = sst [smem:[#allocation21_spill]] %s1627_s3 }
   0x4   :  { %1640 = sst [smem:[#allocation22_spill]] %s1628_s4 }
   0x5   :  { %1641 = sst [smem:[#allocation23_spill]] %s1629_s5 }
   0x6   :  { %1642 = sst [smem:[#allocation24_spill]] %s1633_s9 }
   0x7   :  { %14 = vsyncpa [#allocation3], 0 }
   0x8   :  { %16 = vsyncpa [#allocation3 + $0x1], 0 }
   0x9   :  { %17 = vsyncpa [#allocation5], 0 }
   0xa   :  { %19 = vsyncpa [#allocation5 + $0x1], 0 }
   0xb   :  { %20 = vsyncpa [#allocation8], 0 }
   0xc   :  { %22 = vsyncpa [#allocation8 + $0x1], 0 }
   0xd   :  { %23 = vsyncpa [#allocation11], 0 }
   0xe   :  { %25 = vsyncpa [#allocation11 + $0x1], 0  ;;  %s1433_s30 = smov 0   ;;  %s1435_s10 = smov 0  }
   0xf   :  { %s1437_s11 = smov 0   ;;  %s1439_s12 = smov 0  }
  0x10   :  { %s1441_s8 = smov 0   ;;  %s1443_s13 = smov 0  }
  0x11 LB: > { %1643 = sst [smem:[#allocation16_spill]] %s1367_s11  ;;  %s1634_s14 = sadd.s32 4294967295, %s1379_s13   ;;  %s1379_s13 = sphi %s1443_s13, %s31_s13   ;;  %s1375_s8 = sphi %s1441_s8, %s1662_s8   ;;  %s1371_s12 = sphi %s1439_s12, %s1661_s12   ;;  %s1367_s11 = sphi %s1437_s11, %s1657_s11   ;;  %s1363_s10 = sphi %s1435_s10, %s1660_s10   ;;  %s1359_s30 = sphi %s1433_s30, %s1659_s30  }
  0x12   : > { %s43_s15 = sadd.s32 1, %s1375_s8  ;;  %s106_s16 = sadd.s32 1, %s1367_s11 }
  0x13   : > { %p45_p0 = scmp.ge.s32.totalorder %s43_s15, 5  ;;  %p113_p1 = scmp.ne.s32.totalorder %s1367_s11, %s1363_s10 }
  0x14   : > { %p114_p2 = scmp.eq.s32.totalorder %s1379_s13, 0  ;;  %p119_p4 = scmp.ne.s32.totalorder %s1363_s10, %s1359_s30 }
  0x15   : > { %s1664_s15 = smov (%p45_p0, %s43_s15), 0  ;;  %p120_p5 = scmp.eq.s32.totalorder %s1634_s14, 0 }
  0x16   : > { %1644 = sst [smem:[#allocation17_spill]] %s1664_s15  ;;  %p115_p3 = por %p114_p2, %p113_p1 }
  0x17   : > { %s103_s17 = ssub.s32 %s1375_s8, %s1664_s15  ;;  %p1474_p7 = por %p120_p5, %p119_p4 }
  0x18   : > { %p104_p6 = scmp.eq.s32.totalorder %s103_s17, 0  ;;  %p1079_p8 = scmp.lt.s32.totalorder %s1379_s13, 5 }
  0x19   : > { %s1483_s20 = sand.u32 1, %s1367_s11   ;;  %s343_s22 = sand.u32 1, %s1379_s13  }
  0x1a   : > { %s1480_s19 = scalar_select %p104_p6, %s1367_s11, %s106_s16  }
  0x1b   : > { %p1485_p9 = pnand %p1079_p8, %p115_p3  ;;  %s1648_s3 = sld [smem:[#allocation21_spill]] }
  0x1c   : > { %1646 = sst [smem:[#allocation18_spill]] %s1480_s19  ;;  %s346_s26 = scalar_lea.vmem [#allocation4], %s1483_s20 }
  0x1d   : > { %s353_s27 = sshll.u32 %s346_s26, 4  ;;  %p985_p10 = scmp.ge.s32.totalorder %s1379_s13, 1  ;;  %s354_s27 = int_to_ptr.vmem [resolvable:$true] %s353_s27 }
  0x1e   : > { %s1496_s29 = scalar_lea.sflag [#allocation5], %s343_s22  ;;  %p436_p11 = scmp.lt.s32.totalorder %s1379_s13, 6 }
  0x1f   : > { %s1649_s5 = sld [smem:[#allocation23_spill]]  ;;  %s1511_s14 = scalar_lea.sflag [#allocation8], %s343_s22 }
  0x20   : > { %p1506_p12 = pnand %p985_p10, %p436_p11  ;;  %s1651_s2 = sld [smem:[#allocation20_spill]] }
  0x21   : > { %s349_s25 = scalar_lea.hbm %s1648_s3, %s1375_s8  ;;  %s1381_s19 = smov 64  }
  0x22   : > { %s351_s28 = sshll.u32 %s349_s25, 4  ;;  %s385_s25 = scalar_lea.vmem [#allocation7], %s1483_s20  ;;  %s352_s28 = int_to_ptr.hbm [resolvable:$true] %s351_s28 }
  0x23   : > { %1066 = dma.hbm_to_vmem [thread:$0]  (!%p1485_p9), %s352_s28, 16, %s354_s27, %s1496_s29  }
  0x24   : > { %s392_s26 = sshll.u32 %s385_s25, 4  ;;  %s976_s27 = sshll.u32 %s1483_s20, 6  ;;  %s393_s26 = int_to_ptr.vmem [resolvable:$true] %s392_s26 }
  0x25   : > { %s388_s17 = scalar_lea.hbm %s1649_s5, %s1375_s8  ;;  %s1035_s28 = sshll.u32 %s1375_s8, 6 }
  0x26   : > { %s390_s24 = sshll.u32 %s388_s17, 4  ;;  %s330_s3 = scalar_lea.hbm %s1651_s2, %s1035_s28  ;;  %s391_s24 = int_to_ptr.hbm [resolvable:$true] %s390_s24 }
  0x27   : > { %1072 = dma.hbm_to_vmem [thread:$0]  (!%p1485_p9), %s391_s24, 16, %s393_s26, %s1511_s14  }
  0x28   : > { %s331_s5 = sshll.u32 %s330_s3, 4  ;;  %s325_s17 = scalar_lea.vmem [#allocation2], %s976_s27  ;;  %s332_s5 = int_to_ptr.hbm [resolvable:$true] %s331_s5 }
  0x29   : > { %s333_s15 = sshll.u32 %s325_s17, 4  ;;  %s322_s25 = scalar_lea.sflag [#allocation3], %s1483_s20  ;;  %s334_s15 = int_to_ptr.vmem [resolvable:$true] %s333_s15 }
  0x2a   : > { %s1382_s22 = smov 4   ;;  %s979_s24 = sshll.u32 %s1483_s20, 3 }
  0x2b   : > { %1063 = dma.hbm_to_vmem [thread:$0]  (!%p1485_p9), %s332_s5, 1024, %s334_s15, %s322_s25, %s1381_s19, %s1381_s19, %s1382_s22  }
  0x2c   : > { %s1036_s26 = sshll.u32 %s1375_s8, 3  ;;  %s1652_s4 = sld [smem:[#allocation22_spill]] }
  0x2d   : > { %s364_s28 = scalar_lea.vmem [#allocation6], %s979_s24  ;;  %s408_s17 = scalar_lea.hbm %s1630_s6, %s1036_s26 }
  0x2e   : > { %s372_s16 = sshll.u32 %s364_s28, 4  ;;  %s409_s25 = sshll.u32 %s408_s17, 4  ;;  %s373_s16 = int_to_ptr.vmem [resolvable:$true] %s372_s16  ;;  %s410_s25 = int_to_ptr.hbm [resolvable:$true] %s409_s25 }
  0x2f   : > { %s403_s2 = scalar_lea.vmem [#allocation9], %s979_s24  ;;  %s424_s28 = scalar_lea.vmem [#allocation10], %s1483_s20 }
  0x30   : > { %s411_s9 = sshll.u32 %s403_s2, 4  ;;  %s1549_s2 = sand.u32 (!%p1506_p12), 1, %s1363_s10   ;;  %s412_s9 = int_to_ptr.vmem [resolvable:$true] %s411_s9 }
  0x31   : > { %1075 = dma.hbm_to_vmem [thread:$0]  (!%p1485_p9), %s410_s25, 128, %s412_s9, %s1511_s14, %s1381_s19, %s1381_s19, %s1382_s22  }
  0x32   : > { %s369_s3 = scalar_lea.hbm %s1652_s4, %s1036_s26  ;;  %s431_s4 = sshll.u32 %s424_s28, 4  ;;  %s432_s4 = int_to_ptr.vmem [resolvable:$true] %s431_s4 }
  0x33   : > { %s370_s27 = sshll.u32 %s369_s3, 4  ;;  %s427_s3 = scalar_lea.hbm %s1631_s7, %s1375_s8  ;;  %s371_s27 = int_to_ptr.hbm [resolvable:$true] %s370_s27 }
  0x34   : > { %1069 = dma.hbm_to_vmem [thread:$0]  (!%p1485_p9), %s371_s27, 128, %s373_s16, %s1496_s29, %s1381_s19, %s1381_s19, %s1382_s22  }
  0x35   : > { %s429_s0 = sshll.u32 %s427_s3, 4  ;;  %s422_s29 = scalar_lea.sflag [#allocation11], %s1483_s20  ;;  %s430_s0 = int_to_ptr.hbm [resolvable:$true] %s429_s0 }
  0x36   : > { %1078 = dma.hbm_to_vmem [thread:$0]  (!%p1485_p9), %s430_s0, 16, %s432_s4, %s422_s29  }
  0x37   : > { %440 = sbr.rel (%p1506_p12) target bundleno = 239 (0xef), region = 52  ;;  %s986_s9 = sshll.u32 (!%p1506_p12), %s1549_s2, 6 }
  0x38   : > { %s443_s14 = scalar_lea.sflag (!%p1506_p12), [#allocation3], %s1549_s2  ;;  %s1553_s19 = scalar_lea.vmem (!%p1506_p12), [#allocation2], %s986_s9 }
  0x3c   : > { %1342 = dma.done.wait (%p1474_p7), %s443_s14, 1024  }
  0x3d   : > { %1344 = vsyncadd (%p1474_p7), %s443_s14, 4294966272  ;;  %s1653_s0 = sadd.s32 4294967295, %s1379_s13   ;;  %s455_s21 = scalar_lea.vmem [#allocation4], %s1549_s2 }
  0x3e   : > { %s452_s4 = sand.u32 1, %s1653_s0  }
  0x3f   : > { %s453_s20 = scalar_lea.sflag [#allocation5], %s452_s4 }
  0x40   : > { %1346 = dma.done.wait (%p1474_p7), %s453_s20, 144  }
  0x41   : > { %1348 = vsyncadd (%p1474_p7), %s453_s20, 4294967152  ;;  %s987_s23 = sshll.u32 %s1549_s2, 3  ;;  %s472_s24 = scalar_lea.sflag [#allocation8], %s452_s4 }
  0x42   : > { %s465_s22 = scalar_lea.vmem [#allocation6], %s987_s23  ;;  %s474_s26 = scalar_lea.vmem [#allocation7], %s1549_s2 }
  0x43   : > { %1350 = dma.done.wait (%p1474_p7), %s472_s24, 144  }
  0x44   : > { %1352 = vsyncadd (%p1474_p7), %s472_s24, 4294967152  ;;  %s484_s27 = scalar_lea.vmem [#allocation9], %s987_s23  ;;  %s491_s16 = scalar_lea.sflag [#allocation11], %s1549_s2 }
  0x45   : > { %s493_s5 = scalar_lea.vmem [#allocation10], %s1549_s2 }
  0x46   : > { %1354 = dma.done.wait (%p1474_p7), %s491_s16, 16  }
  0x47   : > { %1356 = vsyncadd (%p1474_p7), %s491_s16, 4294967280  ;;  %v1045_v0 = vld [vmem:[%s1553_s19 + $0x38] sm:$0xff]  ;;  %v1046_v1 = vld [vmem:[%s465_s22] sm:$0xff]  ;;  %vm685_vm0 = vcmask 130048   ;;  %s564_s18 = sadd.s32 66, %s1371_s12  ;;  %s1654_s30 = sld [smem:[#allocation19_spill]] }
  0x48   : > { %657 = vmatpush.bf16.msra.mxu0 %v1045_v0  ;;  %696 = vmatpush.bf16.msra.mxu1 %v1046_v1  ;;  %v588_v2 = vld [vmem:[%s1625_s1] sm:$0x1]  ;;  %v1044_v3 = vld [vmem:[%s1553_s19 + $0x30] sm:$0xff]  ;;  %v1043_v5 = vld [vmem:[%s1553_s19 + $0x28] sm:$0xff]  ;;  %p567_p13 = scmp.lt.s32.totalorder %s564_s18, 70  ;;  %s1655_s2 = sld [smem:[#allocation24_spill]] }
  0x49   : > { %v1047_v4 = vld [vmem:[%s484_s27] sm:$0xff]  ;;  %v1039_v9 = vld [vmem:[%s1553_s19 + $0x8] sm:$0xff] }
  0x4a   : > { %743 = vmatpush.bf16.msra.mxu2 %v1047_v4  ;;  %v1042_v6 = vld [vmem:[%s1553_s19 + $0x20] sm:$0xff]  ;;  %v1041_v7 = vld [vmem:[%s1553_s19 + $0x18] sm:$0xff]  ;;  %v1040_v8 = vld [vmem:[%s1553_s19 + $0x10] sm:$0xff]  ;;  %s1666_s18 = smov (!%p567_p13, %s564_s18), 70 }
  0x4b   : > { %1026 = vmatmul.msk.bf16.vlgmr.msra.gmra.mxu1 %vm685_vm0, %v588_v2  ;;  %v1038_v10 = vld [vmem:[%s1553_s19] sm:$0xff]  ;;  %s989_s12 = sshll.u32 %s1666_s18, 1 }
  0x4c   : > { %658 = vmatpush.bf16.msra.mxu0 %v1044_v3  ;;  %v1130_v12 = vld [vmem:[%s474_s26] ss:$0 sm:$0xff] }
  0x4d   : > { %1032 = vmatmul.msk.bf16.vlgmr.msra.gmra.mxu2 %vm685_vm0, %v588_v2  ;;  %s571_s3 = scalar_lea.vmem %s1654_s30, %s1666_s18  ;;  %v1131_v24 = vld [vmem:[%s493_s5] ss:$0 sm:$0xff] }
  0x4e   : > { %v587_v11 = vld [vmem:[%s571_s3] sm:$0x1]  ;;  %s584_s9 = scalar_lea.vmem %s1655_s2, %s989_s12 }
  0x4f   : > { %v1132_v26 = vld [vmem:[%s455_s21] ss:$0 sm:$0xff] }
  0x50   : > { %659 = vmatpush.bf16.msra.mxu0 %v1043_v5 }
  0x54   : > { %660 = vmatpush.bf16.msra.mxu0 %v1042_v6 }
  0x58   : > { %661 = vmatpush.bf16.msra.mxu0 %v1041_v7 }
  0x5c   : > { %662 = vmatpush.bf16.msra.mxu0 %v1040_v8 }
  0x60   : > { %663 = vmatpush.bf16.msra.mxu0 %v1039_v9 }
  0x64   : > { %664 = vmatpush.bf16.msra.mxu0 %v1038_v10 }
  0x67   : > { %665 = vmatmul.bf16.vlgmr.msra.gmra.mxu0 %v587_v11 }
  0xc8   : > { %v698_v13 = vpop.f32.mrf.mxu1 }
  0xc9   : > { %v699_v14 = vadd.f32 %v1130_v12, %v698_v13 }
  0xcb   : > { %vm702_vm1 = vcmp.ge.f32.partialorder %v699_v14, 0.0  ;;  %v703_v15 = vmul.f32 0.2, %v699_v14 }
  0xcd   : > { %v704_v16 = vsel %vm702_vm1, %v699_v14, %v703_v15 }
  0xce   : > { %v1027_v17 = vmul.f32 -1.442695, %v704_v16 }
  0xd0   : > { %1133 = vpow2.f32 %v1027_v17  ;;  %v700_v18 = vpop.f32.mrf.mxu1  ;;  %v745_v19 = vpop.f32.mrf.mxu2 }
  0xd1   : > { %v746_v28 = vadd.f32 %v1131_v24, %v745_v19 }
  0xd3   : > { %v750_v35 = vmul.f32 0.2, %v746_v28  ;;  %vm749_vm6 = vcmp.ge.f32.partialorder %v746_v28, 0.0 }
  0xd5   : > { %v751_v42 = vsel %vm749_vm6, %v746_v28, %v750_v35 }
  0xd6   : > { %v1134_v20 = vpop.eup %1133 }
  0xd7   : > { %v708_v21 = vadd.f32 1.0, %v1134_v20 }
  0xd8   : > { %v747_v22 = vpop.f32.mrf.mxu2 }
  0xd9   : > { %1135 = vrcp.f32 %v708_v21  ;;  %v720_v29 = vand.u32 2147483648, %v708_v21  ;;  %v718_v32 = vand.u32 2147483647, %v708_v21  ;;  %vm714_vm3 = vweird.f32 %v708_v21 }
  0xdb   : > { %v721_v37 = vor.u32 1.1754944e-38, %v720_v29  ;;  %vm719_vm7 = vcmp.eq.f32.partialorder %v718_v32, 8.507059e+37 }
  0xdf   : > { %v1136_v23 = vpop.eup %1135 }
  0xe0   : > { %v710_v25 = vmul.f32 %v1136_v23, %v708_v21  ;;  %vm715_vm2 = vweird.f32 %v1136_v23 }
  0xe1   : > { %vm716_vm5 = vmor %vm714_vm3, %vm715_vm2 }
  0xe2   : > { %v711_v27 = vsub.f32 1.0, %v710_v25 }
  0xe4   : > { %v666_v30 = vpop.f32.mrf.mxu0  ;;  %v712_v31 = vmul.f32 %v1136_v23, %v711_v27 }
  0xe5   : > { %v667_v33 = vadd.f32 %v1132_v26, %v666_v30 }
  0xe6   : > { %v713_v34 = vadd.f32 %v1136_v23, %v712_v31 }
  0xe7   : > { %vm670_vm4 = vcmp.ge.f32.partialorder %v667_v33, 0.0  ;;  %v671_v36 = vmul.f32 0.2, %v667_v33 }
  0xe8   : > { %v717_v38 = vsel %vm716_vm5, %v1136_v23, %v713_v34 }
  0xe9   : > { %v672_v39 = vsel %vm670_vm4, %v667_v33, %v671_v36  ;;  %v722_v40 = vsel %vm719_vm7, %v721_v37, %v717_v38 }
  0xea   : > { %v752_v41 = vmul.f32 %v722_v40, %v672_v39 }
  0xec   : > { %v753_v43 = vadd.f32 %v752_v41, %v751_v42  ;;  %v668_v44 = vpop.f32.mrf.mxu0 }
  0xee   : > { %754 = vst [vmem:[%s584_s9] sm:$0x3] %v753_v43 }
  0xef PF: > { %s31_s13 = sadd.s32 1, %s1379_s13   ;;  %s1656_s14 = sld [smem:[#allocation16_spill]] }
  0xf0   : > { %p28_p0 = scmp.ge.s32.totalorder %s31_s13, 7   ;;  %s1657_s11 = sld [smem:[#allocation18_spill]] }
  0xf1   : > { %s1658_s19 = sld [smem:[#allocation17_spill]]  ;;  %s1659_s30 = smov %s1363_s10 }
  0xf2   : > { %s1661_s12 = smov %s1375_s8 }
  0xf3   :  { %30 = sbr.rel (!%p28_p0) target bundleno = 17 (0x11), region = 159 }
  0xf5   : > { %s1660_s10 = smov %s1656_s14 }
  0xf7   : > { %s1662_s8 = smov %s1658_s19 }
  0xf8   :  { %785 = vsyncpa [#allocation3], 1 }
  0xf9   :  { %787 = vsyncpa [#allocation3 + $0x1], 1 }
  0xfa   :  { %788 = vsyncpa [#allocation5], 1 }
  0xfb   :  { %790 = vsyncpa [#allocation5 + $0x1], 1 }
  0xfc   :  { %791 = vsyncpa [#allocation8], 1 }
  0xfd   :  { %793 = vsyncpa [#allocation8 + $0x1], 1 }
  0xfe   :  { %794 = vsyncpa [#allocation11], 1 }
  0xff   :  { %796 = vsyncpa [#allocation11 + $0x1], 1 }

// kernel: time_stylespace_mapper.4
= control target key start
LH: loop header
LB: loop body
LE: loop exit
PB: predicated region body
PF: predicated region fallthrough
CT: control target
= control target key end

     0   :  { %s3151_s0 = inlined_call_operand.vmem [shape: bf16[2,9088], index: 0, kind: input, shape index: {}]   ;;  %s3152_s1 = inlined_call_operand.vmem [shape: bf16[2,16], index: 1, kind: input, shape index: {}]   ;;  %s3153_s2 = inlined_call_operand.hbm [shape: bf16[3,256,256], index: 2, kind: input, shape index: {}]   ;;  %s3154_s3 = inlined_call_operand.hbm [shape: f32[3,1,256], index: 3, kind: input, shape index: {}]   ;;  %s3155_s4 = inlined_call_operand.hbm [shape: bf16[3,16,256], index: 4, kind: input, shape index: {}]   ;;  %s3156_s5 = inlined_call_operand.hbm [shape: f32[3,1,256], index: 5, kind: input, shape index: {}]   ;;  %s3157_s6 = inlined_call_operand.hbm [shape: bf16[3,16,256], index: 6, kind: input, shape index: {}]   ;;  %s3158_s7 = inlined_call_operand.hbm [shape: f32[3,1,256], index: 7, kind: input, shape index: {}]   ;;  %s3159_s8 = inlined_call_operand.vmem [shape: f32[2,9088], index: 8, kind: input, shape index: {}, may-alias: {8,9}]   ;;  %s3160_s9 = inlined_call_operand.vmem [shape: f32[2,9088], index: 9, kind: output, shape index: {}, may-alias: {8,9}]  }
   0x1   :  { %3168 = sst [smem:[#allocation26_spill]] %s3151_s0 }
   0x2   :  { %3169 = sst [smem:[#allocation27_spill]] %s3152_s1 }
   0x3   :  { %3170 = sst [smem:[#allocation28_spill]] %s3153_s2 }
   0x4   :  { %3171 = sst [smem:[#allocation29_spill]] %s3154_s3 }
   0x5   :  { %3172 = sst [smem:[#allocation30_spill]] %s3155_s4 }
   0x6   :  { %3173 = sst [smem:[#allocation31_spill]] %s3156_s5 }
   0x7   :  { %3174 = sst [smem:[#allocation32_spill]] %s3160_s9 }
   0x8   :  { %14 = vsyncpa [#allocation3], 0 }
   0x9   :  { %16 = vsyncpa [#allocation3 + $0x1], 0 }
   0xa   :  { %17 = vsyncpa [#allocation5], 0 }
   0xb   :  { %19 = vsyncpa [#allocation5 + $0x1], 0 }
   0xc   :  { %20 = vsyncpa [#allocation8], 0 }
   0xd   :  { %22 = vsyncpa [#allocation8 + $0x1], 0 }
   0xe   :  { %23 = vsyncpa [#allocation11], 0 }
   0xf   :  { %25 = vsyncpa [#allocation11 + $0x1], 0  ;;  %s2548_s30 = smov 0   ;;  %s2550_s10 = smov 0  }
  0x10   :  { %s2552_s11 = smov 0   ;;  %s2554_s12 = smov 0  }
  0x11   :  { %s2556_s8 = smov 0   ;;  %s2558_s13 = smov 0  }
  0x12   :  { %s2560_s14 = smov 0   ;;  %s2562_s15 = smov 0  }
  0x13 LB: > { %3175 = sst [smem:[#allocation17_spill]] %s2400_s30  ;;  %s2587_s16 = sadd.s32 4294967295, %s2428_s15   ;;  %s2428_s15 = sphi %s2562_s15, %s31_s15   ;;  %s2424_s14 = sphi %s2560_s14, %s3213_s14   ;;  %s2420_s13 = sphi %s2558_s13, %s3216_s13   ;;  %s2416_s8 = sphi %s2556_s8, %s3211_s8   ;;  %s2412_s12 = sphi %s2554_s12, %s3215_s12   ;;  %s2408_s11 = sphi %s2552_s11, %s3214_s11   ;;  %s2404_s10 = sphi %s2550_s10, %s3209_s10   ;;  %s2400_s30 = sphi %s2548_s30, %s3208_s30  }
  0x14   : > { %3176 = sst [smem:[#allocation18_spill]] %s2404_s10  ;;  %s43_s17 = sadd.s32 1, %s2424_s14 }
  0x15   : > { %3177 = sst [smem:[#allocation19_spill]] %s2416_s8  ;;  %p45_p0 = scmp.ge.s32.totalorder %s43_s17, 3 }
  0x16   : > { %3178 = sst [smem:[#allocation20_spill]] %s2424_s14  ;;  %s106_s18 = sadd.s32 1, %s2416_s8 }
  0x17   : > { %3179 = sst [smem:[#allocation21_spill]] %s2428_s15  ;;  %p113_p1 = scmp.ne.s32.totalorder %s2416_s8, %s2412_s12 }
  0x18   : > { %p114_p2 = scmp.eq.s32.totalorder %s2428_s15, 0  ;;  %s3218_s17 = smov (%p45_p0, %s43_s17), 0 }
  0x19   : > { %3180 = sst [smem:[#allocation22_spill]] %s3218_s17  ;;  %p119_p4 = scmp.ne.s32.totalorder %s2412_s12, %s2408_s11 }
  0x1a   : > { %p2596_p3 = por %p114_p2, %p113_p1  ;;  %s103_s20 = ssub.s32 %s2424_s14, %s3218_s17 }
  0x1b   : > { %p120_p5 = scmp.eq.s32.totalorder %s2587_s16, 0  ;;  %p104_p6 = scmp.eq.s32.totalorder %s103_s20, 0 }
  0x1c   : > { %s259_s21 = sadd.s32 30, %s2424_s14  ;;  %s260_s23 = sadd.s32 30, %s3218_s17 }
  0x1d   : > { %p2605_p7 = por %p120_p5, %p119_p4  ;;  %s262_s25 = ssub.s32 %s259_s21, %s260_s23 }
  0x1e   : > { %s2611_s24 = scalar_select %p104_p6, %s2416_s8, %s106_s18  }
  0x1f   : > { %s266_s26 = sadd.s32 1, %s2404_s10  ;;  %p264_p8 = scmp.eq.s32.totalorder %s262_s25, 0 }
  0x20   : > { %3183 = sst [smem:[#allocation23_spill]] %s2611_s24  ;;  %p276_p9 = scmp.ne.s32.totalorder %s2404_s10, %s2400_s30 }
  0x21   : > { %p277_p10 = scmp.eq.s32.totalorder %s2587_s16, 2  ;;  %p1901_p12 = scmp.lt.s32.totalorder %s2428_s15, 3 }
  0x22   : > { %s2618_s27 = scalar_select %p264_p8, %s2404_s10, %s266_s26  }
  0x23   : > { %p2620_p11 = por %p277_p10, %p276_p9  ;;  %s2626_s29 = sand.u32 1, %s2416_s8  }
  0x24   : > { %3184 = sst [smem:[#allocation24_spill]] %s2618_s27  ;;  %s351_s11 = sand.u32 1, %s2428_s15  }
  0x25   : > { %s3185_s28 = scalar_select %p2620_p11, 1, 0 }
  0x26   : > { %p2631_p13 = pnand %p1901_p12, %p2596_p3  ;;  %s2636_s20 = sshll.u32 %s2626_s29, 1 }
  0x27   : > { %3186 = sst [smem:[#allocation25_spill]] %s3185_s28  ;;  %s2639_s21 = sshll.u32 %s2424_s14, 1 }
  0x28   : > { %s3188_s3 = sld [smem:[#allocation29_spill]]  ;;  %s355_s17 = scalar_lea.vmem [#allocation4], %s2636_s20 }
  0x29   : > { %s363_s24 = sshll.u32 %s355_s17, 4  ;;  %p1631_p0 = scmp.ge.s32.totalorder %s2428_s15, 1  ;;  %s364_s24 = int_to_ptr.vmem [resolvable:$true] %s363_s24 }
  0x2a   : > { %s2647_s8 = scalar_lea.sflag [#allocation5], %s351_s11  ;;  %p450_p1 = scmp.lt.s32.totalorder %s2428_s15, 4 }
  0x2b   : > { %s3189_s5 = sld [smem:[#allocation31_spill]]  ;;  %s2662_s9 = scalar_lea.sflag [#allocation8], %s351_s11 }
  0x2c   : > { %p2657_p2 = pnand %p1631_p0, %p450_p1  ;;  %s1616_s10 = sshll.u32 %s2626_s29, 8 }
  0x2d   : > { %s3191_s2 = sld [smem:[#allocation28_spill]]  ;;  %s2494_s30 = smov 128  }
  0x2e   : > { %s359_s26 = scalar_lea.hbm %s3188_s3, %s2639_s21  ;;  %s2495_s11 = smov 8  }
  0x2f   : > { %s361_s19 = sshll.u32 %s359_s26, 4  ;;  %s396_s26 = scalar_lea.vmem [#allocation7], %s2636_s20  ;;  %s362_s19 = int_to_ptr.hbm [resolvable:$true] %s361_s19 }
  0x30   : > { %1888 = dma.hbm_to_vmem [thread:$0]  (!%p2631_p13), %s362_s19, 32, %s364_s24, %s2647_s8  }
  0x31   : > { %s400_s23 = scalar_lea.hbm %s3189_s5, %s2639_s21  ;;  %s404_s3 = sshll.u32 %s396_s26, 4  ;;  %s405_s3 = int_to_ptr.vmem [resolvable:$true] %s404_s3 }
  0x32   : > { %s402_s17 = sshll.u32 %s400_s23, 4  ;;  %s1824_s24 = sshll.u32 %s2424_s14, 8  ;;  %s403_s17 = int_to_ptr.hbm [resolvable:$true] %s402_s17 }
  0x33   : > { %1894 = dma.hbm_to_vmem [thread:$0]  (!%p2631_p13), %s403_s17, 32, %s405_s3, %s2662_s9  }
  0x34   : > { %s338_s5 = scalar_lea.hbm %s3191_s2, %s1824_s24  ;;  %s333_s23 = scalar_lea.vmem [#allocation2], %s1616_s10 }
  0x35   : > { %s339_s15 = sshll.u32 %s338_s5, 4  ;;  %s341_s28 = sshll.u32 %s333_s23, 4  ;;  %s340_s15 = int_to_ptr.hbm [resolvable:$true] %s339_s15  ;;  %s342_s28 = int_to_ptr.vmem [resolvable:$true] %s341_s28 }
  0x36   : > { %s330_s26 = scalar_lea.sflag [#allocation3], %s2626_s29  ;;  %s1621_s3 = sshll.u32 %s2626_s29, 4 }
  0x37   : > { %1885 = dma.hbm_to_vmem [thread:$0]  (!%p2631_p13), %s340_s15, 4096, %s342_s28, %s330_s26, %s2494_s30, %s2494_s30, %s2495_s11  }
  0x38   : > { %s1825_s17 = sshll.u32 %s2424_s14, 4  ;;  %s3192_s4 = sld [smem:[#allocation30_spill]] }
  0x39   : > { %s374_s24 = scalar_lea.vmem [#allocation6], %s1621_s3  ;;  %s420_s23 = scalar_lea.hbm %s3157_s6, %s1825_s17 }
  0x3a   : > { %s382_s19 = sshll.u32 %s374_s24, 4  ;;  %s421_s26 = sshll.u32 %s420_s23, 4  ;;  %s383_s19 = int_to_ptr.vmem [resolvable:$true] %s382_s19  ;;  %s422_s26 = int_to_ptr.hbm [resolvable:$true] %s421_s26 }
  0x3b   : > { %s415_s2 = scalar_lea.vmem [#allocation9], %s1621_s3  ;;  %s437_s24 = scalar_lea.vmem [#allocation10], %s2636_s20 }
  0x3c   : > { %s423_s14 = sshll.u32 %s415_s2, 4  ;;  %s456_s2 = sand.u32 (!%p2657_p2), 1, %s2412_s12   ;;  %s424_s14 = int_to_ptr.vmem [resolvable:$true] %s423_s14 }
  0x3d   : > { %1897 = dma.hbm_to_vmem [thread:$0]  (!%p2631_p13), %s422_s26, 256, %s424_s14, %s2662_s9, %s2494_s30, %s2494_s30, %s2495_s11  }
  0x3e   : > { %s379_s5 = scalar_lea.hbm %s3192_s4, %s1825_s17  ;;  %s445_s4 = sshll.u32 %s437_s24, 4  ;;  %s446_s4 = int_to_ptr.vmem [resolvable:$true] %s445_s4 }
  0x3f   : > { %s380_s10 = sshll.u32 %s379_s5, 4  ;;  %s441_s5 = scalar_lea.hbm %s3158_s7, %s2639_s21  ;;  %s381_s10 = int_to_ptr.hbm [resolvable:$true] %s380_s10 }
  0x40   : > { %1891 = dma.hbm_to_vmem [thread:$0]  (!%p2631_p13), %s381_s10, 256, %s383_s19, %s2647_s8, %s2494_s30, %s2494_s30, %s2495_s11  }
  0x41   : > { %s443_s0 = sshll.u32 %s441_s5, 4  ;;  %s434_s8 = scalar_lea.sflag [#allocation11], %s2626_s29  ;;  %s444_s0 = int_to_ptr.hbm [resolvable:$true] %s443_s0 }
  0x42   : > { %1900 = dma.hbm_to_vmem [thread:$0]  (!%p2631_p13), %s444_s0, 32, %s446_s4, %s434_s8  }
  0x43   : > { %454 = sbr.rel (%p2657_p2) target bundleno = 448 (0x1c0), region = 52  ;;  %s1632_s3 = sshll.u32 (!%p2657_p2), %s456_s2, 8 }
  0x44   : > { %s457_s9 = scalar_lea.sflag (!%p2657_p2), [#allocation3], %s456_s2  ;;  %s2700_s30 = scalar_lea.vmem (!%p2657_p2), [#allocation2], %s1632_s3 }
  0x48   : > { %2383 = dma.done.wait (%p2605_p7), %s457_s9, 4096  }
  0x49   : > { %2385 = vsyncadd (%p2605_p7), %s457_s9, 4294963200  ;;  %s466_s14 = sand.u32 1, %s2587_s16   ;;  %s2707_s29 = sshll.u32 %s456_s2, 1 }
  0x4a   : > { %s467_s0 = scalar_lea.sflag [#allocation5], %s466_s14  ;;  %s470_s4 = scalar_lea.vmem [#allocation4], %s2707_s29 }
  0x4b   : > { %2387 = dma.done.wait (%p2605_p7), %s467_s0, 288  }
  0x4c   : > { %2389 = vsyncadd (%p2605_p7), %s467_s0, 4294967008  ;;  %s1634_s18 = sshll.u32 %s456_s2, 4  ;;  %s487_s21 = scalar_lea.sflag [#allocation8], %s466_s14 }
  0x4d   : > { %s2714_s20 = scalar_lea.vmem [#allocation6], %s1634_s18  ;;  %s490_s25 = scalar_lea.vmem [#allocation7], %s2707_s29 }
  0x4e   : > { %2391 = dma.done.wait (%p2605_p7), %s487_s21, 288  }
  0x4f   : > { %2393 = vsyncadd (%p2605_p7), %s487_s21, 4294967008  ;;  %s2721_s16 = scalar_lea.vmem [#allocation9], %s1634_s18  ;;  %s507_s11 = scalar_lea.sflag [#allocation11], %s456_s2 }
  0x50   : > { %s510_s17 = scalar_lea.vmem [#allocation10], %s2707_s29 }
  0x51   : > { %2395 = dma.done.wait (%p2605_p7), %s507_s11, 32  }
  0x52   : > { %2397 = vsyncadd (%p2605_p7), %s507_s11, 4294967264  ;;  %s1827_s10 = sshll.u32 %s2420_s13, 1  ;;  %v1698_v0 = vld [vmem:[%s2700_s30 + $0x70] sm:$0xf]  ;;  %v1844_v1 = vld [vmem:[%s2700_s30 + $0x74] sm:$0xf0] }
  0x53   : > { %s2729_s19 = sadd.s32 60, %s1827_s10  ;;  %v1762_v2 = vld [vmem:[%s2700_s30 + $0xf0] sm:$0xf]  ;;  %v1699_v3 = vor.u32 %v1844_v1, %v1698_v0  ;;  %v1860_v4 = vld [vmem:[%s2700_s30 + $0xf4] sm:$0xf0]  ;;  %s3193_s23 = sld [smem:[#allocation26_spill]] }
  0x54   : > { %v1690_v5 = vld [vmem:[%s2700_s30 + $0x60] sm:$0xf]  ;;  %v1842_v6 = vld [vmem:[%s2700_s30 + $0x64] sm:$0xf0]  ;;  %v1763_v7 = vor.u32 %v1860_v4, %v1762_v2  ;;  %p590_p3 = scmp.lt.s32.totalorder %s2729_s19, 70  ;;  %s3194_s5 = sld [smem:[#allocation27_spill]] }
  0x55   : > { %v1754_v8 = vld [vmem:[%s2700_s30 + $0xe0] sm:$0xf]  ;;  %v1858_v9 = vld [vmem:[%s2700_s30 + $0xe4] sm:$0xf0]  ;;  %816 = vmatpush.bf16.msra.mxu0 %v1699_v3  ;;  %v1691_v10 = vor.u32 %v1842_v6, %v1690_v5  ;;  %v1682_v12 = vld [vmem:[%s2700_s30 + $0x50] sm:$0xf] }
  0x56   : > { %829 = vmatpush.bf16.msra.mxu1 %v1763_v7  ;;  %v1755_v11 = vor.u32 %v1858_v9, %v1754_v8  ;;  %v1840_v13 = vld [vmem:[%s2700_s30 + $0x54] sm:$0xf0]  ;;  %v1746_v14 = vld [vmem:[%s2700_s30 + $0xd0] sm:$0xf]  ;;  %v1859_v16 = vld [vmem:[%s2700_s30 + $0xf4] sm:$0xf] }
  0x57   : > { %v1856_v15 = vld [vmem:[%s2700_s30 + $0xd4] sm:$0xf0]  ;;  %s2746_s22 = scalar_select %p590_p3, %s2729_s19, 70  ;;  %v1683_v17 = vor.u32 %v1840_v13, %v1682_v12  ;;  %v1764_v18 = vld [vmem:[%s2700_s30 + $0xf8] sm:$0xf0]  ;;  %vm892_vm0 = vcmask 130048  }
  0x58   : > { %v1843_v19 = vld [vmem:[%s2700_s30 + $0x74] sm:$0xf]  ;;  %v1700_v20 = vld [vmem:[%s2700_s30 + $0x78] sm:$0xf0]  ;;  %v1747_v21 = vor.u32 %v1856_v15, %v1746_v14  ;;  %v1674_v22 = vld [vmem:[%s2700_s30 + $0x40] sm:$0xf]  ;;  %v1767_v25 = vor.u32 %v1859_v16, %v1764_v18 }
  0x59   : > { %817 = vmatpush.bf16.msra.mxu0 %v1691_v10  ;;  %v1838_v23 = vld [vmem:[%s2700_s30 + $0x44] sm:$0xf0]  ;;  %v1738_v24 = vld [vmem:[%s2700_s30 + $0xc0] sm:$0xf]  ;;  %v1703_v26 = vor.u32 %v1843_v19, %v1700_v20  ;;  %v1857_v28 = vld [vmem:[%s2700_s30 + $0xe4] sm:$0xf]  ;;  %s594_s26 = scalar_lea.vmem %s3193_s23, %s2746_s22 }
  0x5a   : > { %830 = vmatpush.bf16.msra.mxu1 %v1755_v11  ;;  %v1854_v27 = vld [vmem:[%s2700_s30 + $0xc4] sm:$0xf0]  ;;  %v1756_v29 = vld [vmem:[%s2700_s30 + $0xe8] sm:$0xf0]  ;;  %855 = vmatpush.bf16.msra.mxu3 %v1767_v25  ;;  %v1841_v31 = vld [vmem:[%s2700_s30 + $0x64] sm:$0xf]  ;;  %v1675_v33 = vor.u32 %v1838_v23, %v1674_v22 }
  0x5b   : > { %842 = vmatpush.bf16.msra.mxu2 %v1703_v26  ;;  %v1759_v30 = vor.u32 %v1857_v28, %v1756_v29  ;;  %v1692_v32 = vld [vmem:[%s2700_s30 + $0x68] sm:$0xf0]  ;;  %v1666_v34 = vld [vmem:[%s2700_s30 + $0x30] sm:$0xf]  ;;  %v1836_v35 = vld [vmem:[%s2700_s30 + $0x34] sm:$0xf0]  ;;  %v1739_v37 = vor.u32 %v1854_v27, %v1738_v24 }
  0x5c   : > { %v1695_v36 = vor.u32 %v1841_v31, %v1692_v32  ;;  %v1855_v38 = vld [vmem:[%s2700_s30 + $0xd4] sm:$0xf]  ;;  %v1748_v39 = vld [vmem:[%s2700_s30 + $0xd8] sm:$0xf0]  ;;  %v1730_v41 = vld [vmem:[%s2700_s30 + $0xb0] sm:$0xf]  ;;  %v1667_v47 = vor.u32 %v1836_v35, %v1666_v34 }
  0x5d   : > { %818 = vmatpush.bf16.msra.mxu0 %v1683_v17  ;;  %v1839_v40 = vld [vmem:[%s2700_s30 + $0x54] sm:$0xf]  ;;  %v1852_v42 = vld [vmem:[%s2700_s30 + $0xb4] sm:$0xf0]  ;;  %v1684_v43 = vld [vmem:[%s2700_s30 + $0x58] sm:$0xf0]  ;;  %v1751_v44 = vor.u32 %v1855_v38, %v1748_v39 }
  0x5e   : > { %831 = vmatpush.bf16.msra.mxu1 %v1747_v21  ;;  %856 = vmatpush.bf16.msra.mxu3 %v1759_v30  ;;  %v1687_v45 = vor.u32 %v1839_v40, %v1684_v43  ;;  %v1853_v46 = vld [vmem:[%s2700_s30 + $0xc4] sm:$0xf]  ;;  %v1740_v48 = vld [vmem:[%s2700_s30 + $0xc8] sm:$0xf0]  ;;  %v1731_v51 = vor.u32 %v1852_v42, %v1730_v41  ;;  %v1658_v52 = vld [vmem:[%s2700_s30 + $0x20] sm:$0xf] }
  0x5f   : > { %843 = vmatpush.bf16.msra.mxu2 %v1695_v36  ;;  %v1837_v49 = vld [vmem:[%s2700_s30 + $0x44] sm:$0xf]  ;;  %v1676_v50 = vld [vmem:[%s2700_s30 + $0x48] sm:$0xf0]  ;;  %v1834_v53 = vld [vmem:[%s2700_s30 + $0x24] sm:$0xf0]  ;;  %v1743_v57 = vor.u32 %v1853_v46, %v1740_v48 }
  0x60   : > { %v610_v54 = vld [vmem:[%s594_s26] sm:$0x3]  ;;  %v1722_v55 = vld [vmem:[%s2700_s30 + $0xa0] sm:$0xf]  ;;  %v1850_v56 = vld [vmem:[%s2700_s30 + $0xa4] sm:$0xf0]  ;;  %v1679_v58 = vor.u32 %v1837_v49, %v1676_v50  ;;  %v1659_v60 = vor.u32 %v1834_v53, %v1658_v52 }
  0x61   : > { %819 = vmatpush.bf16.msra.mxu0 %v1675_v33  ;;  %651 = vst [vmem:[#allocation1] ss:$9 sm:$0xff] %v610_v54  ;;  %v1851_v59 = vld [vmem:[%s2700_s30 + $0xb4] sm:$0xf]  ;;  %v1732_v61 = vld [vmem:[%s2700_s30 + $0xb8] sm:$0xf0]  ;;  %v1723_v0 = vor.u32 %v1850_v56, %v1722_v55 }
  0x62   : > { %832 = vmatpush.bf16.msra.mxu1 %v1739_v37  ;;  %857 = vmatpush.bf16.msra.mxu3 %v1751_v44  ;;  %v1835_v62 = vld [vmem:[%s2700_s30 + $0x34] sm:$0xf]  ;;  %v1668_v63 = vld [vmem:[%s2700_s30 + $0x38] sm:$0xf0]  ;;  %v1650_v1 = vld [vmem:[%s2700_s30 + $0x10] sm:$0xf]  ;;  %v1735_v5 = vor.u32 %v1851_v59, %v1732_v61 }
  0x63   : > { %844 = vmatpush.bf16.msra.mxu2 %v1687_v45  ;;  %v1832_v2 = vld [vmem:[%s2700_s30 + $0x14] sm:$0xf0]  ;;  %v1714_v3 = vld [vmem:[%s2700_s30 + $0x90] sm:$0xf]  ;;  %v1671_v6 = vor.u32 %v1835_v62, %v1668_v63  ;;  %v1849_v7 = vld [vmem:[%s2700_s30 + $0xa4] sm:$0xf] }
  0x64   : > { %v1848_v4 = vld [vmem:[%s2700_s30 + $0x94] sm:$0xf0]  ;;  %v1651_v8 = vor.u32 %v1832_v2, %v1650_v1  ;;  %v1724_v9 = vld [vmem:[%s2700_s30 + $0xa8] sm:$0xf0]  ;;  %v1833_v10 = vld [vmem:[%s2700_s30 + $0x24] sm:$0xf] }
  0x65   : > { %820 = vmatpush.bf16.msra.mxu0 %v1667_v47  ;;  %v1660_v11 = vld [vmem:[%s2700_s30 + $0x28] sm:$0xf0]  ;;  %v1715_v12 = vor.u32 %v1848_v4, %v1714_v3  ;;  %v1642_v13 = vld [vmem:[%s2700_s30] sm:$0xf]  ;;  %v1830_v14 = vld [vmem:[%s2700_s30 + $0x4] sm:$0xf0]  ;;  %v1727_v21 = vor.u32 %v1849_v7, %v1724_v9 }
  0x66   : > { %833 = vmatpush.bf16.msra.mxu1 %v1731_v51  ;;  %858 = vmatpush.bf16.msra.mxu3 %v1743_v57  ;;  %v1706_v15 = vld [vmem:[%s2700_s30 + $0x80] sm:$0xf]  ;;  %v1846_v16 = vld [vmem:[%s2700_s30 + $0x84] sm:$0xf0]  ;;  %v1770_v17 = vld [vmem:[%s2714_s20] sm:$0xf]  ;;  %v1663_v22 = vor.u32 %v1833_v10, %v1660_v11  ;;  %v1643_v23 = vor.u32 %v1830_v14, %v1642_v13 }
  0x67   : > { %845 = vmatpush.bf16.msra.mxu2 %v1679_v58  ;;  %v1862_v18 = vld [vmem:[%s2714_s20 + $0x4] sm:$0xf0]  ;;  %v1861_v19 = vld [vmem:[%s2714_s20 + $0x4] sm:$0xf]  ;;  %v1772_v20 = vld [vmem:[%s2714_s20 + $0x8] sm:$0xf0]  ;;  %v1707_v26 = vor.u32 %v1846_v16, %v1706_v15 }
  0x68   : > { %v1847_v24 = vld [vmem:[%s2700_s30 + $0x94] sm:$0xf]  ;;  %v1716_v25 = vld [vmem:[%s2700_s30 + $0x98] sm:$0xf0]  ;;  %v1771_v27 = vor.u32 %v1862_v18, %v1770_v17  ;;  %v1775_v30 = vor.u32 %v1861_v19, %v1772_v20  ;;  %v1845_v32 = vld [vmem:[%s2700_s30 + $0x84] sm:$0xf] }
  0x69   : > { %821 = vmatpush.bf16.msra.mxu0 %v1659_v60  ;;  %v1831_v28 = vld [vmem:[%s2700_s30 + $0x14] sm:$0xf]  ;;  %v1652_v29 = vld [vmem:[%s2700_s30 + $0x18] sm:$0xf0]  ;;  %v1719_v31 = vor.u32 %v1847_v24, %v1716_v25  ;;  %v1708_v33 = vld [vmem:[%s2700_s30 + $0x88] sm:$0xf0] }
  0x6a   : > { %834 = vmatpush.bf16.msra.mxu1 %v1723_v0  ;;  %859 = vmatpush.bf16.msra.mxu3 %v1735_v5  ;;  %v652_v34 = vld [vmem:[#allocation1] sm:$0xff]  ;;  %v1655_v35 = vor.u32 %v1831_v28, %v1652_v29  ;;  %v1829_v36 = vld [vmem:[%s2700_s30 + $0x4] sm:$0xf]  ;;  %v1644_v37 = vld [vmem:[%s2700_s30 + $0x8] sm:$0xf0]  ;;  %v1711_v43 = vor.u32 %v1845_v32, %v1708_v33  ;;  %s3195_s24 = sld [smem:[#allocation17_spill]] }
  0x6b   : > { %846 = vmatpush.bf16.msra.mxu2 %v1671_v6  ;;  %v653_v38 = vld [vmem:[#allocation1 + $0x9] sm:$0xff]  ;;  %v1863_v39 = vld [vmem:[%s2721_s16 + $0x4] sm:$0xf]  ;;  %v1647_v44 = vor.u32 %v1829_v36, %v1644_v37  ;;  %v611_v47 = vld [vmem:[%s3194_s5] sm:$0x1]  ;;  %vm1023_vm15 = vcmask 1041408  }
  0x6c   : > { %v1784_v40 = vld [vmem:[%s2721_s16 + $0x8] sm:$0xf0]  ;;  %v1782_v41 = vld [vmem:[%s2721_s16] sm:$0xf]  ;;  %v1864_v42 = vld [vmem:[%s2721_s16 + $0x4] sm:$0xf0] }
  0x6d   : > { %822 = vmatpush.bf16.msra.mxu0 %v1651_v8  ;;  %v1787_v45 = vor.u32 %v1863_v39, %v1784_v40  ;;  %v1783_v46 = vor.u32 %v1864_v42, %v1782_v41  ;;  %v876_v52 = vld [vmem:[%s490_s25] sm:$0x3]  ;;  %v644_v7 = vld [vmem:[%s470_s4] sm:$0x3]  ;;  %v968_v17 = vld [vmem:[%s510_s17] sm:$0x3] }
  0x6e   : > { %835 = vmatpush.bf16.msra.mxu1 %v1715_v12  ;;  %860 = vmatpush.bf16.msra.mxu3 %v1727_v21  ;;  %v878_v53 = vperm.slane %v876_v52, 0  ;;  %v879_v55 = vperm.slane %v876_v52, 1  ;;  %v646_v10 = vperm.slane %v644_v7, 0  ;;  %v647_v15 = vperm.slane %v644_v7, 1  ;;  %s1036_s30 = ssub.s32 (%p2620_p11), 71, %s2729_s19  ;;  %s1867_s14 = sshll.u32 (%p2620_p11), %s2420_s13, 2 }
  0x6f   : > { %847 = vmatpush.bf16.msra.mxu2 %v1663_v22  ;;  %v971_v21 = vperm.slane %v968_v17, 1  ;;  %v970_v24 = vperm.slane %v968_v17, 0  ;;  %p1037_p4 = scmp.lt.s32.totalorder (%p2620_p11), %s1036_s30, 2  ;;  %s3197_s4 = sld [smem:[#allocation32_spill]] (%p2620_p11) }
  0x70   : > { %s580_s8 = sand.u32 1, %s3195_s24  }
  0x71   : > { %823 = vmatpush.bf16.msra.mxu0 %v1643_v23  ;;  %s1638_s2 = sshll.u32 %s580_s8, 2 }
  0x72   : > { %836 = vmatpush.bf16.msra.mxu1 %v1707_v26  ;;  %861 = vmatpush.bf16.msra.mxu3 %v1719_v31  ;;  %s2824_s3 = scalar_lea.vmem [#allocation12], %s1638_s2  }
  0x73   : > { %848 = vmatpush.bf16.msra.mxu2 %v1655_v35 }
  0x74   : > { %824 = vmatmul.bf16.vlgmr.msra.gmra.mxu0 %v652_v34 }
  0x75   : > { %903 = vmatpush.bf16.msrb.mxu0 %v1771_v27  ;;  %837 = vmatmul.bf16.vlgmr.msra.gmra.mxu1 %v653_v38  ;;  %s2834_s18 = scalar_lea.vmem (%p2620_p11), %s3197_s4, %s1867_s14 }
  0x76   : > { %916 = vmatpush.bf16.msrb.mxu1 %v1775_v30  ;;  %862 = vmatpush.bf16.msra.mxu3 %v1711_v43  ;;  %s1419_s20 = scalar_lea.vmem (%p2620_p11), %s2834_s18, 120  }
  0x77   : > { %849 = vmatpush.bf16.msra.mxu2 %v1647_v44 }
  0x79   : > { %863 = vmatmul.bf16.vlgmr.msra.gmra.mxu3 %v653_v38 }
  0x7a   : > { %1004 = vmatpush.bf16.msrb.mxu3 %v1787_v45  ;;  %850 = vmatmul.bf16.vlgmr.msra.gmra.mxu2 %v652_v34 }
  0x7b   : > { %991 = vmatpush.bf16.msrb.mxu2 %v1783_v46 }
  0x84   : > { %1776 = vmatmul.msk.bf16.vlgmr.msrb.gmra.mxu0 %vm892_vm0, %v611_v47 }
  0x85   : > { %1777 = vmatmul.msk.bf16.vlgmr.msrb.gmra.mxu1 %vm892_vm0, %v611_v47 }
  0x89   : > { %1789 = vmatmul.msk.bf16.vlgmr.msrb.gmra.mxu3 %vm892_vm0, %v611_v47 }
  0x8a   : > { %1788 = vmatmul.msk.bf16.vlgmr.msrb.gmra.mxu2 %vm892_vm0, %v611_v47 }
  0xf1   : > { %v825_v48 = vpop.f32.mrf.mxu0 }
  0xf2   : > { %v838_v49 = vpop.f32.mrf.mxu1  ;;  %v826_v16 = vadd.f32 %v825_v48, %v646_v10 }
  0xf4   : > { %v839_v20 = vadd.f32 %v838_v49, %v826_v16 }
  0xf6   : > { %vm868_vm3 = vcmp.ge.f32.partialorder %v839_v20, 0.0  ;;  %v870_v31 = vmul.f32 0.2, %v839_v20 }
  0xf9   : > { %v827_v50 = vpop.f32.mrf.mxu0 }
  0xfa   : > { %v840_v51 = vpop.f32.mrf.mxu1  ;;  %v872_v50 = vsel %vm868_vm3, %v839_v20, %v870_v31 }
  0xfc   : > { %v864_v54 = vpop.f32.mrf.mxu3 }
  0xfd   : > { %v851_v56 = vpop.f32.mrf.mxu2 }
  0xfe   : > { %v852_v18 = vadd.f32 %v851_v56, %v647_v15 }
 0x100   : > { %v865_v28 = vadd.f32 %v864_v54, %v852_v18 }
 0x101   : > { %v905_v57 = vpop.f32.mrf.mxu0 }
 0x102   : > { %v906_v58 = vadd.f32 %v905_v57, %v878_v53  ;;  %v918_v59 = vpop.f32.mrf.mxu1  ;;  %vm869_vm5 = vcmp.ge.f32.partialorder %v865_v28, 0.0  ;;  %v871_v40 = vmul.f32 0.2, %v865_v28 }
 0x103   : > { %v919_v60 = vadd.f32 %v918_v59, %v879_v55 }
 0x104   : > { %vm922_vm1 = vcmp.ge.f32.partialorder %v906_v58, 0.0  ;;  %v924_v61 = vmul.f32 0.2, %v906_v58  ;;  %v866_v0 = vpop.f32.mrf.mxu3  ;;  %v873_v51 = vsel %vm869_vm5, %v865_v28, %v871_v40 }
 0x105   : > { %vm923_vm2 = vcmp.ge.f32.partialorder %v919_v60, 0.0  ;;  %v925_v62 = vmul.f32 0.2, %v919_v60  ;;  %v853_v3 = vpop.f32.mrf.mxu2 }
 0x106   : > { %v926_v63 = vsel %vm922_vm1, %v906_v58, %v924_v61 }
 0x107   : > { %v1778_v1 = vmul.f32 -1.442695, %v926_v63  ;;  %v927_v2 = vsel %vm923_vm2, %v919_v60, %v925_v62 }
 0x108   : > { %v1779_v4 = vmul.f32 -1.442695, %v927_v2 }
 0x109   : > { %2098 = vpow2.f32 %v1778_v1  ;;  %v907_v5 = vpop.f32.mrf.mxu0 }
 0x10a   : > { %2100 = vpow2.f32 %v1779_v4  ;;  %v920_v6 = vpop.f32.mrf.mxu1 }
 0x10c   : > { %v1006_v8 = vpop.f32.mrf.mxu3 }
 0x10d   : > { %v993_v11 = vpop.f32.mrf.mxu2  ;;  %v1007_v29 = vadd.f32 %v1006_v8, %v971_v21 }
 0x10e   : > { %v994_v34 = vadd.f32 %v993_v11, %v970_v24 }
 0x10f   : > { %v2099_v9 = vpop.eup %2098  ;;  %vm1011_vm7 = vcmp.ge.f32.partialorder %v1007_v29, 0.0  ;;  %v1013_v43 = vmul.f32 0.2, %v1007_v29 }
 0x110   : > { %v2101_v12 = vpop.eup %2100  ;;  %v934_v13 = vadd.f32 1.0, %v2099_v9  ;;  %v1012_v47 = vmul.f32 0.2, %v994_v34  ;;  %vm1010_vm14 = vcmp.ge.f32.partialorder %v994_v34, 0.0 }
 0x111   : > { %v935_v14 = vadd.f32 1.0, %v2101_v12  ;;  %v1015_v55 = vsel %vm1011_vm7, %v1007_v29, %v1013_v43 }
 0x112   : > { %2102 = vrcp.f32 %v934_v13  ;;  %v947_v33 = vand.u32 2147483648, %v934_v13  ;;  %v945_v37 = vand.u32 2147483647, %v934_v13  ;;  %vm941_vm8 = vweird.f32 %v934_v13 }
 0x113   : > { %2104 = vrcp.f32 %v935_v14  ;;  %v962_v35 = vand.u32 2147483648, %v935_v14  ;;  %v960_v39 = vand.u32 2147483647, %v935_v14  ;;  %vm956_vm9 = vweird.f32 %v935_v14 }
 0x114   : > { %v1008_v19 = vpop.f32.mrf.mxu3  ;;  %v948_v44 = vor.u32 1.1754944e-38, %v947_v33  ;;  %vm946_vm12 = vcmp.eq.f32.partialorder %v945_v37, 8.507059e+37  ;;  %v1014_v56 = vsel %vm1010_vm14, %v994_v34, %v1012_v47 }
 0x115   : > { %v995_v22 = vpop.f32.mrf.mxu2  ;;  %v963_v45 = vor.u32 1.1754944e-38, %v962_v35  ;;  %vm961_vm13 = vcmp.eq.f32.partialorder %v960_v39, 8.507059e+37 }
 0x118   : > { %v2103_v23 = vpop.eup %2102 }
 0x119   : > { %v2105_v25 = vpop.eup %2104  ;;  %v937_v26 = vmul.f32 %v2103_v23, %v934_v13  ;;  %vm942_vm4 = vweird.f32 %v2103_v23 }
 0x11a   : > { %v952_v27 = vmul.f32 %v2105_v25, %v935_v14  ;;  %vm957_vm6 = vweird.f32 %v2105_v25  ;;  %vm943_vm10 = vmor %vm941_vm8, %vm942_vm4 }
 0x11b   : > { %v938_v30 = vsub.f32 1.0, %v937_v26  ;;  %vm958_vm11 = vmor %vm956_vm9, %vm957_vm6 }
 0x11c   : > { %v953_v32 = vsub.f32 1.0, %v952_v27 }
 0x11d   : > { %v939_v36 = vmul.f32 %v2103_v23, %v938_v30 }
 0x11e   : > { %v954_v38 = vmul.f32 %v2105_v25, %v953_v32 }
 0x11f   : > { %v940_v41 = vadd.f32 %v2103_v23, %v939_v36 }
 0x120   : > { %v955_v42 = vadd.f32 %v2105_v25, %v954_v38 }
 0x121   : > { %v944_v46 = vsel %vm943_vm10, %v2103_v23, %v940_v41 }
 0x122   : > { %v959_v48 = vsel %vm958_vm11, %v2105_v25, %v955_v42  ;;  %v949_v49 = vsel %vm946_vm12, %v948_v44, %v944_v46 }
 0x123   : > { %v964_v52 = vsel %vm961_vm13, %v963_v45, %v959_v48  ;;  %v1016_v54 = vmul.f32 %v949_v49, %v872_v50 }
 0x124   : > { %v1017_v53 = vmul.f32 %v964_v52, %v873_v51 }
 0x125   : > { %v1018_v59 = vadd.f32 %v1016_v54, %v1014_v56 }
 0x126   : > { %v1019_v57 = vadd.f32 %v1017_v53, %v1015_v55 }
 0x127   : > { %1033 = sbr.rel (!%p2620_p11) target bundleno = 448 (0x1c0), region = 80 }
 0x128   : > { %v1022_v58 = vrot.slane %v1019_v57, 6 }
 0x12a   : > { %v1024_v60 = vsel %vm1023_vm15, %v1018_v59, %v1022_v58 }
 0x12b   : > { %1026 = vst [vmem:[%s2824_s3] sm:$0xf] %v1024_v60 }
 0x12c   : > { %s3220_s30 = smov (!%p1037_p4, %s1036_s30), 2 }
 0x12d   : > { %s2837_s21 = sshll.u32 %s3220_s30, 1 }
 0x12e   : > { %p1797_p5 = scmp.eq.s32.totalorder %s2837_s21, 0 }
 0x12f   : > { %p1049_p6 = scmp.lt.u32.totalorder (!%p1797_p5), %s2837_s21, 8 }
 0x130   : > { %1048 = sbr.rel (%p1797_p5) target bundleno = 448 (0x1c0), region = 84 }
 0x135   : > { %1052 = sbr.rel (%p1049_p6) target bundleno = 439 (0x1b7), region = 88  ;;  %s2842_s25 = sand.u32 (!%p1049_p6), 7, %s2837_s21  }
 0x136   : > { %p1069_p7 = scmp.eq.s32.totalorder (!%p1049_p6), %s2842_s25, 0  ;;  %p1798_p8 = scmp.ne.s32.totalorder (!%p1049_p6), %s2842_s25, 0 }
 0x13a   : > { %1072 = sbr.rel (%p1798_p8) target bundleno = 374 (0x176), region = 103  ;;  %s1073_s13 = sshrl.u32 (!%p1798_p8), %s2837_s21, 3 }
 0x13b   : > { %s2849_s16 = sshrl.u32 (!%p1798_p8), %s1073_s13, 5 }
 0x13c   : > { %p1799_p9 = scmp.le.s32.totalorder (!%p1798_p8), %s2849_s16, 0 }
 0x13f   : > { %1468 = sbr.rel (%p1799_p9) target bundleno = 357 (0x165), region = 237  ;;  %s3198_s11 = smov (!%p1799_p9), %s1419_s20 }
 0x140   : > { %s3199_s17 = smov (!%p1799_p9), %s2824_s3  ;;  %s2859_s10 = smov (!%p1799_p9), 0  }
 0x141   : > { %s2861_s19 = smov (!%p1799_p9), 0  }
 0x144 LB: >> { %v1084_v61 = vld [vmem:[%s2436_s17] sm:$0xff]  ;;  %v1086_v62 = vld [vmem:[%s2436_s17 + $0x8] sm:$0xff]  ;;  %v1088_v63 = vld [vmem:[%s2436_s17 + $0x10] sm:$0xff]  ;;  %s1148_s22 = sadd.s32 1, %s2440_s10  ;;  %s1078_s19 = sadd.s32 1, %s2444_s19   ;;  %s2444_s19 = sphi %s2861_s19, %s1078_s19   ;;  %s2440_s10 = sphi %s2859_s10, %s3202_s10   ;;  %s2436_s17 = sphi %s3199_s17, %s3201_s17   ;;  %s2432_s11 = sphi %s3198_s11, %s3200_s11  }
 0x145   : >> { %1085 = vst [vmem:[%s2432_s11] sm:$0xff] %v1084_v61  ;;  %v1090_v0 = vld [vmem:[%s2436_s17 + $0x18] sm:$0xff]  ;;  %p1149_p10 = scmp.ge.s32.totalorder %s1148_s22, %s2849_s16  ;;  %v1092_v1 = vld [vmem:[%s2436_s17 + $0x20] sm:$0xff]  ;;  %v1094_v2 = vld [vmem:[%s2436_s17 + $0x28] sm:$0xff]  ;;  %p1077_p11 = scmp.ge.s32.totalorder %s1078_s19, %s2849_s16 }
 0x146   : >> { %1087 = vst [vmem:[%s2432_s11 + $0x8] sm:$0xff] %v1086_v62  ;;  %v1096_v3 = vld [vmem:[%s2436_s17 + $0x30] sm:$0xff]  ;;  %v1098_v4 = vld [vmem:[%s2436_s17 + $0x38] sm:$0xff]  ;;  %v1100_v5 = vld [vmem:[%s2436_s17 + $0x40] sm:$0xff] }
 0x147   : >> { %1089 = vst [vmem:[%s2432_s11 + $0x10] sm:$0xff] %v1088_v63  ;;  %s3222_s22 = smov (%p1149_p10, %s1148_s22), 0  ;;  %v1102_v6 = vld [vmem:[%s2436_s17 + $0x48] sm:$0xff]  ;;  %v1104_v7 = vld [vmem:[%s2436_s17 + $0x50] sm:$0xff]  ;;  %v1106_v8 = vld [vmem:[%s2436_s17 + $0x58] sm:$0xff] }
 0x148   : >> { %1091 = vst [vmem:[%s2432_s11 + $0x18] sm:$0xff] %v1090_v0  ;;  %s1800_s15 = sshll.u32 %s3222_s22, 8  ;;  %v1108_v9 = vld [vmem:[%s2436_s17 + $0x60] sm:$0xff]  ;;  %v1110_v10 = vld [vmem:[%s2436_s17 + $0x68] sm:$0xff]  ;;  %v1112_v11 = vld [vmem:[%s2436_s17 + $0x70] sm:$0xff]  ;;  %s3202_s10 = smov %s3222_s22 }
 0x149   : >> { %1093 = vst [vmem:[%s2432_s11 + $0x20] sm:$0xff] %v1092_v1  ;;  %s2893_s28 = scalar_lea.vmem %s2824_s3, %s1800_s15 [#allocation12]   ;;  %s2896_s23 = scalar_lea.vmem %s2834_s18, %s1800_s15  ;;  %v1114_v12 = vld [vmem:[%s2436_s17 + $0x78] sm:$0xff]  ;;  %v1116_v13 = vld [vmem:[%s2436_s17 + $0x80] sm:$0xff]  ;;  %v1118_v14 = vld [vmem:[%s2436_s17 + $0x88] sm:$0xff] }
 0x14a   : >> { %1095 = vst [vmem:[%s2432_s11 + $0x28] sm:$0xff] %v1094_v2  ;;  %s1424_s26 = scalar_lea.vmem %s2896_s23, 120   ;;  %v1120_v15 = vld [vmem:[%s2436_s17 + $0x90] sm:$0xff]  ;;  %v1122_v16 = vld [vmem:[%s2436_s17 + $0x98] sm:$0xff]  ;;  %v1124_v17 = vld [vmem:[%s2436_s17 + $0xa0] sm:$0xff] }
 0x14b   : >> { %1097 = vst [vmem:[%s2432_s11 + $0x30] sm:$0xff] %v1096_v3  ;;  %v1126_v18 = vld [vmem:[%s2436_s17 + $0xa8] sm:$0xff]  ;;  %v1128_v19 = vld [vmem:[%s2436_s17 + $0xb0] sm:$0xff]  ;;  %v1130_v20 = vld [vmem:[%s2436_s17 + $0xb8] sm:$0xff] }
 0x14c   : >> { %1099 = vst [vmem:[%s2432_s11 + $0x38] sm:$0xff] %v1098_v4  ;;  %v1132_v21 = vld [vmem:[%s2436_s17 + $0xc0] sm:$0xff]  ;;  %v1134_v22 = vld [vmem:[%s2436_s17 + $0xc8] sm:$0xff]  ;;  %v1136_v23 = vld [vmem:[%s2436_s17 + $0xd0] sm:$0xff] }
 0x14d   : >> { %1101 = vst [vmem:[%s2432_s11 + $0x40] sm:$0xff] %v1100_v5  ;;  %v1138_v24 = vld [vmem:[%s2436_s17 + $0xd8] sm:$0xff]  ;;  %v1140_v25 = vld [vmem:[%s2436_s17 + $0xe0] sm:$0xff]  ;;  %v1142_v26 = vld [vmem:[%s2436_s17 + $0xe8] sm:$0xff] }
 0x14e   : >> { %1103 = vst [vmem:[%s2432_s11 + $0x48] sm:$0xff] %v1102_v6  ;;  %v1144_v27 = vld [vmem:[%s2436_s17 + $0xf0] sm:$0xff]  ;;  %v1146_v28 = vld [vmem:[%s2436_s17 + $0xf8] sm:$0xff]  ;;  %s3201_s17 = smov %s2893_s28 }
 0x14f   : >> { %1105 = vst [vmem:[%s2432_s11 + $0x50] sm:$0xff] %v1104_v7 }
 0x150   : >> { %1107 = vst [vmem:[%s2432_s11 + $0x58] sm:$0xff] %v1106_v8 }
 0x151   : >> { %1109 = vst [vmem:[%s2432_s11 + $0x60] sm:$0xff] %v1108_v9 }
 0x152   : >> { %1111 = vst [vmem:[%s2432_s11 + $0x68] sm:$0xff] %v1110_v10 }
 0x153   : >> { %1113 = vst [vmem:[%s2432_s11 + $0x70] sm:$0xff] %v1112_v11 }
 0x154   : >> { %1115 = vst [vmem:[%s2432_s11 + $0x78] sm:$0xff] %v1114_v12 }
 0x155   : >> { %1117 = vst [vmem:[%s2432_s11 + $0x80] sm:$0xff] %v1116_v13 }
 0x156   : >> { %1119 = vst [vmem:[%s2432_s11 + $0x88] sm:$0xff] %v1118_v14 }
 0x157   : >> { %1121 = vst [vmem:[%s2432_s11 + $0x90] sm:$0xff] %v1120_v15 }
 0x158   : >> { %1123 = vst [vmem:[%s2432_s11 + $0x98] sm:$0xff] %v1122_v16 }
 0x159   : >> { %1125 = vst [vmem:[%s2432_s11 + $0xa0] sm:$0xff] %v1124_v17 }
 0x15a   : >> { %1127 = vst [vmem:[%s2432_s11 + $0xa8] sm:$0xff] %v1126_v18 }
 0x15b   : >> { %1129 = vst [vmem:[%s2432_s11 + $0xb0] sm:$0xff] %v1128_v19 }
 0x15c   : >> { %1131 = vst [vmem:[%s2432_s11 + $0xb8] sm:$0xff] %v1130_v20 }
 0x15d   : >> { %1133 = vst [vmem:[%s2432_s11 + $0xc0] sm:$0xff] %v1132_v21 }
 0x15e   : >> { %1135 = vst [vmem:[%s2432_s11 + $0xc8] sm:$0xff] %v1134_v22 }
 0x15f   : >> { %1137 = vst [vmem:[%s2432_s11 + $0xd0] sm:$0xff] %v1136_v23 }
 0x160   : >> { %1139 = vst [vmem:[%s2432_s11 + $0xd8] sm:$0xff] %v1138_v24  ;;  %1080 = sbr.rel (!%p1077_p11) target bundleno = 324 (0x144), region = 243 }
 0x161   : >> { %1141 = vst [vmem:[%s2432_s11 + $0xe0] sm:$0xff] %v1140_v25 }
 0x162   : >> { %1143 = vst [vmem:[%s2432_s11 + $0xe8] sm:$0xff] %v1142_v26 }
 0x163   : >> { %1145 = vst [vmem:[%s2432_s11 + $0xf0] sm:$0xff] %v1144_v27 }
 0x164   : >> { %1147 = vst [vmem:[%s2432_s11 + $0xf8] sm:$0xff] %v1146_v28  ;;  %s3200_s11 = smov %s1424_s26 }
 0x165 PF: > { %s2964_s1 = sand.u32 31, %s1073_s13   ;;  %s1868_s27 = sshll.u32 %s2849_s16, 8 }
 0x166   : > { %s2968_s5 = scalar_lea.vmem %s2824_s3, %s1868_s27 [#allocation12]   ;;  %s1428_s24 = scalar_lea.vmem %s2834_s18, %s1868_s27 }
 0x167   : > { %s1429_s8 = scalar_lea.vmem %s1428_s24, 120   ;;  %p1805_p12 = scmp.le.s32.totalorder %s2964_s1, 0 }
 0x168   : > { %s2446_s2 = smov (!%p1805_p12), %s1429_s8   ;;  %s2450_s9 = smov (!%p1805_p12), %s2968_s5  }
 0x169   : > { %1482 = sbr.rel (%p1805_p12) target bundleno = 374 (0x176), region = 248  ;;  %s2454_s30 = smov (!%p1805_p12), 0  }
 0x16a   : > { %s2458_s14 = smov (!%p1805_p12), 0  }
 0x16e LB: >> { %v1171_v29 = vld [vmem:[%s2452_s9] sm:$0xff]  ;;  %s1173_s29 = sadd.s32 1, %s2456_s30  ;;  %s1165_s14 = sadd.s32 1, %s2460_s14   ;;  %s2460_s14 = sphi %s2458_s14, %s1165_s14   ;;  %s2456_s30 = sphi %s2454_s30, %s2455_s30   ;;  %s2452_s9 = sphi %s2450_s9, %s1178_s9   ;;  %s2448_s2 = sphi %s2446_s2, %s1434_s2  }
 0x16f   : >> { %1172 = vst [vmem:[%s2448_s2] sm:$0xff] %v1171_v29  ;;  %p1174_p13 = scmp.ge.s32.totalorder %s1173_s29, %s2964_s1  ;;  %p1164_p0 = scmp.ge.s32.totalorder %s1165_s14, %s2964_s1 }
 0x171   : >> { %s3224_s29 = smov (%p1174_p13, %s1173_s29), 0  ;;  %1167 = sbr.rel (!%p1164_p0) target bundleno = 366 (0x16e), region = 254 }
 0x172   : >> { %s1806_s0 = sshll.u32 %s3224_s29, 3  ;;  %s2455_s30 = smov %s3224_s29  }
 0x173   : >> { %s1178_s9 = scalar_lea.vmem %s2968_s5, %s1806_s0 [#allocation12]   ;;  %s1433_s4 = scalar_lea.vmem %s1428_s24, %s1806_s0 }
 0x174   : >> { %s1434_s2 = scalar_lea.vmem %s1433_s4, 120  }
 0x176 PF: > { %1182 = sbr.rel (%p1069_p7) target bundleno = 439 (0x1b7), region = 121  ;;  %s2980_s13 = ssub.s32 (!%p1069_p7), %s2837_s21, %s2842_s25 }
 0x177   : > { %s1188_s16 = sshrl.u32 (!%p1069_p7), %s2837_s21, 3  ;;  %s1185_s11 = scalar_lea.vmem (!%p1069_p7), %s2824_s3, %s2980_s13 [#allocation12] }
 0x178   : > { %s1436_s17 = scalar_lea.vmem (!%p1069_p7), %s2834_s18, %s2980_s13  ;;  %s2989_s10 = sshrl.u32 (!%p1069_p7), %s1188_s16, 5 }
 0x179   : > { %p1808_p1 = scmp.le.s32.totalorder (!%p1069_p7), %s2989_s10, 0 }
 0x17b   : > { %1496 = sbr.rel (%p1808_p1) target bundleno = 417 (0x1a1), region = 259  ;;  %s3203_s19 = smov (!%p1808_p1), %s2824_s3 }
 0x17c   : > { %s2999_s22 = smov (!%p1808_p1), 0   ;;  %s3001_s15 = smov (!%p1808_p1), 0  }
 0x180 LB: >> { %v1199_v30 = vld [vmem:[%s2468_s19] sm:$0xff]  ;;  %v1201_v31 = vld [vmem:[%s2468_s19 + $0x8] sm:$0xff]  ;;  %v1203_v32 = vld [vmem:[%s2468_s19 + $0x10] sm:$0xff]  ;;  %s1263_s28 = sadd.s32 1, %s2472_s22  ;;  %s1193_s15 = sadd.s32 1, %s2476_s15   ;;  %s2476_s15 = sphi %s3001_s15, %s1193_s15   ;;  %s2472_s22 = sphi %s2999_s22, %s3206_s22   ;;  %s2468_s19 = sphi %s3203_s19, %s3205_s19   ;;  %s2464_s20 = sphi %s1419_s20, %s3204_s20  }
 0x181   : >> { %1200 = vst [vmem:[%s2464_s20] sm:$0xff] %v1199_v30  ;;  %v1205_v33 = vld [vmem:[%s2468_s19 + $0x18] sm:$0xff]  ;;  %p1264_p2 = scmp.ge.s32.totalorder %s1263_s28, %s2989_s10  ;;  %v1207_v34 = vld [vmem:[%s2468_s19 + $0x20] sm:$0xff]  ;;  %v1209_v35 = vld [vmem:[%s2468_s19 + $0x28] sm:$0xff]  ;;  %p1192_p3 = scmp.ge.s32.totalorder %s1193_s15, %s2989_s10 }
 0x182   : >> { %1202 = vst [vmem:[%s2464_s20 + $0x8] sm:$0xff] %v1201_v31  ;;  %v1211_v36 = vld [vmem:[%s2468_s19 + $0x30] sm:$0xff]  ;;  %v1213_v37 = vld [vmem:[%s2468_s19 + $0x38] sm:$0xff]  ;;  %v1215_v38 = vld [vmem:[%s2468_s19 + $0x40] sm:$0xff] }
 0x183   : >> { %1204 = vst [vmem:[%s2464_s20 + $0x10] sm:$0xff] %v1203_v32  ;;  %s3226_s28 = smov (%p1264_p2, %s1263_s28), 0  ;;  %v1217_v39 = vld [vmem:[%s2468_s19 + $0x48] sm:$0xff]  ;;  %v1219_v40 = vld [vmem:[%s2468_s19 + $0x50] sm:$0xff]  ;;  %v1221_v41 = vld [vmem:[%s2468_s19 + $0x58] sm:$0xff] }
 0x184   : >> { %1206 = vst [vmem:[%s2464_s20 + $0x18] sm:$0xff] %v1205_v33  ;;  %s1809_s23 = sshll.u32 %s3226_s28, 8  ;;  %v1223_v42 = vld [vmem:[%s2468_s19 + $0x60] sm:$0xff]  ;;  %v1225_v43 = vld [vmem:[%s2468_s19 + $0x68] sm:$0xff]  ;;  %v1227_v44 = vld [vmem:[%s2468_s19 + $0x70] sm:$0xff]  ;;  %s3206_s22 = smov %s3226_s28 }
 0x185   : >> { %1208 = vst [vmem:[%s2464_s20 + $0x20] sm:$0xff] %v1207_v34  ;;  %s3033_s26 = scalar_lea.vmem %s2824_s3, %s1809_s23 [#allocation12]   ;;  %s3036_s1 = scalar_lea.vmem %s2834_s18, %s1809_s23  ;;  %v1229_v45 = vld [vmem:[%s2468_s19 + $0x78] sm:$0xff]  ;;  %v1231_v46 = vld [vmem:[%s2468_s19 + $0x80] sm:$0xff]  ;;  %v1233_v47 = vld [vmem:[%s2468_s19 + $0x88] sm:$0xff] }
 0x186   : >> { %1210 = vst [vmem:[%s2464_s20 + $0x28] sm:$0xff] %v1209_v35  ;;  %s1442_s27 = scalar_lea.vmem %s3036_s1, 120   ;;  %v1235_v48 = vld [vmem:[%s2468_s19 + $0x90] sm:$0xff]  ;;  %v1237_v49 = vld [vmem:[%s2468_s19 + $0x98] sm:$0xff]  ;;  %v1239_v50 = vld [vmem:[%s2468_s19 + $0xa0] sm:$0xff] }
 0x187   : >> { %1212 = vst [vmem:[%s2464_s20 + $0x30] sm:$0xff] %v1211_v36  ;;  %v1241_v51 = vld [vmem:[%s2468_s19 + $0xa8] sm:$0xff]  ;;  %v1243_v52 = vld [vmem:[%s2468_s19 + $0xb0] sm:$0xff]  ;;  %v1245_v53 = vld [vmem:[%s2468_s19 + $0xb8] sm:$0xff] }
 0x188   : >> { %1214 = vst [vmem:[%s2464_s20 + $0x38] sm:$0xff] %v1213_v37  ;;  %v1247_v54 = vld [vmem:[%s2468_s19 + $0xc0] sm:$0xff]  ;;  %v1249_v55 = vld [vmem:[%s2468_s19 + $0xc8] sm:$0xff]  ;;  %v1251_v56 = vld [vmem:[%s2468_s19 + $0xd0] sm:$0xff] }
 0x189   : >> { %1216 = vst [vmem:[%s2464_s20 + $0x40] sm:$0xff] %v1215_v38  ;;  %v1253_v57 = vld [vmem:[%s2468_s19 + $0xd8] sm:$0xff]  ;;  %v1255_v58 = vld [vmem:[%s2468_s19 + $0xe0] sm:$0xff]  ;;  %v1257_v59 = vld [vmem:[%s2468_s19 + $0xe8] sm:$0xff] }
 0x18a   : >> { %1218 = vst [vmem:[%s2464_s20 + $0x48] sm:$0xff] %v1217_v39  ;;  %v1259_v60 = vld [vmem:[%s2468_s19 + $0xf0] sm:$0xff]  ;;  %v1261_v61 = vld [vmem:[%s2468_s19 + $0xf8] sm:$0xff]  ;;  %s3205_s19 = smov %s3033_s26 }
 0x18b   : >> { %1220 = vst [vmem:[%s2464_s20 + $0x50] sm:$0xff] %v1219_v40 }
 0x18c   : >> { %1222 = vst [vmem:[%s2464_s20 + $0x58] sm:$0xff] %v1221_v41 }
 0x18d   : >> { %1224 = vst [vmem:[%s2464_s20 + $0x60] sm:$0xff] %v1223_v42 }
 0x18e   : >> { %1226 = vst [vmem:[%s2464_s20 + $0x68] sm:$0xff] %v1225_v43 }
 0x18f   : >> { %1228 = vst [vmem:[%s2464_s20 + $0x70] sm:$0xff] %v1227_v44 }
 0x190   : >> { %1230 = vst [vmem:[%s2464_s20 + $0x78] sm:$0xff] %v1229_v45 }
 0x191   : >> { %1232 = vst [vmem:[%s2464_s20 + $0x80] sm:$0xff] %v1231_v46 }
 0x192   : >> { %1234 = vst [vmem:[%s2464_s20 + $0x88] sm:$0xff] %v1233_v47 }
 0x193   : >> { %1236 = vst [vmem:[%s2464_s20 + $0x90] sm:$0xff] %v1235_v48 }
 0x194   : >> { %1238 = vst [vmem:[%s2464_s20 + $0x98] sm:$0xff] %v1237_v49 }
 0x195   : >> { %1240 = vst [vmem:[%s2464_s20 + $0xa0] sm:$0xff] %v1239_v50 }
 0x196   : >> { %1242 = vst [vmem:[%s2464_s20 + $0xa8] sm:$0xff] %v1241_v51 }
 0x197   : >> { %1244 = vst [vmem:[%s2464_s20 + $0xb0] sm:$0xff] %v1243_v52 }
 0x198   : >> { %1246 = vst [vmem:[%s2464_s20 + $0xb8] sm:$0xff] %v1245_v53 }
 0x199   : >> { %1248 = vst [vmem:[%s2464_s20 + $0xc0] sm:$0xff] %v1247_v54 }
 0x19a   : >> { %1250 = vst [vmem:[%s2464_s20 + $0xc8] sm:$0xff] %v1249_v55 }
 0x19b   : >> { %1252 = vst [vmem:[%s2464_s20 + $0xd0] sm:$0xff] %v1251_v56 }
 0x19c   : >> { %1254 = vst [vmem:[%s2464_s20 + $0xd8] sm:$0xff] %v1253_v57  ;;  %1195 = sbr.rel (!%p1192_p3) target bundleno = 384 (0x180), region = 265 }
 0x19d   : >> { %1256 = vst [vmem:[%s2464_s20 + $0xe0] sm:$0xff] %v1255_v58 }
 0x19e   : >> { %1258 = vst [vmem:[%s2464_s20 + $0xe8] sm:$0xff] %v1257_v59 }
 0x19f   : >> { %1260 = vst [vmem:[%s2464_s20 + $0xf0] sm:$0xff] %v1259_v60 }
 0x1a0   : >> { %1262 = vst [vmem:[%s2464_s20 + $0xf8] sm:$0xff] %v1261_v61  ;;  %s3204_s20 = smov %s1442_s27 }
 0x1a1 PF: > { %s3104_s5 = sand.u32 31, %s1188_s16   ;;  %s1869_s24 = sshll.u32 %s2989_s10, 8 }
 0x1a2   : > { %s3108_s8 = scalar_lea.vmem %s2824_s3, %s1869_s24 [#allocation12]   ;;  %s1446_s2 = scalar_lea.vmem %s2834_s18, %s1869_s24 }
 0x1a3   : > { %s1447_s9 = scalar_lea.vmem %s1446_s2, 120   ;;  %p1814_p4 = scmp.le.s32.totalorder %s3104_s5, 0 }
 0x1a4   : > { %s2478_s30 = smov (!%p1814_p4), %s1447_s9   ;;  %s2482_s14 = smov (!%p1814_p4), %s3108_s8  }
 0x1a5   : > { %1510 = sbr.rel (%p1814_p4) target bundleno = 434 (0x1b2), region = 270  ;;  %s2486_s29 = smov (!%p1814_p4), 0  }
 0x1a6   : > { %s2490_s20 = smov (!%p1814_p4), 0  }
 0x1aa LB: >> { %v1286_v62 = vld [vmem:[%s2484_s14] sm:$0xff]  ;;  %s1288_s0 = sadd.s32 1, %s2488_s29  ;;  %s1280_s20 = sadd.s32 1, %s2492_s20   ;;  %s2492_s20 = sphi %s2490_s20, %s1280_s20   ;;  %s2488_s29 = sphi %s2486_s29, %s2487_s29   ;;  %s2484_s14 = sphi %s2482_s14, %s1293_s14   ;;  %s2480_s30 = sphi %s2478_s30, %s1452_s30  }
 0x1ab   : >> { %1287 = vst [vmem:[%s2480_s30] sm:$0xff] %v1286_v62  ;;  %p1289_p5 = scmp.ge.s32.totalorder %s1288_s0, %s3104_s5  ;;  %p1279_p6 = scmp.ge.s32.totalorder %s1280_s20, %s3104_s5 }
 0x1ad   : >> { %s3228_s0 = smov (%p1289_p5, %s1288_s0), 0  ;;  %1282 = sbr.rel (!%p1279_p6) target bundleno = 426 (0x1aa), region = 276 }
 0x1ae   : >> { %s1815_s4 = sshll.u32 %s3228_s0, 3  ;;  %s2487_s29 = smov %s3228_s0  }
 0x1af   : >> { %s1293_s14 = scalar_lea.vmem %s3108_s8, %s1815_s4 [#allocation12]   ;;  %s1451_s16 = scalar_lea.vmem %s1446_s2, %s1815_s4 }
 0x1b0   : >> { %s1452_s30 = scalar_lea.vmem %s1451_s16, 120  }
 0x1b2 PF: > { %s2496_s10 = smov 1  }
 0x1b3   : > { %s1295_s19 = sshll.u32 %s2496_s10, %s2842_s25 }
 0x1b4   : > { %s1817_s22 = sadd.s32 4294967295, %s1295_s19 }
 0x1b5   : > { %v1305_v63 = vld [vmem:[%s1185_s11] sm:%s1817_s22] }
 0x1b6   : > { %1818 = vst [vmem:[%s1436_s17 + $0x78] sm:%s1817_s22] %v1305_v63 }
 0x1b7 PF: > { %p1819_p7 = scmp.ge.u32.totalorder %s2837_s21, 8 }
 0x1b8   : > { %s2497_s15 = smov (!%p1819_p7), 1  }
 0x1b9   : > { %1055 = sbr.rel (%p1819_p7) target bundleno = 448 (0x1c0), region = 92  ;;  %s1056_s28 = sshll.u32 (!%p1819_p7), %s2497_s15, %s2837_s21 }
 0x1ba   : > { %s1820_s23 = sadd.s32 (!%p1819_p7), 4294967295, %s1056_s28 }
 0x1be   : > { %v1066_v0 = vld [vmem:[%s2824_s3] sm:%s1820_s23] }
 0x1bf   : > { %1821 = vst [vmem:[%s2834_s18 + $0x78] sm:%s1820_s23] %v1066_v0 }
 0x1c0 PF: > { %s3207_s25 = sld [smem:[#allocation21_spill]]  ;;  %s3214_s11 = smov %s2412_s12 }
 0x1c1   : > { %s3208_s30 = sld [smem:[#allocation18_spill]] }
 0x1c2   : > { %s3209_s10 = sld [smem:[#allocation24_spill]] }
 0x1c3   : > { %s3210_s13 = sld [smem:[#allocation19_spill]] }
 0x1c4   : > { %s3211_s8 = sld [smem:[#allocation23_spill]] }
 0x1c5   : > { %s3212_s17 = sld [smem:[#allocation20_spill]] }
 0x1c6   : > { %s31_s15 = sadd.s32 1, %s3207_s25   ;;  %s3213_s14 = sld [smem:[#allocation22_spill]] }
 0x1c7   : > { %p28_p8 = scmp.ge.s32.totalorder %s31_s15, 5  }
 0x1c9   : > { %s3215_s12 = smov %s3210_s13  ;;  %30 = sbr.rel (!%p28_p8) target bundleno = 19 (0x13), region = 287 }
 0x1cb   : > { %s3216_s13 = smov %s3212_s17 }
 0x1ce   :  { %1320 = vsyncpa [#allocation3], 1 }
 0x1cf   :  { %1322 = vsyncpa [#allocation3 + $0x1], 1 }
 0x1d0   :  { %1323 = vsyncpa [#allocation5], 1 }
 0x1d1   :  { %1325 = vsyncpa [#allocation5 + $0x1], 1 }
 0x1d2   :  { %1326 = vsyncpa [#allocation8], 1 }
 0x1d3   :  { %1328 = vsyncpa [#allocation8 + $0x1], 1 }
 0x1d4   :  { %1329 = vsyncpa [#allocation11], 1 }
 0x1d5   :  { %1331 = vsyncpa [#allocation11 + $0x1], 1 }

// kernel: time_stylespace_mapper.3
= control target key start
LH: loop header
LB: loop body
LE: loop exit
PB: predicated region body
PF: predicated region fallthrough
CT: control target
= control target key end

     0   :  { %s4791_s0 = inlined_call_operand.vmem [shape: bf16[2,9088], index: 0, kind: input, shape index: {}]   ;;  %s4792_s1 = inlined_call_operand.vmem [shape: bf16[2,16], index: 1, kind: input, shape index: {}]   ;;  %s4793_s2 = inlined_call_operand.hbm [shape: bf16[15,512,512], index: 2, kind: input, shape index: {}]   ;;  %s4794_s3 = inlined_call_operand.hbm [shape: f32[15,1,512], index: 3, kind: input, shape index: {}]   ;;  %s4795_s4 = inlined_call_operand.hbm [shape: bf16[15,16,512], index: 4, kind: input, shape index: {}]   ;;  %s4796_s5 = inlined_call_operand.hbm [shape: f32[15,1,512], index: 5, kind: input, shape index: {}]   ;;  %s4797_s6 = inlined_call_operand.hbm [shape: bf16[15,16,512], index: 6, kind: input, shape index: {}]   ;;  %s4798_s7 = inlined_call_operand.hbm [shape: f32[15,1,512], index: 7, kind: input, shape index: {}]   ;;  %s4799_s8 = inlined_call_operand.vmem [shape: f32[2,9088], index: 8, kind: output, shape index: {}]  }
   0x1   :  { %4805 = sst [smem:[#allocation23_spill]] %s4791_s0 }
   0x2   :  { %4806 = sst [smem:[#allocation24_spill]] %s4792_s1 }
   0x3   :  { %4807 = sst [smem:[#allocation25_spill]] %s4793_s2 }
   0x4   :  { %4808 = sst [smem:[#allocation26_spill]] %s4794_s3 }
   0x5   :  { %4809 = sst [smem:[#allocation27_spill]] %s4795_s4 }
   0x6   :  { %4810 = sst [smem:[#allocation28_spill]] %s4796_s5 }
   0x7   :  { %4811 = sst [smem:[#allocation29_spill]] %s4799_s8 }
   0x8   :  { %13 = vsyncpa [#allocation3], 0 }
   0x9   :  { %15 = vsyncpa [#allocation3 + $0x1], 0 }
   0xa   :  { %16 = vsyncpa [#allocation5], 0 }
   0xb   :  { %18 = vsyncpa [#allocation5 + $0x1], 0 }
   0xc   :  { %19 = vsyncpa [#allocation8], 0 }
   0xd   :  { %21 = vsyncpa [#allocation8 + $0x1], 0 }
   0xe   :  { %22 = vsyncpa [#allocation11], 0 }
   0xf   :  { %24 = vsyncpa [#allocation11 + $0x1], 0  ;;  %s3892_s27 = smov 0   ;;  %s3894_s28 = smov 0  }
  0x10   :  { %s3896_s29 = smov 0   ;;  %s3898_s30 = smov 0  }
  0x11   :  { %s3900_s9 = smov 0   ;;  %s3902_s10 = smov 0  }
  0x12 LB: > { %4812 = sst [smem:[#allocation17_spill]] %s3765_s29  ;;  %s3921_s11 = sadd.s32 4294967295, %s3777_s10   ;;  %s3777_s10 = sphi %s3902_s10, %s30_s10   ;;  %s3773_s9 = sphi %s3900_s9, %s4853_s9   ;;  %s3769_s30 = sphi %s3898_s30, %s4849_s30   ;;  %s3765_s29 = sphi %s3896_s29, %s4848_s29   ;;  %s3761_s28 = sphi %s3894_s28, %s4852_s28   ;;  %s3757_s27 = sphi %s3892_s27, %s4851_s27  }
  0x13   : > { %4813 = sst [smem:[#allocation18_spill]] %s3773_s9  ;;  %s42_s12 = sadd.s32 1, %s3773_s9 }
  0x14   : > { %4814 = sst [smem:[#allocation19_spill]] %s3777_s10  ;;  %p44_p0 = scmp.ge.s32.totalorder %s42_s12, 15 }
  0x15   : > { %s103_s13 = sadd.s32 1, %s3765_s29  ;;  %p110_p1 = scmp.ne.s32.totalorder %s3765_s29, %s3761_s28 }
  0x16   : > { %p111_p2 = scmp.eq.s32.totalorder %s3777_s10, 0  ;;  %s4855_s12 = smov (%p44_p0, %s42_s12), 0 }
  0x17   : > { %4815 = sst [smem:[#allocation20_spill]] %s4855_s12  ;;  %p116_p4 = scmp.ne.s32.totalorder %s3761_s28, %s3757_s27 }
  0x18   : > { %p112_p3 = por %p111_p2, %p110_p1  ;;  %s100_s14 = ssub.s32 %s3773_s9, %s4855_s12 }
  0x19   : > { %p117_p5 = scmp.eq.s32.totalorder %s3921_s11, 0  ;;  %p101_p6 = scmp.eq.s32.totalorder %s100_s14, 0 }
  0x1a   : > { %p272_p7 = scmp.eq.s32.totalorder %s3921_s11, 14  ;;  %p3274_p10 = scmp.lt.s32.totalorder %s3777_s10, 15 }
  0x1b   : > { %p3935_p8 = por %p117_p5, %p116_p4  ;;  %s3948_s18 = sand.u32 1, %s3765_s29  }
  0x1c   : > { %s3940_s16 = scalar_select %p101_p6, %s3765_s29, %s103_s13  }
  0x1d   : > { %p3942_p9 = por %p272_p7, %p110_p1  ;;  %s344_s19 = sand.u32 1, %s3777_s10  }
  0x1e   : > { %4817 = sst [smem:[#allocation21_spill]] %s3940_s16  ;;  %p3951_p11 = pnand %p3274_p10, %p112_p3 }
  0x1f   : > { %s4818_s17 = scalar_select %p3942_p9, 1, 0 }
  0x20   : > { %s3956_s21 = sshll.u32 %s3948_s18, 2  ;;  %s3959_s22 = sshll.u32 %s3773_s9, 2 }
  0x21   : > { %4819 = sst [smem:[#allocation22_spill]] %s4818_s17  ;;  %s348_s26 = scalar_lea.vmem [#allocation4], %s3956_s21 }
  0x22   : > { %s4821_s3 = sld [smem:[#allocation26_spill]]  ;;  %s356_s27 = sshll.u32 %s348_s26, 4  ;;  %s357_s27 = int_to_ptr.vmem [resolvable:$true] %s356_s27 }
  0x23   : > { %p2503_p12 = scmp.ge.s32.totalorder %s3777_s10, 1  ;;  %s3967_s14 = scalar_lea.sflag [#allocation5], %s344_s19 }
  0x24   : > { %p443_p13 = scmp.lt.s32.totalorder %s3777_s10, 16  ;;  %s4822_s5 = sld [smem:[#allocation28_spill]] }
  0x25   : > { %s389_s26 = scalar_lea.vmem [#allocation7], %s3956_s21  ;;  %s3982_s29 = scalar_lea.sflag [#allocation8], %s344_s19 }
  0x26   : > { %p3977_p0 = pnand %p2503_p12, %p443_p13  ;;  %s2488_s12 = sshll.u32 %s3948_s18, 10 }
  0x27   : > { %s3099_s16 = sshll.u32 %s3773_s9, 10  ;;  %s4824_s2 = sld [smem:[#allocation25_spill]] }
  0x28   : > { %s352_s25 = scalar_lea.hbm %s4821_s3, %s3959_s22  ;;  %s397_s3 = sshll.u32 %s389_s26, 4  ;;  %s398_s3 = int_to_ptr.vmem [resolvable:$true] %s397_s3 }
  0x29   : > { %s354_s13 = sshll.u32 %s352_s25, 4  ;;  %s323_s26 = scalar_lea.sflag [#allocation3], %s3948_s18  ;;  %s355_s13 = int_to_ptr.hbm [resolvable:$true] %s354_s13 }
  0x2a   : > { %3261 = dma.hbm_to_vmem [thread:$0]  (!%p3951_p11), %s355_s13, 64, %s357_s27, %s3967_s14  }
  0x2b   : > { %s393_s23 = scalar_lea.hbm %s4822_s5, %s3959_s22  ;;  %s3843_s17 = smov 256  }
  0x2c   : > { %s395_s25 = sshll.u32 %s393_s23, 4  ;;  %s326_s23 = scalar_lea.vmem [#allocation2], %s2488_s12  ;;  %s396_s25 = int_to_ptr.hbm [resolvable:$true] %s395_s25 }
  0x2d   : > { %3267 = dma.hbm_to_vmem [thread:$0]  (!%p3951_p11), %s396_s25, 64, %s398_s3, %s3982_s29  }
  0x2e   : > { %s331_s5 = scalar_lea.hbm %s4824_s2, %s3099_s16  ;;  %s334_s8 = sshll.u32 %s326_s23, 4  ;;  %s335_s8 = int_to_ptr.vmem [resolvable:$true] %s334_s8 }
  0x2f   : > { %s332_s10 = sshll.u32 %s331_s5, 4  ;;  %s3844_s19 = smov 16   ;;  %s333_s10 = int_to_ptr.hbm [resolvable:$true] %s332_s10 }
  0x30   : > { %3258 = dma.hbm_to_vmem [thread:$0]  (!%p3951_p11), %s333_s10, 16384, %s335_s8, %s323_s26, %s3843_s17, %s3843_s17, %s3844_s19  }
  0x31   : > { %s2493_s3 = sshll.u32 %s3948_s18, 5  ;;  %s3100_s25 = sshll.u32 %s3773_s9, 5 }
  0x32   : > { %s4825_s4 = sld [smem:[#allocation27_spill]]  ;;  %s367_s16 = scalar_lea.vmem [#allocation6], %s2493_s3 }
  0x33   : > { %s375_s13 = sshll.u32 %s367_s16, 4  ;;  %s413_s23 = scalar_lea.hbm %s4797_s6, %s3100_s25  ;;  %s376_s13 = int_to_ptr.vmem [resolvable:$true] %s375_s13 }
  0x34   : > { %s414_s26 = sshll.u32 %s413_s23, 4  ;;  %s408_s2 = scalar_lea.vmem [#allocation9], %s2493_s3  ;;  %s415_s26 = int_to_ptr.hbm [resolvable:$true] %s414_s26 }
  0x35   : > { %s416_s9 = sshll.u32 %s408_s2, 4  ;;  %s430_s16 = scalar_lea.vmem [#allocation10], %s3956_s21  ;;  %s417_s9 = int_to_ptr.vmem [resolvable:$true] %s416_s9 }
  0x36   : > { %3270 = dma.hbm_to_vmem [thread:$0]  (!%p3951_p11), %s415_s26, 512, %s417_s9, %s3982_s29, %s3843_s17, %s3843_s17, %s3844_s19  }
  0x37   : > { %s4020_s2 = sand.u32 (!%p3977_p0), 1, %s3761_s28  }
  0x38   : > { %s372_s5 = scalar_lea.hbm %s4825_s4, %s3100_s25  ;;  %s438_s4 = sshll.u32 %s430_s16, 4  ;;  %s439_s4 = int_to_ptr.vmem [resolvable:$true] %s438_s4 }
  0x39   : > { %s373_s12 = sshll.u32 %s372_s5, 4  ;;  %s434_s5 = scalar_lea.hbm %s4798_s7, %s3959_s22  ;;  %s374_s12 = int_to_ptr.hbm [resolvable:$true] %s373_s12 }
  0x3a   : > { %3264 = dma.hbm_to_vmem [thread:$0]  (!%p3951_p11), %s374_s12, 512, %s376_s13, %s3967_s14, %s3843_s17, %s3843_s17, %s3844_s19  }
  0x3b   : > { %s436_s0 = sshll.u32 %s434_s5, 4  ;;  %s427_s14 = scalar_lea.sflag [#allocation11], %s3948_s18  ;;  %s437_s0 = int_to_ptr.hbm [resolvable:$true] %s436_s0 }
  0x3c   : > { %3273 = dma.hbm_to_vmem [thread:$0]  (!%p3951_p11), %s437_s0, 64, %s439_s4, %s427_s14  }
  0x3d   : > { %447 = sbr.rel (%p3977_p0) target bundleno = 547 (0x223), region = 52  ;;  %s2504_s29 = sshll.u32 (!%p3977_p0), %s4020_s2, 10 }
  0x3e   : > { %s450_s9 = scalar_lea.sflag (!%p3977_p0), [#allocation3], %s4020_s2  ;;  %s4024_s17 = scalar_lea.vmem (!%p3977_p0), [#allocation2], %s2504_s29 }
  0x42   : > { %3740 = dma.done.wait (%p3935_p8), %s450_s9, 16384  }
  0x43   : > { %3742 = vsyncadd (%p3935_p8), %s450_s9, 4294950912  ;;  %s459_s0 = sand.u32 1, %s3921_s11   ;;  %s4032_s4 = sshll.u32 %s4020_s2, 2 }
  0x44   : > { %s460_s18 = scalar_lea.sflag [#allocation5], %s459_s0  ;;  %s463_s20 = scalar_lea.vmem [#allocation4], %s4032_s4 }
  0x45   : > { %3744 = dma.done.wait (%p3935_p8), %s460_s18, 576  }
  0x46   : > { %3746 = vsyncadd (%p3935_p8), %s460_s18, 4294966720  ;;  %s2506_s21 = sshll.u32 %s4020_s2, 5  ;;  %s480_s24 = scalar_lea.sflag [#allocation8], %s459_s0 }
  0x47   : > { %s4040_s22 = scalar_lea.vmem [#allocation6], %s2506_s21  ;;  %s483_s19 = scalar_lea.vmem [#allocation7], %s4032_s4 }
  0x48   : > { %3748 = dma.done.wait (%p3935_p8), %s480_s24, 576  }
  0x49   : > { %3750 = vsyncadd (%p3935_p8), %s480_s24, 4294966720  ;;  %s4047_s11 = scalar_lea.vmem [#allocation9], %s2506_s21  ;;  %s500_s3 = scalar_lea.sflag [#allocation11], %s4020_s2 }
  0x4a   : > { %s503_s25 = scalar_lea.vmem [#allocation10], %s4032_s4 }
  0x4b   : > { %3752 = dma.done.wait (%p3935_p8), %s500_s3, 64  }
  0x4c   : > { %3754 = vsyncadd (%p3935_p8), %s500_s3, 4294967232  ;;  %v2626_v0 = vld [vmem:[%s4024_s17 + $0xe0] sm:$0xf]  ;;  %v3132_v1 = vld [vmem:[%s4024_s17 + $0xec] sm:$0xf0]  ;;  %s4104_s15 = sshll.u32 %s3769_s30, 2 }
  0x4d   : > { %v2754_v2 = vld [vmem:[%s4024_s17 + $0x1e0] sm:$0xf]  ;;  %v2627_v3 = vor.u32 %v3132_v1, %v2626_v0  ;;  %v3164_v4 = vld [vmem:[%s4024_s17 + $0x1ec] sm:$0xf0]  ;;  %p581_p1 = scmp.lt.s32.totalorder %s4104_s15, 70  ;;  %s4826_s10 = sld [smem:[#allocation23_spill]] }
  0x4e   : > { %v2882_v5 = vld [vmem:[%s4024_s17 + $0x2e0] sm:$0xf]  ;;  %v3196_v6 = vld [vmem:[%s4024_s17 + $0x2ec] sm:$0xf0]  ;;  %v2755_v7 = vor.u32 %v3164_v4, %v2754_v2  ;;  %s4827_s27 = sld [smem:[#allocation24_spill]]  ;;  %vm1643_vm0 = vcmask 130048  }
  0x4f   : > { %v2883_v8 = vor.u32 %v3196_v6, %v2882_v5  ;;  %v3010_v9 = vld [vmem:[%s4024_s17 + $0x3e0] sm:$0xf]  ;;  %v3228_v10 = vld [vmem:[%s4024_s17 + $0x3ec] sm:$0xf0]  ;;  %1389 = vmatpush.bf16.msra.mxu0 %v2627_v3  ;;  %s4134_s12 = scalar_select %p581_p1, %s4104_s15, 70 }
  0x50   : > { %v2610_v11 = vld [vmem:[%s4024_s17 + $0xc0] sm:$0xf]  ;;  %v3011_v12 = vor.u32 %v3228_v10, %v3010_v9  ;;  %v3128_v13 = vld [vmem:[%s4024_s17 + $0xcc] sm:$0xf0]  ;;  %1402 = vmatpush.bf16.msra.mxu1 %v2755_v7  ;;  %s2510_s5 = sshll.u32 %s4020_s2, 3  ;;  %s1916_s29 = ssub.s32 (%p3942_p9), 71, %s4104_s15 }
  0x51   : > { %v2738_v14 = vld [vmem:[%s4024_s17 + $0x1c0] sm:$0xf]  ;;  %v3160_v15 = vld [vmem:[%s4024_s17 + $0x1cc] sm:$0xf0]  ;;  %1415 = vmatpush.bf16.msra.mxu2 %v2883_v8  ;;  %v2611_v16 = vor.u32 %v3128_v13, %v2610_v11  ;;  %s4485_s16 = scalar_lea.vmem [#allocation12], %s2510_s5   ;;  %s3238_s9 = sshll.u32 (%p3942_p9), %s3769_s30, 3 }
  0x52   : > { %v2739_v17 = vor.u32 %v3160_v15, %v2738_v14  ;;  %v2866_v18 = vld [vmem:[%s4024_s17 + $0x2c0] sm:$0xf]  ;;  %v3192_v19 = vld [vmem:[%s4024_s17 + $0x2cc] sm:$0xf0]  ;;  %1428 = vmatpush.bf16.msra.mxu3 %v3011_v12  ;;  %p1917_p2 = scmp.lt.s32.totalorder (%p3942_p9), %s1916_s29, 4  ;;  %s4835_s0 = sld [smem:[#allocation29_spill]] (%p3942_p9) }
  0x53   : > { %v2994_v20 = vld [vmem:[%s4024_s17 + $0x3c0] sm:$0xf]  ;;  %v2867_v21 = vor.u32 %v3192_v19, %v2866_v18  ;;  %v3224_v22 = vld [vmem:[%s4024_s17 + $0x3cc] sm:$0xf0]  ;;  %1390 = vmatpush.bf16.msra.mxu0 %v2611_v16  ;;  %s585_s23 = scalar_lea.vmem %s4826_s10, %s4134_s12 }
  0x54   : > { %v2594_v23 = vld [vmem:[%s4024_s17 + $0xa0] sm:$0xf]  ;;  %v3124_v24 = vld [vmem:[%s4024_s17 + $0xac] sm:$0xf0]  ;;  %v2995_v25 = vor.u32 %v3224_v22, %v2994_v20  ;;  %1403 = vmatpush.bf16.msra.mxu1 %v2739_v17 }
  0x55   : > { %v2722_v26 = vld [vmem:[%s4024_s17 + $0x1a0] sm:$0xf]  ;;  %v3156_v27 = vld [vmem:[%s4024_s17 + $0x1ac] sm:$0xf0]  ;;  %v2595_v29 = vor.u32 %v3124_v24, %v2594_v23  ;;  %1416 = vmatpush.bf16.msra.mxu2 %v2867_v21 }
  0x56   : > { %v2850_v28 = vld [vmem:[%s4024_s17 + $0x2a0] sm:$0xf]  ;;  %v3188_v30 = vld [vmem:[%s4024_s17 + $0x2ac] sm:$0xf0]  ;;  %v2723_v33 = vor.u32 %v3156_v27, %v2722_v26  ;;  %1429 = vmatpush.bf16.msra.mxu3 %v2995_v25 }
  0x57   : > { %v2978_v31 = vld [vmem:[%s4024_s17 + $0x3a0] sm:$0xf]  ;;  %v3220_v32 = vld [vmem:[%s4024_s17 + $0x3ac] sm:$0xf0]  ;;  %v2851_v34 = vor.u32 %v3188_v30, %v2850_v28  ;;  %1391 = vmatpush.bf16.msra.mxu0 %v2595_v29  ;;  %v3130_v28 = vld [vmem:[%s4024_s17 + $0xe4] sm:$0xf] }
  0x58   : > { %v2578_v35 = vld [vmem:[%s4024_s17 + $0x80] sm:$0xf]  ;;  %v3120_v36 = vld [vmem:[%s4024_s17 + $0x8c] sm:$0xf0]  ;;  %v2979_v38 = vor.u32 %v3220_v32, %v2978_v31  ;;  %1404 = vmatpush.bf16.msra.mxu1 %v2723_v33  ;;  %v2628_v29 = vld [vmem:[%s4024_s17 + $0xf0] sm:$0xf0]  ;;  %s4495_s4 = scalar_lea.vmem (%p3942_p9), %s4835_s0, %s3238_s9  }
  0x59   : > { %v2706_v37 = vld [vmem:[%s4024_s17 + $0x180] sm:$0xf]  ;;  %v3152_v39 = vld [vmem:[%s4024_s17 + $0x18c] sm:$0xf0]  ;;  %v2579_v44 = vor.u32 %v3120_v36, %v2578_v35  ;;  %1417 = vmatpush.bf16.msra.mxu2 %v2851_v34  ;;  %v3162_v30 = vld [vmem:[%s4024_s17 + $0x1e4] sm:$0xf] }
  0x5a   : > { %v2834_v40 = vld [vmem:[%s4024_s17 + $0x280] sm:$0xf]  ;;  %v3184_v41 = vld [vmem:[%s4024_s17 + $0x28c] sm:$0xf0]  ;;  %v2707_v45 = vor.u32 %v3152_v39, %v2706_v37  ;;  %1430 = vmatpush.bf16.msra.mxu3 %v2979_v38  ;;  %v2756_v32 = vld [vmem:[%s4024_s17 + $0x1f0] sm:$0xf0] }
  0x5b   : > { %v2962_v42 = vld [vmem:[%s4024_s17 + $0x380] sm:$0xf]  ;;  %v3216_v43 = vld [vmem:[%s4024_s17 + $0x38c] sm:$0xf0]  ;;  %v2835_v46 = vor.u32 %v3184_v41, %v2834_v40  ;;  %1392 = vmatpush.bf16.msra.mxu0 %v2579_v44  ;;  %v3194_v33 = vld [vmem:[%s4024_s17 + $0x2e4] sm:$0xf]  ;;  %v2631_v40 = vor.u32 %v3130_v28, %v2628_v29  ;;  %v2759_v41 = vor.u32 %v3162_v30, %v2756_v32 }
  0x5c   : > { %v2562_v47 = vld [vmem:[%s4024_s17 + $0x60] sm:$0xf]  ;;  %v3116_v48 = vld [vmem:[%s4024_s17 + $0x6c] sm:$0xf0]  ;;  %v2963_v50 = vor.u32 %v3216_v43, %v2962_v42  ;;  %1405 = vmatpush.bf16.msra.mxu1 %v2707_v45  ;;  %v2884_v34 = vld [vmem:[%s4024_s17 + $0x2f0] sm:$0xf0] }
  0x5d   : > { %v2690_v49 = vld [vmem:[%s4024_s17 + $0x160] sm:$0xf]  ;;  %v3148_v51 = vld [vmem:[%s4024_s17 + $0x16c] sm:$0xf0]  ;;  %v2563_v56 = vor.u32 %v3116_v48, %v2562_v47  ;;  %1418 = vmatpush.bf16.msra.mxu2 %v2835_v46  ;;  %v3226_v37 = vld [vmem:[%s4024_s17 + $0x3e4] sm:$0xf]  ;;  %v2887_v42 = vor.u32 %v3194_v33, %v2884_v34 }
  0x5e   : > { %v2818_v52 = vld [vmem:[%s4024_s17 + $0x260] sm:$0xf]  ;;  %v3180_v53 = vld [vmem:[%s4024_s17 + $0x26c] sm:$0xf0]  ;;  %v2691_v57 = vor.u32 %v3148_v51, %v2690_v49  ;;  %1431 = vmatpush.bf16.msra.mxu3 %v2963_v50  ;;  %v3012_v38 = vld [vmem:[%s4024_s17 + $0x3f0] sm:$0xf0] }
  0x5f   : > { %v2946_v54 = vld [vmem:[%s4024_s17 + $0x360] sm:$0xf]  ;;  %v3212_v55 = vld [vmem:[%s4024_s17 + $0x36c] sm:$0xf0]  ;;  %v2819_v58 = vor.u32 %v3180_v53, %v2818_v52  ;;  %1393 = vmatpush.bf16.msra.mxu0 %v2563_v56  ;;  %v3126_v43 = vld [vmem:[%s4024_s17 + $0xc4] sm:$0xf]  ;;  %v3015_v46 = vor.u32 %v3226_v37, %v3012_v38 }
  0x60   : > { %v2546_v59 = vld [vmem:[%s4024_s17 + $0x40] sm:$0xf]  ;;  %v3112_v60 = vld [vmem:[%s4024_s17 + $0x4c] sm:$0xf0]  ;;  %v2947_v62 = vor.u32 %v3212_v55, %v2946_v54  ;;  %1406 = vmatpush.bf16.msra.mxu1 %v2691_v57  ;;  %v2612_v44 = vld [vmem:[%s4024_s17 + $0xd0] sm:$0xf0] }
  0x61   : > { %v2674_v61 = vld [vmem:[%s4024_s17 + $0x140] sm:$0xf]  ;;  %v3144_v63 = vld [vmem:[%s4024_s17 + $0x14c] sm:$0xf0]  ;;  %v2547_v4 = vor.u32 %v3112_v60, %v2546_v59  ;;  %1419 = vmatpush.bf16.msra.mxu2 %v2819_v58  ;;  %v3158_v45 = vld [vmem:[%s4024_s17 + $0x1c4] sm:$0xf]  ;;  %v2615_v52 = vor.u32 %v3126_v43, %v2612_v44 }
  0x62   : > { %v2802_v0 = vld [vmem:[%s4024_s17 + $0x240] sm:$0xf]  ;;  %v3176_v1 = vld [vmem:[%s4024_s17 + $0x24c] sm:$0xf0]  ;;  %v2675_v5 = vor.u32 %v3144_v63, %v2674_v61  ;;  %1432 = vmatpush.bf16.msra.mxu3 %v2947_v62  ;;  %v2740_v47 = vld [vmem:[%s4024_s17 + $0x1d0] sm:$0xf0] }
  0x63   : > { %v2930_v2 = vld [vmem:[%s4024_s17 + $0x340] sm:$0xf]  ;;  %v3208_v3 = vld [vmem:[%s4024_s17 + $0x34c] sm:$0xf0]  ;;  %v2803_v6 = vor.u32 %v3176_v1, %v2802_v0  ;;  %1394 = vmatpush.bf16.msra.mxu0 %v2547_v4  ;;  %v3190_v48 = vld [vmem:[%s4024_s17 + $0x2c4] sm:$0xf]  ;;  %v2743_v53 = vor.u32 %v3158_v45, %v2740_v47 }
  0x64   : > { %v2530_v7 = vld [vmem:[%s4024_s17 + $0x20] sm:$0xf]  ;;  %v3108_v8 = vld [vmem:[%s4024_s17 + $0x2c] sm:$0xf0]  ;;  %v2931_v10 = vor.u32 %v3208_v3, %v2930_v2  ;;  %1407 = vmatpush.bf16.msra.mxu1 %v2675_v5  ;;  %v2868_v49 = vld [vmem:[%s4024_s17 + $0x2d0] sm:$0xf0] }
  0x65   : > { %v2658_v9 = vld [vmem:[%s4024_s17 + $0x120] sm:$0xf]  ;;  %v3140_v11 = vld [vmem:[%s4024_s17 + $0x12c] sm:$0xf0]  ;;  %v2531_v16 = vor.u32 %v3108_v8, %v2530_v7  ;;  %1420 = vmatpush.bf16.msra.mxu2 %v2803_v6  ;;  %v3222_v50 = vld [vmem:[%s4024_s17 + $0x3c4] sm:$0xf]  ;;  %v2871_v54 = vor.u32 %v3190_v48, %v2868_v49 }
  0x66   : > { %v2786_v12 = vld [vmem:[%s4024_s17 + $0x220] sm:$0xf]  ;;  %v3172_v13 = vld [vmem:[%s4024_s17 + $0x22c] sm:$0xf0]  ;;  %v2659_v19 = vor.u32 %v3140_v11, %v2658_v9  ;;  %1433 = vmatpush.bf16.msra.mxu3 %v2931_v10  ;;  %v2996_v51 = vld [vmem:[%s4024_s17 + $0x3d0] sm:$0xf0] }
  0x67   : > { %v2914_v14 = vld [vmem:[%s4024_s17 + $0x320] sm:$0xf]  ;;  %v3204_v15 = vld [vmem:[%s4024_s17 + $0x32c] sm:$0xf0]  ;;  %v2787_v20 = vor.u32 %v3172_v13, %v2786_v12  ;;  %1395 = vmatpush.bf16.msra.mxu0 %v2531_v16  ;;  %v3122_v55 = vld [vmem:[%s4024_s17 + $0xa4] sm:$0xf]  ;;  %v2999_v58 = vor.u32 %v3222_v50, %v2996_v51 }
  0x68   : > { %v2514_v17 = vld [vmem:[%s4024_s17] sm:$0xf]  ;;  %v3104_v18 = vld [vmem:[%s4024_s17 + $0xc] sm:$0xf0]  ;;  %v2915_v24 = vor.u32 %v3204_v15, %v2914_v14  ;;  %1408 = vmatpush.bf16.msra.mxu1 %v2659_v19  ;;  %v2596_v56 = vld [vmem:[%s4024_s17 + $0xb0] sm:$0xf0] }
  0x69   : > { %v2642_v21 = vld [vmem:[%s4024_s17 + $0x100] sm:$0xf]  ;;  %v3136_v22 = vld [vmem:[%s4024_s17 + $0x10c] sm:$0xf0]  ;;  %v2515_v31 = vor.u32 %v3104_v18, %v2514_v17  ;;  %1421 = vmatpush.bf16.msra.mxu2 %v2787_v20  ;;  %v3154_v57 = vld [vmem:[%s4024_s17 + $0x1a4] sm:$0xf]  ;;  %v2599_v0 = vor.u32 %v3122_v55, %v2596_v56 }
  0x6a   : > { %v2770_v23 = vld [vmem:[%s4024_s17 + $0x200] sm:$0xf]  ;;  %v3168_v25 = vld [vmem:[%s4024_s17 + $0x20c] sm:$0xf0]  ;;  %v2643_v35 = vor.u32 %v3136_v22, %v2642_v21  ;;  %1434 = vmatpush.bf16.msra.mxu3 %v2915_v24  ;;  %v2724_v59 = vld [vmem:[%s4024_s17 + $0x1b0] sm:$0xf0] }
  0x6b   : > { %v2898_v26 = vld [vmem:[%s4024_s17 + $0x300] sm:$0xf]  ;;  %v3200_v27 = vld [vmem:[%s4024_s17 + $0x30c] sm:$0xf0]  ;;  %v2771_v36 = vor.u32 %v3168_v25, %v2770_v23  ;;  %1396 = vmatpush.bf16.msra.mxu0 %v2515_v31  ;;  %v3186_v60 = vld [vmem:[%s4024_s17 + $0x2a4] sm:$0xf]  ;;  %v2727_v3 = vor.u32 %v3154_v57, %v2724_v59 }
  0x6c   : > { %v2899_v39 = vor.u32 %v3200_v27, %v2898_v26  ;;  %1409 = vmatpush.bf16.msra.mxu1 %v2643_v35  ;;  %v2852_v61 = vld [vmem:[%s4024_s17 + $0x2b0] sm:$0xf0]  ;;  %v3218_v62 = vld [vmem:[%s4024_s17 + $0x3a4] sm:$0xf]  ;;  %v599_v2 = vld [vmem:[%s585_s23] sm:$0xf] }
  0x6d   : > { %1422 = vmatpush.bf16.msra.mxu2 %v2771_v36  ;;  %v2980_v63 = vld [vmem:[%s4024_s17 + $0x3b0] sm:$0xf0]  ;;  %v3118_v1 = vld [vmem:[%s4024_s17 + $0x84] sm:$0xf]  ;;  %v2855_v4 = vor.u32 %v3186_v60, %v2852_v61  ;;  %740 = vst [vmem:[#allocation1] ss:$9 sm:$0xff] %v599_v2 }
  0x6e   : > { %1435 = vmatpush.bf16.msra.mxu3 %v2899_v39  ;;  %v2580_v5 = vld [vmem:[%s4024_s17 + $0x90] sm:$0xf0]  ;;  %v3150_v6 = vld [vmem:[%s4024_s17 + $0x184] sm:$0xf]  ;;  %v2983_v7 = vor.u32 %v3218_v62, %v2980_v63  ;;  %v3133_v2 = vld [vmem:[%s4024_s17 + $0xf4] sm:$0xf0] }
  0x6f   : > { %1441 = vmatpush.bf16.msrb.mxu0 %v2631_v40  ;;  %v2708_v8 = vld [vmem:[%s4024_s17 + $0x190] sm:$0xf0]  ;;  %v3182_v9 = vld [vmem:[%s4024_s17 + $0x284] sm:$0xf]  ;;  %v2583_v13 = vor.u32 %v3118_v1, %v2580_v5  ;;  %v2634_v1 = vld [vmem:[%s4024_s17 + $0xe8] sm:$0xf] }
  0x70   : > { %1454 = vmatpush.bf16.msrb.mxu1 %v2759_v41  ;;  %v2836_v10 = vld [vmem:[%s4024_s17 + $0x290] sm:$0xf0]  ;;  %v3214_v11 = vld [vmem:[%s4024_s17 + $0x384] sm:$0xf]  ;;  %v2711_v14 = vor.u32 %v3150_v6, %v2708_v8  ;;  %v3165_v5 = vld [vmem:[%s4024_s17 + $0x1f4] sm:$0xf0] }
  0x71   : > { %1467 = vmatpush.bf16.msrb.mxu2 %v2887_v42  ;;  %v2964_v12 = vld [vmem:[%s4024_s17 + $0x390] sm:$0xf0]  ;;  %v2839_v15 = vor.u32 %v3182_v9, %v2836_v10  ;;  %v3114_v16 = vld [vmem:[%s4024_s17 + $0x64] sm:$0xf]  ;;  %v2890_v6 = vld [vmem:[%s4024_s17 + $0x2e8] sm:$0xf] }
  0x72   : > { %1480 = vmatpush.bf16.msrb.mxu3 %v3015_v46  ;;  %v2564_v17 = vld [vmem:[%s4024_s17 + $0x70] sm:$0xf0]  ;;  %v3146_v18 = vld [vmem:[%s4024_s17 + $0x164] sm:$0xf]  ;;  %v2967_v19 = vor.u32 %v3214_v11, %v2964_v12  ;;  %v3018_v10 = vld [vmem:[%s4024_s17 + $0x3e8] sm:$0xf] }
  0x73   : > { %1442 = vmatpush.bf16.msrb.mxu0 %v2615_v52  ;;  %v2692_v20 = vld [vmem:[%s4024_s17 + $0x170] sm:$0xf0]  ;;  %v3178_v21 = vld [vmem:[%s4024_s17 + $0x264] sm:$0xf]  ;;  %v2567_v26 = vor.u32 %v3114_v16, %v2564_v17  ;;  %v3229_v11 = vld [vmem:[%s4024_s17 + $0x3f4] sm:$0xf0] }
  0x74   : > { %1455 = vmatpush.bf16.msrb.mxu1 %v2743_v53  ;;  %v2820_v22 = vld [vmem:[%s4024_s17 + $0x270] sm:$0xf0]  ;;  %v3210_v23 = vld [vmem:[%s4024_s17 + $0x364] sm:$0xf]  ;;  %v4173_v27 = vld [vmem:[#allocation1 + $0x12] sm:$0xff]  ;;  %v2695_v30 = vor.u32 %v3146_v18, %v2692_v20 }
  0x75   : > { %1468 = vmatpush.bf16.msrb.mxu2 %v2871_v54  ;;  %v2948_v24 = vld [vmem:[%s4024_s17 + $0x370] sm:$0xf0]  ;;  %v3110_v25 = vld [vmem:[%s4024_s17 + $0x44] sm:$0xf]  ;;  %v4177_v29 = vld [vmem:[#allocation1] sm:$0xff]  ;;  %v2823_v31 = vor.u32 %v3178_v21, %v2820_v22 }
  0x76   : > { %1481 = vmatpush.bf16.msrb.mxu3 %v2999_v58  ;;  %v4175_v28 = vld [vmem:[#allocation1 + $0x1b] sm:$0xff]  ;;  %v3142_v33 = vld [vmem:[%s4024_s17 + $0x144] sm:$0xf]  ;;  %v2951_v35 = vor.u32 %v3210_v23, %v2948_v24  ;;  %1423 = vmatmul.bf16.vlgmr.msra.gmra.mxu2 %v4173_v27  ;;  %v2618_v16 = vld [vmem:[%s4024_s17 + $0xc8] sm:$0xf] }
  0x77   : > { %1443 = vmatpush.bf16.msrb.mxu0 %v2599_v0  ;;  %v2548_v32 = vld [vmem:[%s4024_s17 + $0x50] sm:$0xf0]  ;;  %v4181_v34 = vld [vmem:[#allocation1 + $0x9] sm:$0xff]  ;;  %1436 = vmatmul.bf16.vlgmr.msra.gmra.mxu3 %v4175_v28  ;;  %v3129_v17 = vld [vmem:[%s4024_s17 + $0xd4] sm:$0xf0] }
  0x78   : > { %1456 = vmatpush.bf16.msrb.mxu1 %v2727_v3  ;;  %v2676_v36 = vld [vmem:[%s4024_s17 + $0x150] sm:$0xf0]  ;;  %v3174_v37 = vld [vmem:[%s4024_s17 + $0x244] sm:$0xf]  ;;  %1397 = vmatmul.bf16.vlgmr.msra.gmra.mxu0 %v4177_v29  ;;  %v2551_v41 = vor.u32 %v3110_v25, %v2548_v32  ;;  %v2762_v3 = vld [vmem:[%s4024_s17 + $0x1e8] sm:$0xf]  ;;  %v2619_v25 = vor.u32 %v3129_v17, %v2618_v16 }
  0x79   : > { %1469 = vmatpush.bf16.msrb.mxu2 %v2855_v4  ;;  %v2804_v38 = vld [vmem:[%s4024_s17 + $0x250] sm:$0xf0]  ;;  %v3206_v39 = vld [vmem:[%s4024_s17 + $0x344] sm:$0xf]  ;;  %1410 = vmatmul.bf16.vlgmr.msra.gmra.mxu1 %v4181_v34  ;;  %v2679_v42 = vor.u32 %v3142_v33, %v2676_v36  ;;  %v2746_v18 = vld [vmem:[%s4024_s17 + $0x1c8] sm:$0xf] }
  0x7a   : > { %1482 = vmatpush.bf16.msrb.mxu3 %v2983_v7  ;;  %v2932_v40 = vld [vmem:[%s4024_s17 + $0x350] sm:$0xf0]  ;;  %v2807_v43 = vor.u32 %v3174_v37, %v2804_v38  ;;  %v3106_v44 = vld [vmem:[%s4024_s17 + $0x24] sm:$0xf]  ;;  %v3197_v7 = vld [vmem:[%s4024_s17 + $0x2f4] sm:$0xf0] }
  0x7b   : > { %1444 = vmatpush.bf16.msrb.mxu0 %v2583_v13  ;;  %v2532_v45 = vld [vmem:[%s4024_s17 + $0x30] sm:$0xf0]  ;;  %v3138_v46 = vld [vmem:[%s4024_s17 + $0x124] sm:$0xf]  ;;  %v2935_v47 = vor.u32 %v3206_v39, %v2932_v40  ;;  %v2635_v13 = vor.u32 %v3133_v2, %v2634_v1  ;;  %v3161_v20 = vld [vmem:[%s4024_s17 + $0x1d4] sm:$0xf0] }
  0x7c   : > { %1457 = vmatpush.bf16.msrb.mxu1 %v2711_v14  ;;  %v2660_v48 = vld [vmem:[%s4024_s17 + $0x130] sm:$0xf0]  ;;  %v3170_v49 = vld [vmem:[%s4024_s17 + $0x224] sm:$0xf]  ;;  %v2535_v53 = vor.u32 %v3106_v44, %v2532_v45  ;;  %v2763_v14 = vor.u32 %v3165_v5, %v2762_v3  ;;  %v2874_v21 = vld [vmem:[%s4024_s17 + $0x2c8] sm:$0xf] }
  0x7d   : > { %1470 = vmatpush.bf16.msrb.mxu2 %v2839_v15  ;;  %v2788_v50 = vld [vmem:[%s4024_s17 + $0x230] sm:$0xf0]  ;;  %v3202_v51 = vld [vmem:[%s4024_s17 + $0x324] sm:$0xf]  ;;  %v2663_v56 = vor.u32 %v3138_v46, %v2660_v48  ;;  %v2891_v15 = vor.u32 %v3197_v7, %v2890_v6  ;;  %v3193_v22 = vld [vmem:[%s4024_s17 + $0x2d4] sm:$0xf0] }
  0x7e   : > { %1483 = vmatpush.bf16.msrb.mxu3 %v2967_v19  ;;  %v2916_v52 = vld [vmem:[%s4024_s17 + $0x330] sm:$0xf0]  ;;  %v3102_v54 = vld [vmem:[%s4024_s17 + $0x4] sm:$0xf]  ;;  %v2791_v57 = vor.u32 %v3170_v49, %v2788_v50  ;;  %v3019_v19 = vor.u32 %v3229_v11, %v3018_v10  ;;  %v3002_v23 = vld [vmem:[%s4024_s17 + $0x3c8] sm:$0xf] }
  0x7f   : > { %1445 = vmatpush.bf16.msrb.mxu0 %v2567_v26  ;;  %v2516_v55 = vld [vmem:[%s4024_s17 + $0x10] sm:$0xf0]  ;;  %v3134_v58 = vld [vmem:[%s4024_s17 + $0x104] sm:$0xf]  ;;  %v2919_v61 = vor.u32 %v3202_v51, %v2916_v52  ;;  %v3225_v24 = vld [vmem:[%s4024_s17 + $0x3d4] sm:$0xf0]  ;;  %v2747_v26 = vor.u32 %v3161_v20, %v2746_v18 }
  0x80   : > { %1458 = vmatpush.bf16.msrb.mxu1 %v2695_v30  ;;  %v2644_v59 = vld [vmem:[%s4024_s17 + $0x110] sm:$0xf0]  ;;  %v3166_v60 = vld [vmem:[%s4024_s17 + $0x204] sm:$0xf]  ;;  %v2519_v4 = vor.u32 %v3102_v54, %v2516_v55  ;;  %v2875_v30 = vor.u32 %v3193_v22, %v2874_v21  ;;  %v3125_v32 = vld [vmem:[%s4024_s17 + $0xb4] sm:$0xf0] }
  0x81   : > { %1471 = vmatpush.bf16.msrb.mxu2 %v2823_v31  ;;  %v2772_v62 = vld [vmem:[%s4024_s17 + $0x210] sm:$0xf0]  ;;  %v3198_v63 = vld [vmem:[%s4024_s17 + $0x304] sm:$0xf]  ;;  %v2647_v8 = vor.u32 %v3134_v58, %v2644_v59  ;;  %v2602_v31 = vld [vmem:[%s4024_s17 + $0xa8] sm:$0xf] }
  0x82   : > { %1484 = vmatpush.bf16.msrb.mxu3 %v2951_v35  ;;  %v2900_v0 = vld [vmem:[%s4024_s17 + $0x310] sm:$0xf0]  ;;  %v2775_v9 = vor.u32 %v3166_v60, %v2772_v62  ;;  %v2730_v33 = vld [vmem:[%s4024_s17 + $0x1a8] sm:$0xf]  ;;  %v3003_v35 = vor.u32 %v3225_v24, %v3002_v23  ;;  %v3157_v36 = vld [vmem:[%s4024_s17 + $0x1b4] sm:$0xf0] }
  0x83   : > { %1446 = vmatpush.bf16.msrb.mxu0 %v2551_v41  ;;  %v2903_v12 = vor.u32 %v3198_v63, %v2900_v0  ;;  %v2858_v37 = vld [vmem:[%s4024_s17 + $0x2a8] sm:$0xf]  ;;  %v3189_v38 = vld [vmem:[%s4024_s17 + $0x2b4] sm:$0xf0]  ;;  %v2603_v41 = vor.u32 %v3125_v32, %v2602_v31 }
  0x84   : > { %1459 = vmatpush.bf16.msrb.mxu1 %v2679_v42  ;;  %v2986_v39 = vld [vmem:[%s4024_s17 + $0x3a8] sm:$0xf]  ;;  %v3221_v40 = vld [vmem:[%s4024_s17 + $0x3b4] sm:$0xf0]  ;;  %v2731_v42 = vor.u32 %v3157_v36, %v2730_v33 }
  0x85   : > { %1472 = vmatpush.bf16.msrb.mxu2 %v2807_v43  ;;  %v2859_v43 = vor.u32 %v3189_v38, %v2858_v37  ;;  %v2586_v44 = vld [vmem:[%s4024_s17 + $0x88] sm:$0xf]  ;;  %v3121_v45 = vld [vmem:[%s4024_s17 + $0x94] sm:$0xf0] }
  0x86   : > { %1485 = vmatpush.bf16.msrb.mxu3 %v2935_v47  ;;  %v2714_v46 = vld [vmem:[%s4024_s17 + $0x188] sm:$0xf]  ;;  %v2987_v47 = vor.u32 %v3221_v40, %v2986_v39  ;;  %v3153_v48 = vld [vmem:[%s4024_s17 + $0x194] sm:$0xf0] }
  0x87   : > { %1447 = vmatpush.bf16.msrb.mxu0 %v2535_v53  ;;  %v2842_v49 = vld [vmem:[%s4024_s17 + $0x288] sm:$0xf]  ;;  %v3185_v50 = vld [vmem:[%s4024_s17 + $0x294] sm:$0xf0]  ;;  %v2587_v53 = vor.u32 %v3121_v45, %v2586_v44  ;;  %v2715_v54 = vor.u32 %v3153_v48, %v2714_v46  ;;  %v2764_v45 = vld [vmem:[%s4024_s17 + $0x1f8] sm:$0xf0] }
  0x88   : > { %1460 = vmatpush.bf16.msrb.mxu1 %v2663_v56  ;;  %v2970_v51 = vld [vmem:[%s4024_s17 + $0x388] sm:$0xf]  ;;  %v3217_v52 = vld [vmem:[%s4024_s17 + $0x394] sm:$0xf0]  ;;  %v2843_v55 = vor.u32 %v3185_v50, %v2842_v49  ;;  %v3195_v46 = vld [vmem:[%s4024_s17 + $0x2ec] sm:$0xf] }
  0x89   : > { %1473 = vmatpush.bf16.msrb.mxu2 %v2791_v57  ;;  %v2570_v56 = vld [vmem:[%s4024_s17 + $0x68] sm:$0xf]  ;;  %v3117_v57 = vld [vmem:[%s4024_s17 + $0x74] sm:$0xf0]  ;;  %v2971_v59 = vor.u32 %v3217_v52, %v2970_v51  ;;  %v3227_v50 = vld [vmem:[%s4024_s17 + $0x3ec] sm:$0xf] }
  0x8a   : > { %1486 = vmatpush.bf16.msrb.mxu3 %v2919_v61  ;;  %v2698_v58 = vld [vmem:[%s4024_s17 + $0x168] sm:$0xf]  ;;  %v3149_v60 = vld [vmem:[%s4024_s17 + $0x174] sm:$0xf0]  ;;  %v2571_v1 = vor.u32 %v3117_v57, %v2570_v56  ;;  %v3020_v51 = vld [vmem:[%s4024_s17 + $0x3f8] sm:$0xf0] }
  0x8b   : > { %1448 = vmatpush.bf16.msrb.mxu0 %v2519_v4  ;;  %v2826_v61 = vld [vmem:[%s4024_s17 + $0x268] sm:$0xf]  ;;  %v3181_v62 = vld [vmem:[%s4024_s17 + $0x274] sm:$0xf0]  ;;  %v2699_v2 = vor.u32 %v3149_v60, %v2698_v58  ;;  %v3127_v56 = vld [vmem:[%s4024_s17 + $0xcc] sm:$0xf] }
  0x8c   : > { %1461 = vmatpush.bf16.msrb.mxu1 %v2647_v8  ;;  %v2954_v63 = vld [vmem:[%s4024_s17 + $0x368] sm:$0xf]  ;;  %v3213_v0 = vld [vmem:[%s4024_s17 + $0x374] sm:$0xf0]  ;;  %v2827_v3 = vor.u32 %v3181_v62, %v2826_v61  ;;  %v2620_v57 = vld [vmem:[%s4024_s17 + $0xd8] sm:$0xf0] }
  0x8d   : > { %1474 = vmatpush.bf16.msrb.mxu2 %v2775_v9  ;;  %v2554_v4 = vld [vmem:[%s4024_s17 + $0x48] sm:$0xf]  ;;  %v3113_v5 = vld [vmem:[%s4024_s17 + $0x54] sm:$0xf0]  ;;  %v2955_v7 = vor.u32 %v3213_v0, %v2954_v63  ;;  %v3159_v58 = vld [vmem:[%s4024_s17 + $0x1cc] sm:$0xf] }
  0x8e   : > { %1487 = vmatpush.bf16.msrb.mxu3 %v2903_v12  ;;  %1449 = vmatmul.bf16.vlgmr.msrb.gmra.mxu0 %v4177_v29  ;;  %v2682_v6 = vld [vmem:[%s4024_s17 + $0x148] sm:$0xf]  ;;  %v3145_v8 = vld [vmem:[%s4024_s17 + $0x154] sm:$0xf0]  ;;  %v2748_v60 = vld [vmem:[%s4024_s17 + $0x1d8] sm:$0xf0] }
  0x8f   : > { %1493 = vmatpush.bf16.msra.mxu0 %v2635_v13  ;;  %1462 = vmatmul.bf16.vlgmr.msrb.gmra.mxu1 %v4181_v34  ;;  %v2810_v9 = vld [vmem:[%s4024_s17 + $0x248] sm:$0xf]  ;;  %v3177_v10 = vld [vmem:[%s4024_s17 + $0x254] sm:$0xf0]  ;;  %v2555_v13 = vor.u32 %v3113_v5, %v2554_v4  ;;  %v3191_v61 = vld [vmem:[%s4024_s17 + $0x2cc] sm:$0xf] }
  0x90   : > { %1506 = vmatpush.bf16.msra.mxu1 %v2763_v14  ;;  %1475 = vmatmul.bf16.vlgmr.msrb.gmra.mxu2 %v4173_v27  ;;  %v2938_v11 = vld [vmem:[%s4024_s17 + $0x348] sm:$0xf]  ;;  %v3209_v12 = vld [vmem:[%s4024_s17 + $0x354] sm:$0xf0]  ;;  %v2683_v14 = vor.u32 %v3145_v8, %v2682_v6  ;;  %v2876_v62 = vld [vmem:[%s4024_s17 + $0x2d8] sm:$0xf0] }
  0x91   : > { %1519 = vmatpush.bf16.msra.mxu2 %v2891_v15  ;;  %1488 = vmatmul.bf16.vlgmr.msrb.gmra.mxu3 %v4175_v28  ;;  %v2811_v15 = vor.u32 %v3177_v10, %v2810_v9  ;;  %v2538_v16 = vld [vmem:[%s4024_s17 + $0x28] sm:$0xf]  ;;  %v3109_v17 = vld [vmem:[%s4024_s17 + $0x34] sm:$0xf0]  ;;  %v3223_v63 = vld [vmem:[%s4024_s17 + $0x3cc] sm:$0xf] }
  0x92   : > { %1532 = vmatpush.bf16.msra.mxu3 %v3019_v19  ;;  %v2666_v18 = vld [vmem:[%s4024_s17 + $0x128] sm:$0xf]  ;;  %v2939_v19 = vor.u32 %v3209_v12, %v2938_v11  ;;  %v3141_v20 = vld [vmem:[%s4024_s17 + $0x134] sm:$0xf0]  ;;  %v3004_v0 = vld [vmem:[%s4024_s17 + $0x3d8] sm:$0xf0] }
  0x93   : > { %1494 = vmatpush.bf16.msra.mxu0 %v2619_v25  ;;  %v2794_v21 = vld [vmem:[%s4024_s17 + $0x228] sm:$0xf]  ;;  %v3173_v22 = vld [vmem:[%s4024_s17 + $0x234] sm:$0xf0]  ;;  %v2539_v25 = vor.u32 %v3109_v17, %v2538_v16  ;;  %v2667_v31 = vor.u32 %v3141_v20, %v2666_v18  ;;  %v3123_v4 = vld [vmem:[%s4024_s17 + $0xac] sm:$0xf] }
  0x94   : > { %1507 = vmatpush.bf16.msra.mxu1 %v2747_v26  ;;  %v2922_v23 = vld [vmem:[%s4024_s17 + $0x328] sm:$0xf]  ;;  %v3205_v24 = vld [vmem:[%s4024_s17 + $0x334] sm:$0xf0]  ;;  %v2795_v32 = vor.u32 %v3173_v22, %v2794_v21  ;;  %v2604_v5 = vld [vmem:[%s4024_s17 + $0xb8] sm:$0xf0] }
  0x95   : > { %1520 = vmatpush.bf16.msra.mxu2 %v2875_v30  ;;  %v2522_v26 = vld [vmem:[%s4024_s17 + $0x8] sm:$0xf]  ;;  %v3105_v30 = vld [vmem:[%s4024_s17 + $0x14] sm:$0xf0]  ;;  %v2923_v37 = vor.u32 %v3205_v24, %v2922_v23  ;;  %v3155_v6 = vld [vmem:[%s4024_s17 + $0x1ac] sm:$0xf] }
  0x96   : > { %1533 = vmatpush.bf16.msra.mxu3 %v3003_v35  ;;  %v2650_v33 = vld [vmem:[%s4024_s17 + $0x108] sm:$0xf]  ;;  %v3137_v35 = vld [vmem:[%s4024_s17 + $0x114] sm:$0xf0]  ;;  %v2523_v44 = vor.u32 %v3105_v30, %v2522_v26  ;;  %v2732_v8 = vld [vmem:[%s4024_s17 + $0x1b8] sm:$0xf0] }
  0x97   : > { %1495 = vmatpush.bf16.msra.mxu0 %v2603_v41  ;;  %v2778_v36 = vld [vmem:[%s4024_s17 + $0x208] sm:$0xf]  ;;  %v3169_v38 = vld [vmem:[%s4024_s17 + $0x214] sm:$0xf0]  ;;  %v3131_v41 = vld [vmem:[%s4024_s17 + $0xec] sm:$0xf]  ;;  %v2651_v48 = vor.u32 %v3137_v35, %v2650_v33 }
  0x98   : > { %1508 = vmatpush.bf16.msra.mxu1 %v2731_v42  ;;  %v2906_v39 = vld [vmem:[%s4024_s17 + $0x308] sm:$0xf]  ;;  %v3201_v40 = vld [vmem:[%s4024_s17 + $0x314] sm:$0xf0]  ;;  %v2636_v42 = vld [vmem:[%s4024_s17 + $0xf8] sm:$0xf0]  ;;  %v2779_v49 = vor.u32 %v3169_v38, %v2778_v36 }
  0x99   : > { %1521 = vmatpush.bf16.msra.mxu2 %v2859_v43  ;;  %v3163_v43 = vld [vmem:[%s4024_s17 + $0x1ec] sm:$0xf]  ;;  %v2907_v52 = vor.u32 %v3201_v40, %v2906_v39  ;;  %v2860_v10 = vld [vmem:[%s4024_s17 + $0x2b8] sm:$0xf0] }
  0x9a   : > { %1534 = vmatpush.bf16.msra.mxu3 %v2987_v47  ;;  %v2892_v47 = vld [vmem:[%s4024_s17 + $0x2f8] sm:$0xf0]  ;;  %v3187_v9 = vld [vmem:[%s4024_s17 + $0x2ac] sm:$0xf] }
  0x9b   : > { %1496 = vmatpush.bf16.msra.mxu0 %v2587_v53  ;;  %v2639_v53 = vor.u32 %v3131_v41, %v2636_v42  ;;  %v3219_v11 = vld [vmem:[%s4024_s17 + $0x3ac] sm:$0xf]  ;;  %v2988_v12 = vld [vmem:[%s4024_s17 + $0x3b8] sm:$0xf0] }
  0x9c   : > { %1509 = vmatpush.bf16.msra.mxu1 %v2715_v54  ;;  %v2767_v54 = vor.u32 %v3163_v43, %v2764_v45  ;;  %v3119_v16 = vld [vmem:[%s4024_s17 + $0x8c] sm:$0xf]  ;;  %v2588_v17 = vld [vmem:[%s4024_s17 + $0x98] sm:$0xf0] }
  0x9d   : > { %1522 = vmatpush.bf16.msra.mxu2 %v2843_v55  ;;  %v2895_v55 = vor.u32 %v3195_v46, %v2892_v47  ;;  %v3151_v18 = vld [vmem:[%s4024_s17 + $0x18c] sm:$0xf]  ;;  %v2716_v20 = vld [vmem:[%s4024_s17 + $0x198] sm:$0xf0] }
  0x9e   : > { %1535 = vmatpush.bf16.msra.mxu3 %v2971_v59  ;;  %v3023_v59 = vor.u32 %v3227_v50, %v3020_v51  ;;  %v3183_v21 = vld [vmem:[%s4024_s17 + $0x28c] sm:$0xf]  ;;  %v2844_v22 = vld [vmem:[%s4024_s17 + $0x298] sm:$0xf0]  ;;  %v2719_v26 = vor.u32 %v3151_v18, %v2716_v20 }
  0x9f   : > { %1497 = vmatpush.bf16.msra.mxu0 %v2571_v1  ;;  %v2623_v1 = vor.u32 %v3127_v56, %v2620_v57  ;;  %v3215_v23 = vld [vmem:[%s4024_s17 + $0x38c] sm:$0xf]  ;;  %v2972_v24 = vld [vmem:[%s4024_s17 + $0x398] sm:$0xf0]  ;;  %v2847_v30 = vor.u32 %v3183_v21, %v2844_v22 }
  0xa0   : > { %1510 = vmatpush.bf16.msra.mxu1 %v2699_v2  ;;  %v2751_v2 = vor.u32 %v3159_v58, %v2748_v60  ;;  %v3147_v33 = vld [vmem:[%s4024_s17 + $0x16c] sm:$0xf]  ;;  %v2975_v35 = vor.u32 %v3215_v23, %v2972_v24  ;;  %v2700_v36 = vld [vmem:[%s4024_s17 + $0x178] sm:$0xf0]  ;;  %v3026_v24 = vld [vmem:[%s4040_s22] sm:$0xf] }
  0xa1   : > { %1523 = vmatpush.bf16.msra.mxu2 %v2827_v3  ;;  %v2879_v3 = vor.u32 %v3191_v61, %v2876_v62  ;;  %v2828_v38 = vld [vmem:[%s4024_s17 + $0x278] sm:$0xf0]  ;;  %v3211_v39 = vld [vmem:[%s4024_s17 + $0x36c] sm:$0xf]  ;;  %v2703_v42 = vor.u32 %v3147_v33, %v2700_v36  ;;  %v3052_v36 = vld [vmem:[%s4047_s11 + $0x10] sm:$0xf0] }
  0xa2   : > { %1536 = vmatpush.bf16.msra.mxu3 %v2955_v7  ;;  %v3007_v7 = vor.u32 %v3223_v63, %v3004_v0  ;;  %v2956_v40 = vld [vmem:[%s4024_s17 + $0x378] sm:$0xf0]  ;;  %v3143_v46 = vld [vmem:[%s4024_s17 + $0x14c] sm:$0xf] }
  0xa3   : > { %1498 = vmatpush.bf16.msra.mxu0 %v2555_v13  ;;  %v2607_v13 = vor.u32 %v3123_v4, %v2604_v5  ;;  %v2556_v45 = vld [vmem:[%s4024_s17 + $0x58] sm:$0xf0]  ;;  %v2959_v47 = vor.u32 %v3211_v39, %v2956_v40  ;;  %v3207_v51 = vld [vmem:[%s4024_s17 + $0x34c] sm:$0xf]  ;;  %v3236_v39 = vld [vmem:[%s4047_s11 + $0xc] sm:$0xf0] }
  0xa4   : > { %1511 = vmatpush.bf16.msra.mxu1 %v2683_v14  ;;  %v2735_v14 = vor.u32 %v3155_v6, %v2732_v8  ;;  %v2812_v50 = vld [vmem:[%s4024_s17 + $0x258] sm:$0xf0]  ;;  %v3107_v56 = vld [vmem:[%s4024_s17 + $0x2c] sm:$0xf] }
  0xa5   : > { %1524 = vmatpush.bf16.msra.mxu2 %v2811_v15  ;;  %v2863_v15 = vor.u32 %v3187_v9, %v2860_v10  ;;  %v2540_v57 = vld [vmem:[%s4024_s17 + $0x38] sm:$0xf0]  ;;  %v3139_v58 = vld [vmem:[%s4024_s17 + $0x12c] sm:$0xf] }
  0xa6   : > { %1537 = vmatpush.bf16.msra.mxu3 %v2939_v19  ;;  %v2991_v19 = vor.u32 %v3219_v11, %v2988_v12  ;;  %v2668_v60 = vld [vmem:[%s4024_s17 + $0x138] sm:$0xf0]  ;;  %v3171_v61 = vld [vmem:[%s4024_s17 + $0x22c] sm:$0xf] }
  0xa7   : > { %1499 = vmatpush.bf16.msra.mxu0 %v2539_v25  ;;  %v2591_v25 = vor.u32 %v3119_v16, %v2588_v17  ;;  %v2796_v62 = vld [vmem:[%s4024_s17 + $0x238] sm:$0xf0]  ;;  %v3203_v63 = vld [vmem:[%s4024_s17 + $0x32c] sm:$0xf]  ;;  %v3231_v16 = vld [vmem:[%s4040_s22 + $0xc] sm:$0xf] }
  0xa8   : > { %1512 = vmatpush.bf16.msra.mxu1 %v2667_v31  ;;  %v3115_v31 = vld [vmem:[%s4024_s17 + $0x6c] sm:$0xf]  ;;  %v2924_v0 = vld [vmem:[%s4024_s17 + $0x338] sm:$0xf0]  ;;  %v2799_v4 = vor.u32 %v3171_v61, %v2796_v62  ;;  %v3036_v17 = vld [vmem:[%s4040_s22 + $0x18] sm:$0xf0] }
  0xa9   : > { %1525 = vmatpush.bf16.msra.mxu2 %v2795_v32  ;;  %v2572_v32 = vld [vmem:[%s4024_s17 + $0x78] sm:$0xf0]  ;;  %v3135_v6 = vld [vmem:[%s4024_s17 + $0x10c] sm:$0xf]  ;;  %v2927_v8 = vor.u32 %v3203_v63, %v2924_v0 }
  0xaa   : > { %1538 = vmatpush.bf16.msra.mxu3 %v2923_v37  ;;  %v3179_v37 = vld [vmem:[%s4024_s17 + $0x26c] sm:$0xf]  ;;  %v2575_v41 = vor.u32 %v3115_v31, %v2572_v32  ;;  %v2524_v5 = vld [vmem:[%s4024_s17 + $0x18] sm:$0xf0]  ;;  %v3237_v31 = vld [vmem:[%s4047_s11 + $0x14] sm:$0xf0] }
  0xab   : > { %1500 = vmatpush.bf16.msra.mxu0 %v2523_v44  ;;  %v2831_v43 = vor.u32 %v3179_v37, %v2828_v38  ;;  %v3111_v44 = vld [vmem:[%s4024_s17 + $0x4c] sm:$0xf]  ;;  %v2780_v10 = vld [vmem:[%s4024_s17 + $0x218] sm:$0xf0]  ;;  %v3050_v38 = vld [vmem:[%s4047_s11] sm:$0xf] }
  0xac   : > { %1513 = vmatpush.bf16.msra.mxu1 %v2651_v48  ;;  %v2684_v48 = vld [vmem:[%s4024_s17 + $0x158] sm:$0xf0]  ;;  %v3167_v9 = vld [vmem:[%s4024_s17 + $0x20c] sm:$0xf] }
  0xad   : > { %1526 = vmatpush.bf16.msra.mxu2 %v2779_v49  ;;  %v3175_v49 = vld [vmem:[%s4024_s17 + $0x24c] sm:$0xf]  ;;  %v2908_v12 = vld [vmem:[%s4024_s17 + $0x318] sm:$0xf0] }
  0xae   : > { %1539 = vmatpush.bf16.msra.mxu3 %v2907_v52  ;;  %1501 = vmatmul.bf16.vlgmr.msra.gmra.mxu0 %v4177_v29  ;;  %v2940_v52 = vld [vmem:[%s4024_s17 + $0x358] sm:$0xf0]  ;;  %v3199_v11 = vld [vmem:[%s4024_s17 + $0x30c] sm:$0xf] }
  0xaf   : > { %1545 = vmatpush.bf16.msrb.mxu0 %v2639_v53  ;;  %1514 = vmatmul.bf16.vlgmr.msra.gmra.mxu1 %v4181_v34  ;;  %v2559_v53 = vor.u32 %v3111_v44, %v2556_v45  ;;  %v3230_v20 = vld [vmem:[%s4040_s22 + $0x4] sm:$0xf]  ;;  %v2911_v21 = vor.u32 %v3199_v11, %v2908_v12  ;;  %v3028_v23 = vld [vmem:[%s4040_s22 + $0x10] sm:$0xf0]  ;;  %v3051_v44 = vor.u32 %v3236_v39, %v3050_v38 }
  0xb0   : > { %1558 = vmatpush.bf16.msrb.mxu1 %v2767_v54  ;;  %1527 = vmatmul.bf16.vlgmr.msra.gmra.mxu2 %v4173_v27  ;;  %v2687_v54 = vor.u32 %v3143_v46, %v2684_v48  ;;  %v3235_v32 = vld [vmem:[%s4047_s11 + $0xc] sm:$0xf]  ;;  %v3060_v33 = vld [vmem:[%s4047_s11 + $0x18] sm:$0xf0]  ;;  %v3031_v37 = vor.u32 %v3230_v20, %v3028_v23 }
  0xb1   : > { %1571 = vmatpush.bf16.msrb.mxu2 %v2895_v55  ;;  %1540 = vmatmul.bf16.vlgmr.msra.gmra.mxu3 %v4175_v28  ;;  %v2815_v55 = vor.u32 %v3175_v49, %v2812_v50 }
  0xb2   : > { %1584 = vmatpush.bf16.msrb.mxu3 %v3023_v59  ;;  %v2943_v59 = vor.u32 %v3207_v51, %v2940_v52 }
  0xb3   : > { %1546 = vmatpush.bf16.msrb.mxu0 %v2623_v1  ;;  %v2543_v1 = vor.u32 %v3107_v56, %v2540_v57 }
  0xb4   : > { %1559 = vmatpush.bf16.msrb.mxu1 %v2751_v2  ;;  %v3103_v2 = vld [vmem:[%s4024_s17 + $0xc] sm:$0xf] }
  0xb5   : > { %1572 = vmatpush.bf16.msrb.mxu2 %v2879_v3  ;;  %v2671_v3 = vor.u32 %v3139_v58, %v2668_v60 }
  0xb6   : > { %1585 = vmatpush.bf16.msrb.mxu3 %v3007_v7  ;;  %v2652_v7 = vld [vmem:[%s4024_s17 + $0x118] sm:$0xf0] }
  0xb7   : > { %1547 = vmatpush.bf16.msrb.mxu0 %v2607_v13  ;;  %v3034_v13 = vld [vmem:[%s4040_s22 + $0x8] sm:$0xf]  ;;  %v2655_v18 = vor.u32 %v3135_v6, %v2652_v7 }
  0xb8   : > { %1560 = vmatpush.bf16.msrb.mxu1 %v2735_v14  ;;  %v3233_v14 = vld [vmem:[%s4040_s22 + $0x14] sm:$0xf0] }
  0xb9   : > { %1573 = vmatpush.bf16.msrb.mxu2 %v2863_v15  ;;  %v2527_v15 = vor.u32 %v3103_v2, %v2524_v5  ;;  %v3035_v22 = vor.u32 %v3233_v14, %v3034_v13 }
  0xba   : > { %1586 = vmatpush.bf16.msrb.mxu3 %v2991_v19  ;;  %v2783_v19 = vor.u32 %v3167_v9, %v2780_v10 }
  0xbb   : > { %1548 = vmatpush.bf16.msrb.mxu0 %v2591_v25  ;;  %v3232_v25 = vld [vmem:[%s4040_s22 + $0xc] sm:$0xf0] }
  0xbc   : > { %1561 = vmatpush.bf16.msrb.mxu1 %v2719_v26  ;;  %v3039_v26 = vor.u32 %v3231_v16, %v3036_v17  ;;  %v3027_v40 = vor.u32 %v3232_v25, %v3026_v24  ;;  %v1613_v24 = vld [vmem:[%s483_s19] sm:$0xf] }
  0xbd   : > { %1574 = vmatpush.bf16.msrb.mxu2 %v2847_v30  ;;  %v3058_v30 = vld [vmem:[%s4047_s11 + $0x8] sm:$0xf]  ;;  %v1615_v25 = vperm.slane %v1613_v24, 0 }
  0xbe   : > { %1587 = vmatpush.bf16.msrb.mxu3 %v2975_v35  ;;  %v3234_v35 = vld [vmem:[%s4047_s11 + $0x4] sm:$0xf] }
  0xbf   : > { %1549 = vmatpush.bf16.msrb.mxu0 %v2575_v41  ;;  %v3059_v41 = vor.u32 %v3237_v31, %v3058_v30 }
  0xc0   : > { %1562 = vmatpush.bf16.msrb.mxu1 %v2703_v42  ;;  %v3063_v42 = vor.u32 %v3235_v32, %v3060_v33 }
  0xc1   : > { %1575 = vmatpush.bf16.msrb.mxu2 %v2831_v43  ;;  %v3055_v43 = vor.u32 %v3234_v35, %v3052_v36 }
  0xc2   : > { %1588 = vmatpush.bf16.msrb.mxu3 %v2959_v47 }
  0xc3   : > { %1550 = vmatpush.bf16.msrb.mxu0 %v2559_v53 }
  0xc4   : > { %1563 = vmatpush.bf16.msrb.mxu1 %v2687_v54 }
  0xc5   : > { %1576 = vmatpush.bf16.msrb.mxu2 %v2815_v55 }
  0xc6   : > { %1589 = vmatpush.bf16.msrb.mxu3 %v2943_v59 }
  0xc7   : > { %1551 = vmatpush.bf16.msrb.mxu0 %v2543_v1 }
  0xc8   : > { %1564 = vmatpush.bf16.msrb.mxu1 %v2671_v3 }
  0xc9   : > { %1577 = vmatpush.bf16.msrb.mxu2 %v2799_v4 }
  0xca   : > { %1590 = vmatpush.bf16.msrb.mxu3 %v2927_v8 }
  0xcb   : > { %1552 = vmatpush.bf16.msrb.mxu0 %v2527_v15 }
  0xcc   : > { %1565 = vmatpush.bf16.msrb.mxu1 %v2655_v18 }
  0xcd   : > { %1578 = vmatpush.bf16.msrb.mxu2 %v2783_v19 }
  0xce   : > { %1591 = vmatpush.bf16.msrb.mxu3 %v2911_v21  ;;  %1553 = vmatmul.bf16.vlgmr.msrb.gmra.mxu0 %v4177_v29  ;;  %v600_v29 = vld [vmem:[%s4827_s27] sm:$0x1] }
  0xcf   : > { %1566 = vmatmul.bf16.vlgmr.msrb.gmra.mxu1 %v4181_v34  ;;  %1654 = vmatpush.bf16.msra.mxu0 %v3027_v40  ;;  %v1617_v40 = vperm.slane %v1613_v24, 2 }
  0xd0   : > { %1579 = vmatmul.bf16.vlgmr.msrb.gmra.mxu2 %v4173_v27  ;;  %1667 = vmatpush.bf16.msra.mxu1 %v3031_v37  ;;  %v4369_v27 = vld [vmem:[%s463_s20] sm:$0xf] }
  0xd1   : > { %1680 = vmatpush.bf16.msra.mxu2 %v3035_v22  ;;  %1592 = vmatmul.bf16.vlgmr.msrb.gmra.mxu3 %v4175_v28  ;;  %v731_v28 = vperm.slane %v4369_v27, 0  ;;  %v732_v56 = vperm.slane %v4369_v27, 1  ;;  %v733_v5 = vperm.slane %v4369_v27, 2  ;;  %v734_v37 = vperm.slane %v4369_v27, 3 }
  0xd2   : > { %1693 = vmatpush.bf16.msra.mxu3 %v3039_v26  ;;  %v1616_v26 = vperm.slane %v1613_v24, 1 }
  0xd3   : > { %1828 = vmatpush.bf16.msrb.mxu0 %v3051_v44 }
  0xd4   : > { %1841 = vmatpush.bf16.msrb.mxu1 %v3055_v43 }
  0xd5   : > { %1854 = vmatpush.bf16.msrb.mxu2 %v3059_v41 }
  0xd6   : > { %1867 = vmatpush.bf16.msrb.mxu3 %v3063_v42  ;;  %v1618_v42 = vperm.slane %v1613_v24, 3 }
  0xde   : > { %3040 = vmatmul.msk.bf16.vlgmr.msra.gmra.mxu0 %vm1643_vm0, %v600_v29 }
  0xdf   : > { %3041 = vmatmul.msk.bf16.vlgmr.msra.gmra.mxu1 %vm1643_vm0, %v600_v29 }
  0xe0   : > { %3042 = vmatmul.msk.bf16.vlgmr.msra.gmra.mxu2 %vm1643_vm0, %v600_v29 }
  0xe1   : > { %3043 = vmatmul.msk.bf16.vlgmr.msra.gmra.mxu3 %vm1643_vm0, %v600_v29 }
  0xee   : > { %3064 = vmatmul.msk.bf16.vlgmr.msrb.gmra.mxu0 %vm1643_vm0, %v600_v29 }
  0xef   : > { %3065 = vmatmul.msk.bf16.vlgmr.msrb.gmra.mxu1 %vm1643_vm0, %v600_v29 }
  0xf0   : > { %3066 = vmatmul.msk.bf16.vlgmr.msrb.gmra.mxu2 %vm1643_vm0, %v600_v29 }
  0xf1   : > { %3067 = vmatmul.msk.bf16.vlgmr.msrb.gmra.mxu3 %vm1643_vm0, %v600_v29 }
  0xf5   : > { %v1398_v34 = vpop.f32.mrf.mxu0 }
  0xf6   : > { %v1399_v45 = vadd.f32 %v1398_v34, %v731_v28  ;;  %v1411_v46 = vpop.f32.mrf.mxu1 }
  0xf8   : > { %v1412_v47 = vadd.f32 %v1411_v46, %v1399_v45 }
  0xf9   : > { %v1424_v48 = vpop.f32.mrf.mxu2 }
  0xfa   : > { %v1425_v49 = vadd.f32 %v1424_v48, %v1412_v47  ;;  %v1437_v50 = vpop.f32.mrf.mxu3 }
  0xfc   : > { %v4372_v51 = vadd.f32 %v1437_v50, %v1425_v49 }
  0xfd   : > { %v1400_v52 = vpop.f32.mrf.mxu0 }
  0xfe   : > { %v1413_v53 = vpop.f32.mrf.mxu1  ;;  %vm1597_vm5 = vcmp.ge.f32.partialorder %v4372_v51, 0.0 }
 0x101   : > { %v1426_v54 = vpop.f32.mrf.mxu2 }
 0x102   : > { %v1439_v55 = vpop.f32.mrf.mxu3 }
 0x10b   : > { %v1450_v57 = vpop.f32.mrf.mxu0 }
 0x10c   : > { %v1451_v58 = vadd.f32 %v1450_v57, %v732_v56  ;;  %v1463_v59 = vpop.f32.mrf.mxu1 }
 0x10e   : > { %v1464_v60 = vadd.f32 %v1463_v59, %v1451_v58 }
 0x113   : > { %v1476_v61 = vpop.f32.mrf.mxu2  ;;  %v1452_v1 = vpop.f32.mrf.mxu0 }
 0x114   : > { %v1477_v62 = vadd.f32 %v1476_v61, %v1464_v60  ;;  %v1489_v63 = vpop.f32.mrf.mxu3  ;;  %v1465_v2 = vpop.f32.mrf.mxu1 }
 0x116   : > { %v4375_v0 = vadd.f32 %v1489_v63, %v1477_v62  ;;  %v4387_v62 = vld [vmem:[%s503_s25] sm:$0xf] }
 0x118   : > { %vm1598_vm6 = vcmp.ge.f32.partialorder %v4375_v0, 0.0 }
 0x11b   : > { %v1478_v3 = vpop.f32.mrf.mxu2 }
 0x11c   : > { %v1491_v4 = vpop.f32.mrf.mxu3 }
 0x11d   : > { %v1601_v4 = vmul.f32 0.2, %v4372_v51 }
 0x12b   : > { %v1502_v6 = vpop.f32.mrf.mxu0 }
 0x12c   : > { %v1503_v7 = vadd.f32 %v1502_v6, %v733_v5  ;;  %v1515_v8 = vpop.f32.mrf.mxu1  ;;  %v1602_v5 = vmul.f32 0.2, %v4375_v0  ;;  %v1794_v6 = vperm.slane %v4387_v62, 1 }
 0x12e   : > { %v1516_v9 = vadd.f32 %v1515_v8, %v1503_v7 }
 0x133   : > { %v1528_v10 = vpop.f32.mrf.mxu2  ;;  %v1504_v14 = vpop.f32.mrf.mxu0 }
 0x134   : > { %v1529_v11 = vadd.f32 %v1528_v10, %v1516_v9  ;;  %v1541_v12 = vpop.f32.mrf.mxu3  ;;  %v1517_v15 = vpop.f32.mrf.mxu1  ;;  %v1793_v9 = vperm.slane %v4387_v62, 0  ;;  %v4407_v14 = vsel %vm1598_vm6, %v4375_v0, %v1602_v5 }
 0x136   : > { %v4378_v13 = vadd.f32 %v1541_v12, %v1529_v11  ;;  %v4404_v12 = vsel %vm1597_vm5, %v4372_v51, %v1601_v4 }
 0x138   : > { %v1603_v7 = vmul.f32 0.2, %v4378_v13  ;;  %vm1599_vm7 = vcmp.ge.f32.partialorder %v4378_v13, 0.0 }
 0x13b   : > { %v1530_v16 = vpop.f32.mrf.mxu2 }
 0x13c   : > { %v1543_v17 = vpop.f32.mrf.mxu3 }
 0x14b   : > { %v1554_v18 = vpop.f32.mrf.mxu0 }
 0x14c   : > { %v1567_v19 = vpop.f32.mrf.mxu1  ;;  %v1555_v29 = vadd.f32 %v1554_v18, %v734_v37  ;;  %v4414_v18 = vsel %vm1599_vm7, %v4378_v13, %v1603_v7 }
 0x14e   : > { %v1568_v50 = vadd.f32 %v1567_v19, %v1555_v29 }
 0x153   : > { %v1580_v20 = vpop.f32.mrf.mxu2  ;;  %v1556_v22 = vpop.f32.mrf.mxu0 }
 0x154   : > { %v1593_v21 = vpop.f32.mrf.mxu3  ;;  %v1569_v23 = vpop.f32.mrf.mxu1  ;;  %v1581_v59 = vadd.f32 %v1580_v20, %v1568_v50 }
 0x155   : > { %v1795_v23 = vperm.slane %v4387_v62, 2 }
 0x156   : > { %v4399_v8 = vadd.f32 %v1593_v21, %v1581_v59 }
 0x158   : > { %v4417_v19 = vmul.f32 0.2, %v4399_v8  ;;  %vm1600_vm15 = vcmp.ge.f32.partialorder %v4399_v8, 0.0 }
 0x15b   : > { %v1582_v30 = vpop.f32.mrf.mxu2  ;;  %v1656_v32 = vpop.f32.mrf.mxu0 }
 0x15c   : > { %v1595_v31 = vpop.f32.mrf.mxu3  ;;  %v1657_v33 = vadd.f32 %v1656_v32, %v1615_v25  ;;  %v1669_v35 = vpop.f32.mrf.mxu1 }
 0x15d   : > { %v1670_v36 = vadd.f32 %v1669_v35, %v1616_v26 }
 0x15e   : > { %vm1699_vm1 = vcmp.ge.f32.partialorder %v1657_v33, 0.0  ;;  %v1703_v38 = vmul.f32 0.2, %v1657_v33 }
 0x15f   : > { %vm1700_vm2 = vcmp.ge.f32.partialorder %v1670_v36, 0.0  ;;  %v1704_v39 = vmul.f32 0.2, %v1670_v36 }
 0x160   : > { %v1707_v41 = vsel %vm1699_vm1, %v1657_v33, %v1703_v38  ;;  %vm1900_vm1 = vcmask 1041408  }
 0x161   : > { %v3044_v43 = vmul.f32 -1.442695, %v1707_v41  ;;  %v1708_v44 = vsel %vm1700_vm2, %v1670_v36, %v1704_v39  ;;  %v1796_v36 = vperm.slane %v4387_v62, 3 }
 0x162   : > { %v3045_v28 = vmul.f32 -1.442695, %v1708_v44 }
 0x163   : > { %v1682_v34 = vpop.f32.mrf.mxu2  ;;  %3455 = vpow2.f32 %v3044_v43  ;;  %v1658_v47 = vpop.f32.mrf.mxu0 }
 0x164   : > { %v1683_v45 = vadd.f32 %v1682_v34, %v1617_v40  ;;  %v1695_v46 = vpop.f32.mrf.mxu3  ;;  %3457 = vpow2.f32 %v3045_v28  ;;  %v1671_v49 = vpop.f32.mrf.mxu1 }
 0x165   : > { %v1696_v48 = vadd.f32 %v1695_v46, %v1618_v42 }
 0x166   : > { %vm1701_vm3 = vcmp.ge.f32.partialorder %v1683_v45, 0.0  ;;  %v1705_v27 = vmul.f32 0.2, %v1683_v45 }
 0x167   : > { %vm1702_vm4 = vcmp.ge.f32.partialorder %v1696_v48, 0.0  ;;  %v1706_v52 = vmul.f32 0.2, %v1696_v48 }
 0x168   : > { %v1709_v53 = vsel %vm1701_vm3, %v1683_v45, %v1705_v27 }
 0x169   : > { %v3046_v54 = vmul.f32 -1.442695, %v1709_v53  ;;  %v1710_v55 = vsel %vm1702_vm4, %v1696_v48, %v1706_v52  ;;  %v3456_v56 = vpop.eup %3455 }
 0x16a   : > { %v3047_v57 = vmul.f32 -1.442695, %v1710_v55  ;;  %v3458_v58 = vpop.eup %3457  ;;  %v4383_v60 = vadd.f32 1.0, %v3456_v56 }
 0x16b   : > { %3459 = vpow2.f32 %v3046_v54  ;;  %v1684_v61 = vpop.f32.mrf.mxu2  ;;  %v4389_v63 = vadd.f32 1.0, %v3458_v58  ;;  %v1830_v2 = vpop.f32.mrf.mxu0 }
 0x16c   : > { %3461 = vpow2.f32 %v3047_v57  ;;  %v1697_v1 = vpop.f32.mrf.mxu3  ;;  %v1843_v3 = vpop.f32.mrf.mxu1  ;;  %v1831_v22 = vadd.f32 %v1830_v2, %v1793_v9  ;;  %v1736_v25 = vand.u32 2147483647, %v4383_v60  ;;  %v1738_v31 = vand.u32 2147483648, %v4383_v60 }
 0x16d   : > { %3463 = vrcp.f32 %v4383_v60  ;;  %v1844_v16 = vadd.f32 %v1843_v3, %v1794_v6  ;;  %v1751_v30 = vand.u32 2147483647, %v4389_v63  ;;  %v1753_v33 = vand.u32 2147483648, %v4389_v63 }
 0x16e   : > { %3465 = vrcp.f32 %v4389_v63  ;;  %vm1732_vm8 = vweird.f32 %v4383_v60  ;;  %vm1747_vm9 = vweird.f32 %v4389_v63  ;;  %v1877_v38 = vmul.f32 0.2, %v1831_v22 }
 0x16f   : > { %v1878_v35 = vmul.f32 0.2, %v1844_v16  ;;  %vm1874_vm10 = vcmp.ge.f32.partialorder %v1844_v16, 0.0  ;;  %vm4435_vm11 = vcmp.eq.f32.partialorder %v1736_v25, 8.507059e+37  ;;  %vm1873_vm12 = vcmp.ge.f32.partialorder %v1831_v22, 0.0 }
 0x170   : > { %vm4439_vm14 = vcmp.eq.f32.partialorder %v1751_v30, 8.507059e+37  ;;  %v1739_v44 = vor.u32 1.1754944e-38, %v1738_v31  ;;  %v1754_v28 = vor.u32 1.1754944e-38, %v1753_v33  ;;  %v1881_v49 = vsel %vm1873_vm12, %v1831_v22, %v1877_v38 }
 0x171   : > { %v3460_v10 = vpop.eup %3459  ;;  %v1882_v34 = vsel %vm1874_vm10, %v1844_v16, %v1878_v35 }
 0x172   : > { %v3462_v11 = vpop.eup %3461  ;;  %v4409_v15 = vadd.f32 1.0, %v3460_v10 }
 0x173   : > { %v4411_v17 = vpop.eup %3463  ;;  %v4419_v20 = vadd.f32 1.0, %v3462_v11  ;;  %v1856_v21 = vpop.f32.mrf.mxu2 }
 0x174   : > { %v3466_v51 = vpop.eup %3465  ;;  %v1728_v0 = vmul.f32 %v4411_v17, %v4383_v60  ;;  %3467 = vrcp.f32 %v4409_v15  ;;  %v1869_v24 = vpop.f32.mrf.mxu3  ;;  %v1766_v39 = vand.u32 2147483647, %v4409_v15  ;;  %vm1733_vm0 = vweird.f32 %v4411_v17 }
 0x175   : > { %v1832_v13 = vpop.f32.mrf.mxu0  ;;  %v1743_v26 = vmul.f32 %v3466_v51, %v4389_v63  ;;  %3469 = vrcp.f32 %v4419_v20  ;;  %v1845_v32 = vpop.f32.mrf.mxu1  ;;  %vm1748_vm13 = vweird.f32 %v3466_v51  ;;  %vm1762_vm2 = vweird.f32 %v4409_v15  ;;  %vm1734_vm5 = vmor %vm1732_vm8, %vm1733_vm0 }
 0x176   : > { %v1729_v40 = vsub.f32 1.0, %v1728_v0  ;;  %vm1749_vm3 = vmor %vm1747_vm9, %vm1748_vm13  ;;  %vm4453_vm4 = vcmp.eq.f32.partialorder %v1766_v39, 8.507059e+37  ;;  %v1768_v53 = vand.u32 2147483648, %v4409_v15  ;;  %v1857_v58 = vadd.f32 %v1856_v21, %v1795_v23 }
 0x177   : > { %v1744_v37 = vsub.f32 1.0, %v1743_v26  ;;  %v1783_v59 = vand.u32 2147483648, %v4419_v20  ;;  %v1870_v63 = vadd.f32 %v1869_v24, %v1796_v36  ;;  %v1781_v6 = vand.u32 2147483647, %v4419_v20 }
 0x178   : > { %v1730_v45 = vmul.f32 %v4411_v17, %v1729_v40  ;;  %v1769_v10 = vor.u32 1.1754944e-38, %v1768_v53  ;;  %vm1777_vm8 = vweird.f32 %v4419_v20  ;;  %vm1875_vm10 = vcmp.ge.f32.partialorder %v1857_v58, 0.0 }
 0x179   : > { %v1745_v42 = vmul.f32 %v3466_v51, %v1744_v37  ;;  %v1879_v11 = vmul.f32 0.2, %v1857_v58  ;;  %v1784_v16 = vor.u32 1.1754944e-38, %v1783_v59  ;;  %v1880_v22 = vmul.f32 0.2, %v1870_v63 }
 0x17a   : > { %v3468_v29 = vpop.eup %3467  ;;  %v1731_v54 = vadd.f32 %v4411_v17, %v1730_v45  ;;  %vm1782_vm12 = vcmp.eq.f32.partialorder %v1781_v6, 8.507059e+37  ;;  %vm1876_vm13 = vcmp.ge.f32.partialorder %v1870_v63, 0.0  ;;  %vm1904_vm0 = vcmask 1043456  }
 0x17b   : > { %v3470_v46 = vpop.eup %3469  ;;  %v1758_v47 = vmul.f32 %v3468_v29, %v4409_v15  ;;  %v1746_v48 = vadd.f32 %v3466_v51, %v1745_v42  ;;  %v1858_v27 = vpop.f32.mrf.mxu2  ;;  %vm1763_vm6 = vweird.f32 %v3468_v29  ;;  %v1608_v15 = vsel %vm1600_vm15, %v4399_v8, %v4417_v19 }
 0x17c   : > { %v1773_v50 = vmul.f32 %v3470_v46, %v4419_v20  ;;  %v1871_v55 = vpop.f32.mrf.mxu3  ;;  %v1735_v1 = vsel %vm1734_vm5, %v4411_v17, %v1731_v54  ;;  %vm1778_vm7 = vweird.f32 %v3470_v46  ;;  %vm1764_vm9 = vmor %vm1762_vm2, %vm1763_vm6  ;;  %v1883_v25 = vsel %vm1875_vm10, %v1857_v58, %v1879_v11 }
 0x17d   : > { %v1750_v56 = vsel %vm1749_vm3, %v3466_v51, %v1746_v48  ;;  %v1759_v57 = vsub.f32 1.0, %v1758_v47  ;;  %v1740_v4 = vsel %vm4435_vm11, %v1739_v44, %v1735_v1  ;;  %vm1779_vm11 = vmor %vm1777_vm8, %vm1778_vm7  ;;  %v1884_v30 = vsel %vm1876_vm13, %v1870_v63, %v1880_v22 }
 0x17e   : > { %v1755_v61 = vsel %vm4439_vm14, %v1754_v28, %v1750_v56  ;;  %v1774_v62 = vsub.f32 1.0, %v1773_v50  ;;  %v1885_v60 = vmul.f32 %v1740_v4, %v4404_v12  ;;  %vm1902_vm14 = vcmask 1045508  }
 0x17f   : > { %v1886_v2 = vmul.f32 %v1755_v61, %v4407_v14  ;;  %v1760_v3 = vmul.f32 %v3468_v29, %v1759_v57 }
 0x180   : > { %v1775_v5 = vmul.f32 %v3470_v46, %v1774_v62  ;;  %v1889_v51 = vadd.f32 %v1885_v60, %v1881_v49 }
 0x181   : > { %v1890_v7 = vadd.f32 %v1886_v2, %v1882_v34  ;;  %v1761_v9 = vadd.f32 %v3468_v29, %v1760_v3 }
 0x182   : > { %v1776_v14 = vadd.f32 %v3470_v46, %v1775_v5 }
 0x183   : > { %v1897_v17 = vrot.slane %v1890_v7, 6  ;;  %v1765_v21 = vsel %vm1764_vm9, %v3468_v29, %v1761_v9 }
 0x184   : > { %v1770_v12 = vsel %vm4453_vm4, %v1769_v10, %v1765_v21  ;;  %v1780_v0 = vsel %vm1779_vm11, %v3470_v46, %v1776_v14 }
 0x185   : > { %v1887_v20 = vmul.f32 %v1770_v12, %v4414_v18  ;;  %v1785_v23 = vsel %vm1782_vm12, %v1784_v16, %v1780_v0  ;;  %v1901_v24 = vsel %vm1900_vm1, %v1889_v51, %v1897_v17 }
 0x186   : > { %v1888_v13 = vmul.f32 %v1785_v23, %v1608_v15 }
 0x187   : > { %v1891_v26 = vadd.f32 %v1887_v20, %v1883_v25 }
 0x188   : > { %v1892_v31 = vadd.f32 %v1888_v13, %v1884_v30 }
 0x189   : > { %v1898_v32 = vrot.slane %v1891_v26, 4 }
 0x18a   : > { %v1899_v33 = vrot.slane %v1892_v31, 2  ;;  %1914 = sbr.rel (!%p3942_p9) target bundleno = 547 (0x223), region = 80 }
 0x18c   : > { %v1903_v35 = vsel %vm1902_vm14, %v1898_v32, %v1899_v33 }
 0x18d   : > { %v1905_v36 = vsel %vm1904_vm0, %v1901_v24, %v1903_v35 }
 0x18e   : > { %1907 = vst [vmem:[%s4485_s16] sm:$0xff] %v1905_v36 }
 0x18f   : > { %s4857_s29 = smov (!%p1917_p2, %s1916_s29), 4 }
 0x190   : > { %s4497_s18 = sshll.u32 %s4857_s29, 1 }
 0x191   : > { %p3074_p3 = scmp.eq.s32.totalorder %s4497_s18, 0 }
 0x192   : > { %p1929_p4 = scmp.lt.u32.totalorder (!%p3074_p3), %s4497_s18, 8 }
 0x193   : > { %1928 = sbr.rel (%p3074_p3) target bundleno = 547 (0x223), region = 84 }
 0x198   : > { %1932 = sbr.rel (%p1929_p4) target bundleno = 538 (0x21a), region = 88  ;;  %s4502_s20 = sand.u32 (!%p1929_p4), 7, %s4497_s18  }
 0x199   : > { %p1949_p5 = scmp.eq.s32.totalorder (!%p1929_p4), %s4502_s20, 0  ;;  %p3075_p6 = scmp.ne.s32.totalorder (!%p1929_p4), %s4502_s20, 0 }
 0x19d   : > { %1952 = sbr.rel (%p3075_p6) target bundleno = 473 (0x1d9), region = 103  ;;  %s1953_s30 = sshrl.u32 (!%p3075_p6), %s4497_s18, 3 }
 0x19e   : > { %s4509_s21 = sshrl.u32 (!%p3075_p6), %s1953_s30, 5 }
 0x19f   : > { %p3076_p7 = scmp.le.s32.totalorder (!%p3075_p6), %s4509_s21, 0 }
 0x1a2   : > { %2340 = sbr.rel (%p3076_p7) target bundleno = 456 (0x1c8), region = 237  ;;  %s4836_s22 = smov (!%p3076_p7), %s4495_s4 }
 0x1a3   : > { %s4837_s24 = smov (!%p3076_p7), %s4485_s16  ;;  %s4518_s19 = smov (!%p3076_p7), 0  }
 0x1a4   : > { %s4520_s11 = smov (!%p3076_p7), 0  }
 0x1a7 LB: >> { %v1964_v8 = vld [vmem:[%s3785_s24] sm:$0xff]  ;;  %v1966_v18 = vld [vmem:[%s3785_s24 + $0x8] sm:$0xff]  ;;  %v1968_v19 = vld [vmem:[%s3785_s24 + $0x10] sm:$0xff]  ;;  %s2028_s3 = sadd.s32 1, %s3789_s19  ;;  %s1958_s11 = sadd.s32 1, %s3793_s11   ;;  %s3793_s11 = sphi %s4520_s11, %s1958_s11   ;;  %s3789_s19 = sphi %s4518_s19, %s4840_s19   ;;  %s3785_s24 = sphi %s4837_s24, %s4839_s24   ;;  %s3781_s22 = sphi %s4836_s22, %s4838_s22  }
 0x1a8   : >> { %1965 = vst [vmem:[%s3781_s22] sm:$0xff] %v1964_v8  ;;  %v1970_v37 = vld [vmem:[%s3785_s24 + $0x18] sm:$0xff]  ;;  %p2029_p8 = scmp.ge.s32.totalorder %s2028_s3, %s4509_s21  ;;  %v1972_v38 = vld [vmem:[%s3785_s24 + $0x20] sm:$0xff]  ;;  %v1974_v39 = vld [vmem:[%s3785_s24 + $0x28] sm:$0xff]  ;;  %p1957_p9 = scmp.ge.s32.totalorder %s1958_s11, %s4509_s21 }
 0x1a9   : >> { %1967 = vst [vmem:[%s3781_s22 + $0x8] sm:$0xff] %v1966_v18  ;;  %v1976_v40 = vld [vmem:[%s3785_s24 + $0x30] sm:$0xff]  ;;  %v1978_v41 = vld [vmem:[%s3785_s24 + $0x38] sm:$0xff]  ;;  %v1980_v42 = vld [vmem:[%s3785_s24 + $0x40] sm:$0xff] }
 0x1aa   : >> { %1969 = vst [vmem:[%s3781_s22 + $0x10] sm:$0xff] %v1968_v19  ;;  %s4859_s3 = smov (%p2029_p8, %s2028_s3), 0  ;;  %v1982_v43 = vld [vmem:[%s3785_s24 + $0x48] sm:$0xff]  ;;  %v1984_v44 = vld [vmem:[%s3785_s24 + $0x50] sm:$0xff]  ;;  %v1986_v29 = vld [vmem:[%s3785_s24 + $0x58] sm:$0xff] }
 0x1ab   : >> { %1971 = vst [vmem:[%s3781_s22 + $0x18] sm:$0xff] %v1970_v37  ;;  %s3077_s25 = sshll.u32 %s4859_s3, 8  ;;  %v1988_v28 = vld [vmem:[%s3785_s24 + $0x60] sm:$0xff]  ;;  %v1990_v34 = vld [vmem:[%s3785_s24 + $0x68] sm:$0xff]  ;;  %v1992_v45 = vld [vmem:[%s3785_s24 + $0x70] sm:$0xff]  ;;  %s4840_s19 = smov %s4859_s3 }
 0x1ac   : >> { %1973 = vst [vmem:[%s3781_s22 + $0x20] sm:$0xff] %v1972_v38  ;;  %s4552_s15 = scalar_lea.vmem %s4485_s16, %s3077_s25 [#allocation12]   ;;  %s4555_s12 = scalar_lea.vmem %s4495_s4, %s3077_s25   ;;  %v1994_v46 = vld [vmem:[%s3785_s24 + $0x78] sm:$0xff]  ;;  %v1996_v47 = vld [vmem:[%s3785_s24 + $0x80] sm:$0xff]  ;;  %v1998_v48 = vld [vmem:[%s3785_s24 + $0x88] sm:$0xff] }
 0x1ad   : >> { %1975 = vst [vmem:[%s3781_s22 + $0x28] sm:$0xff] %v1974_v39  ;;  %v2000_v49 = vld [vmem:[%s3785_s24 + $0x90] sm:$0xff]  ;;  %v2002_v27 = vld [vmem:[%s3785_s24 + $0x98] sm:$0xff]  ;;  %v2004_v50 = vld [vmem:[%s3785_s24 + $0xa0] sm:$0xff] }
 0x1ae   : >> { %1977 = vst [vmem:[%s3781_s22 + $0x30] sm:$0xff] %v1976_v40  ;;  %v2006_v52 = vld [vmem:[%s3785_s24 + $0xa8] sm:$0xff]  ;;  %v2008_v53 = vld [vmem:[%s3785_s24 + $0xb0] sm:$0xff]  ;;  %v2010_v54 = vld [vmem:[%s3785_s24 + $0xb8] sm:$0xff] }
 0x1af   : >> { %1979 = vst [vmem:[%s3781_s22 + $0x38] sm:$0xff] %v1978_v41  ;;  %v2012_v55 = vld [vmem:[%s3785_s24 + $0xc0] sm:$0xff]  ;;  %v2014_v56 = vld [vmem:[%s3785_s24 + $0xc8] sm:$0xff]  ;;  %v2016_v57 = vld [vmem:[%s3785_s24 + $0xd0] sm:$0xff] }
 0x1b0   : >> { %1981 = vst [vmem:[%s3781_s22 + $0x40] sm:$0xff] %v1980_v42  ;;  %v2018_v58 = vld [vmem:[%s3785_s24 + $0xd8] sm:$0xff]  ;;  %v2020_v59 = vld [vmem:[%s3785_s24 + $0xe0] sm:$0xff]  ;;  %v2022_v61 = vld [vmem:[%s3785_s24 + $0xe8] sm:$0xff] }
 0x1b1   : >> { %1983 = vst [vmem:[%s3781_s22 + $0x48] sm:$0xff] %v1982_v43  ;;  %v2024_v62 = vld [vmem:[%s3785_s24 + $0xf0] sm:$0xff]  ;;  %v2026_v63 = vld [vmem:[%s3785_s24 + $0xf8] sm:$0xff]  ;;  %s4839_s24 = smov %s4552_s15 }
 0x1b2   : >> { %1985 = vst [vmem:[%s3781_s22 + $0x50] sm:$0xff] %v1984_v44 }
 0x1b3   : >> { %1987 = vst [vmem:[%s3781_s22 + $0x58] sm:$0xff] %v1986_v29 }
 0x1b4   : >> { %1989 = vst [vmem:[%s3781_s22 + $0x60] sm:$0xff] %v1988_v28 }
 0x1b5   : >> { %1991 = vst [vmem:[%s3781_s22 + $0x68] sm:$0xff] %v1990_v34 }
 0x1b6   : >> { %1993 = vst [vmem:[%s3781_s22 + $0x70] sm:$0xff] %v1992_v45 }
 0x1b7   : >> { %1995 = vst [vmem:[%s3781_s22 + $0x78] sm:$0xff] %v1994_v46 }
 0x1b8   : >> { %1997 = vst [vmem:[%s3781_s22 + $0x80] sm:$0xff] %v1996_v47 }
 0x1b9   : >> { %1999 = vst [vmem:[%s3781_s22 + $0x88] sm:$0xff] %v1998_v48 }
 0x1ba   : >> { %2001 = vst [vmem:[%s3781_s22 + $0x90] sm:$0xff] %v2000_v49 }
 0x1bb   : >> { %2003 = vst [vmem:[%s3781_s22 + $0x98] sm:$0xff] %v2002_v27 }
 0x1bc   : >> { %2005 = vst [vmem:[%s3781_s22 + $0xa0] sm:$0xff] %v2004_v50 }
 0x1bd   : >> { %2007 = vst [vmem:[%s3781_s22 + $0xa8] sm:$0xff] %v2006_v52 }
 0x1be   : >> { %2009 = vst [vmem:[%s3781_s22 + $0xb0] sm:$0xff] %v2008_v53 }
 0x1bf   : >> { %2011 = vst [vmem:[%s3781_s22 + $0xb8] sm:$0xff] %v2010_v54 }
 0x1c0   : >> { %2013 = vst [vmem:[%s3781_s22 + $0xc0] sm:$0xff] %v2012_v55 }
 0x1c1   : >> { %2015 = vst [vmem:[%s3781_s22 + $0xc8] sm:$0xff] %v2014_v56 }
 0x1c2   : >> { %2017 = vst [vmem:[%s3781_s22 + $0xd0] sm:$0xff] %v2016_v57 }
 0x1c3   : >> { %2019 = vst [vmem:[%s3781_s22 + $0xd8] sm:$0xff] %v2018_v58  ;;  %1960 = sbr.rel (!%p1957_p9) target bundleno = 423 (0x1a7), region = 243 }
 0x1c4   : >> { %2021 = vst [vmem:[%s3781_s22 + $0xe0] sm:$0xff] %v2020_v59 }
 0x1c5   : >> { %2023 = vst [vmem:[%s3781_s22 + $0xe8] sm:$0xff] %v2022_v61 }
 0x1c6   : >> { %2025 = vst [vmem:[%s3781_s22 + $0xf0] sm:$0xff] %v2024_v62 }
 0x1c7   : >> { %2027 = vst [vmem:[%s3781_s22 + $0xf8] sm:$0xff] %v2026_v63  ;;  %s4838_s22 = smov %s4555_s12 }
 0x1c8 PF: > { %s4621_s13 = sand.u32 31, %s1953_s30   ;;  %s3239_s8 = sshll.u32 %s4509_s21, 8 }
 0x1c9   : > { %s2039_s10 = scalar_lea.vmem %s4485_s16, %s3239_s8 [#allocation12]   ;;  %s2041_s23 = scalar_lea.vmem %s4495_s4, %s3239_s8  }
 0x1ca   : > { %p3082_p10 = scmp.le.s32.totalorder %s4621_s13, 0 }
 0x1cb   : > { %s3795_s26 = smov (!%p3082_p10), %s2041_s23   ;;  %s3799_s1 = smov (!%p3082_p10), %s2039_s10  }
 0x1cc   : > { %2354 = sbr.rel (%p3082_p10) target bundleno = 473 (0x1d9), region = 248  ;;  %s3803_s27 = smov (!%p3082_p10), 0  }
 0x1cd   : > { %s3807_s5 = smov (!%p3082_p10), 0  }
 0x1d1 LB: >> { %v2051_v1 = vld [vmem:[%s3801_s1] sm:$0xff]  ;;  %s2053_s14 = sadd.s32 1, %s3805_s27  ;;  %s2045_s5 = sadd.s32 1, %s3809_s5   ;;  %s3809_s5 = sphi %s3807_s5, %s2045_s5   ;;  %s3805_s27 = sphi %s3803_s27, %s3804_s27   ;;  %s3801_s1 = sphi %s3799_s1, %s2058_s1   ;;  %s3797_s26 = sphi %s3795_s26, %s2059_s26  }
 0x1d2   : >> { %2052 = vst [vmem:[%s3797_s26] sm:$0xff] %v2051_v1  ;;  %p2054_p11 = scmp.ge.s32.totalorder %s2053_s14, %s4621_s13  ;;  %p2044_p12 = scmp.ge.s32.totalorder %s2045_s5, %s4621_s13 }
 0x1d4   : >> { %s4861_s14 = smov (%p2054_p11, %s2053_s14), 0  ;;  %2047 = sbr.rel (!%p2044_p12) target bundleno = 465 (0x1d1), region = 254 }
 0x1d5   : >> { %s3083_s29 = sshll.u32 %s4861_s14, 3  ;;  %s3804_s27 = smov %s4861_s14  }
 0x1d6   : >> { %s2058_s1 = scalar_lea.vmem %s2039_s10, %s3083_s29 [#allocation12]   ;;  %s2059_s26 = scalar_lea.vmem %s2041_s23, %s3083_s29  }
 0x1d9 PF: > { %2062 = sbr.rel (%p1949_p5) target bundleno = 538 (0x21a), region = 121  ;;  %s4633_s9 = ssub.s32 (!%p1949_p5), %s4497_s18, %s4502_s20 }
 0x1da   : > { %s2068_s17 = sshrl.u32 (!%p1949_p5), %s4497_s18, 3  ;;  %s2065_s2 = scalar_lea.vmem (!%p1949_p5), %s4485_s16, %s4633_s9 [#allocation12] }
 0x1db   : > { %s2067_s0 = scalar_lea.vmem (!%p1949_p5), %s4495_s4, %s4633_s9  ;;  %s4642_s30 = sshrl.u32 (!%p1949_p5), %s2068_s17, 5 }
 0x1dc   : > { %p3085_p13 = scmp.le.s32.totalorder (!%p1949_p5), %s4642_s30, 0 }
 0x1de   : > { %2368 = sbr.rel (%p3085_p13) target bundleno = 516 (0x204), region = 259  ;;  %s4841_s21 = smov (!%p3085_p13), %s4495_s4 }
 0x1df   : > { %s4842_s22 = smov (!%p3085_p13), %s4485_s16  ;;  %s4651_s24 = smov (!%p3085_p13), 0  }
 0x1e0   : > { %s4653_s19 = smov (!%p3085_p13), 0  }
 0x1e3 LB: >> { %v2079_v2 = vld [vmem:[%s3817_s22] sm:$0xff]  ;;  %v2081_v3 = vld [vmem:[%s3817_s22 + $0x8] sm:$0xff]  ;;  %v2083_v4 = vld [vmem:[%s3817_s22 + $0x10] sm:$0xff]  ;;  %s2143_s11 = sadd.s32 1, %s3821_s24  ;;  %s2073_s19 = sadd.s32 1, %s3825_s19   ;;  %s3825_s19 = sphi %s4653_s19, %s2073_s19   ;;  %s3821_s24 = sphi %s4651_s24, %s4845_s24   ;;  %s3817_s22 = sphi %s4842_s22, %s4844_s22   ;;  %s3813_s21 = sphi %s4841_s21, %s4843_s21  }
 0x1e4   : >> { %2080 = vst [vmem:[%s3813_s21] sm:$0xff] %v2079_v2  ;;  %v2085_v5 = vld [vmem:[%s3817_s22 + $0x18] sm:$0xff]  ;;  %p2144_p0 = scmp.ge.s32.totalorder %s2143_s11, %s4642_s30  ;;  %v2087_v6 = vld [vmem:[%s3817_s22 + $0x20] sm:$0xff]  ;;  %v2089_v60 = vld [vmem:[%s3817_s22 + $0x28] sm:$0xff]  ;;  %p2072_p1 = scmp.ge.s32.totalorder %s2073_s19, %s4642_s30 }
 0x1e5   : >> { %2082 = vst [vmem:[%s3813_s21 + $0x8] sm:$0xff] %v2081_v3  ;;  %v2091_v7 = vld [vmem:[%s3817_s22 + $0x30] sm:$0xff]  ;;  %v2093_v9 = vld [vmem:[%s3817_s22 + $0x38] sm:$0xff]  ;;  %v2095_v10 = vld [vmem:[%s3817_s22 + $0x40] sm:$0xff] }
 0x1e6   : >> { %2084 = vst [vmem:[%s3813_s21 + $0x10] sm:$0xff] %v2083_v4  ;;  %s4863_s11 = smov (%p2144_p0, %s2143_s11), 0  ;;  %v2097_v11 = vld [vmem:[%s3817_s22 + $0x48] sm:$0xff]  ;;  %v2099_v14 = vld [vmem:[%s3817_s22 + $0x50] sm:$0xff]  ;;  %v2101_v16 = vld [vmem:[%s3817_s22 + $0x58] sm:$0xff] }
 0x1e7   : >> { %2086 = vst [vmem:[%s3813_s21 + $0x18] sm:$0xff] %v2085_v5  ;;  %s3086_s3 = sshll.u32 %s4863_s11, 8  ;;  %v2103_v17 = vld [vmem:[%s3817_s22 + $0x60] sm:$0xff]  ;;  %v2105_v21 = vld [vmem:[%s3817_s22 + $0x68] sm:$0xff]  ;;  %v2107_v22 = vld [vmem:[%s3817_s22 + $0x70] sm:$0xff]  ;;  %s4845_s24 = smov %s4863_s11 }
 0x1e8   : >> { %2088 = vst [vmem:[%s3813_s21 + $0x20] sm:$0xff] %v2087_v6  ;;  %s4685_s25 = scalar_lea.vmem %s4485_s16, %s3086_s3 [#allocation12]   ;;  %s4688_s15 = scalar_lea.vmem %s4495_s4, %s3086_s3   ;;  %v2109_v51 = vld [vmem:[%s3817_s22 + $0x78] sm:$0xff]  ;;  %v2111_v12 = vld [vmem:[%s3817_s22 + $0x80] sm:$0xff]  ;;  %v2113_v0 = vld [vmem:[%s3817_s22 + $0x88] sm:$0xff] }
 0x1e9   : >> { %2090 = vst [vmem:[%s3813_s21 + $0x28] sm:$0xff] %v2089_v60  ;;  %v2115_v15 = vld [vmem:[%s3817_s22 + $0x90] sm:$0xff]  ;;  %v2117_v20 = vld [vmem:[%s3817_s22 + $0x98] sm:$0xff]  ;;  %v2119_v23 = vld [vmem:[%s3817_s22 + $0xa0] sm:$0xff] }
 0x1ea   : >> { %2092 = vst [vmem:[%s3813_s21 + $0x30] sm:$0xff] %v2091_v7  ;;  %v2121_v24 = vld [vmem:[%s3817_s22 + $0xa8] sm:$0xff]  ;;  %v2123_v25 = vld [vmem:[%s3817_s22 + $0xb0] sm:$0xff]  ;;  %v2125_v13 = vld [vmem:[%s3817_s22 + $0xb8] sm:$0xff] }
 0x1eb   : >> { %2094 = vst [vmem:[%s3813_s21 + $0x38] sm:$0xff] %v2093_v9  ;;  %v2127_v26 = vld [vmem:[%s3817_s22 + $0xc0] sm:$0xff]  ;;  %v2129_v30 = vld [vmem:[%s3817_s22 + $0xc8] sm:$0xff]  ;;  %v2131_v31 = vld [vmem:[%s3817_s22 + $0xd0] sm:$0xff] }
 0x1ec   : >> { %2096 = vst [vmem:[%s3813_s21 + $0x40] sm:$0xff] %v2095_v10  ;;  %v2133_v32 = vld [vmem:[%s3817_s22 + $0xd8] sm:$0xff]  ;;  %v2135_v33 = vld [vmem:[%s3817_s22 + $0xe0] sm:$0xff]  ;;  %v2137_v35 = vld [vmem:[%s3817_s22 + $0xe8] sm:$0xff] }
 0x1ed   : >> { %2098 = vst [vmem:[%s3813_s21 + $0x48] sm:$0xff] %v2097_v11  ;;  %v2139_v36 = vld [vmem:[%s3817_s22 + $0xf0] sm:$0xff]  ;;  %v2141_v8 = vld [vmem:[%s3817_s22 + $0xf8] sm:$0xff]  ;;  %s4844_s22 = smov %s4685_s25 }
 0x1ee   : >> { %2100 = vst [vmem:[%s3813_s21 + $0x50] sm:$0xff] %v2099_v14 }
 0x1ef   : >> { %2102 = vst [vmem:[%s3813_s21 + $0x58] sm:$0xff] %v2101_v16 }
 0x1f0   : >> { %2104 = vst [vmem:[%s3813_s21 + $0x60] sm:$0xff] %v2103_v17 }
 0x1f1   : >> { %2106 = vst [vmem:[%s3813_s21 + $0x68] sm:$0xff] %v2105_v21 }
 0x1f2   : >> { %2108 = vst [vmem:[%s3813_s21 + $0x70] sm:$0xff] %v2107_v22 }
 0x1f3   : >> { %2110 = vst [vmem:[%s3813_s21 + $0x78] sm:$0xff] %v2109_v51 }
 0x1f4   : >> { %2112 = vst [vmem:[%s3813_s21 + $0x80] sm:$0xff] %v2111_v12 }
 0x1f5   : >> { %2114 = vst [vmem:[%s3813_s21 + $0x88] sm:$0xff] %v2113_v0 }
 0x1f6   : >> { %2116 = vst [vmem:[%s3813_s21 + $0x90] sm:$0xff] %v2115_v15 }
 0x1f7   : >> { %2118 = vst [vmem:[%s3813_s21 + $0x98] sm:$0xff] %v2117_v20 }
 0x1f8   : >> { %2120 = vst [vmem:[%s3813_s21 + $0xa0] sm:$0xff] %v2119_v23 }
 0x1f9   : >> { %2122 = vst [vmem:[%s3813_s21 + $0xa8] sm:$0xff] %v2121_v24 }
 0x1fa   : >> { %2124 = vst [vmem:[%s3813_s21 + $0xb0] sm:$0xff] %v2123_v25 }
 0x1fb   : >> { %2126 = vst [vmem:[%s3813_s21 + $0xb8] sm:$0xff] %v2125_v13 }
 0x1fc   : >> { %2128 = vst [vmem:[%s3813_s21 + $0xc0] sm:$0xff] %v2127_v26 }
 0x1fd   : >> { %2130 = vst [vmem:[%s3813_s21 + $0xc8] sm:$0xff] %v2129_v30 }
 0x1fe   : >> { %2132 = vst [vmem:[%s3813_s21 + $0xd0] sm:$0xff] %v2131_v31 }
 0x1ff   : >> { %2134 = vst [vmem:[%s3813_s21 + $0xd8] sm:$0xff] %v2133_v32  ;;  %2075 = sbr.rel (!%p2072_p1) target bundleno = 483 (0x1e3), region = 265 }
 0x200   : >> { %2136 = vst [vmem:[%s3813_s21 + $0xe0] sm:$0xff] %v2135_v33 }
 0x201   : >> { %2138 = vst [vmem:[%s3813_s21 + $0xe8] sm:$0xff] %v2137_v35 }
 0x202   : >> { %2140 = vst [vmem:[%s3813_s21 + $0xf0] sm:$0xff] %v2139_v36 }
 0x203   : >> { %2142 = vst [vmem:[%s3813_s21 + $0xf8] sm:$0xff] %v2141_v8  ;;  %s4843_s21 = smov %s4688_s15 }
 0x204 PF: > { %s4754_s12 = sand.u32 31, %s2068_s17   ;;  %s3241_s13 = sshll.u32 %s4642_s30, 8 }
 0x205   : > { %s2154_s8 = scalar_lea.vmem %s4485_s16, %s3241_s13 [#allocation12]   ;;  %s2156_s10 = scalar_lea.vmem %s4495_s4, %s3241_s13  }
 0x206   : > { %p3091_p2 = scmp.le.s32.totalorder %s4754_s12, 0 }
 0x207   : > { %s3827_s23 = smov (!%p3091_p2), %s2156_s10   ;;  %s3831_s26 = smov (!%p3091_p2), %s2154_s8  }
 0x208   : > { %2382 = sbr.rel (%p3091_p2) target bundleno = 533 (0x215), region = 270  ;;  %s3835_s1 = smov (!%p3091_p2), 0  }
 0x209   : > { %s3839_s27 = smov (!%p3091_p2), 0  }
 0x20d LB: >> { %v2166_v18 = vld [vmem:[%s3833_s26] sm:$0xff]  ;;  %s2168_s5 = sadd.s32 1, %s3837_s1  ;;  %s2160_s27 = sadd.s32 1, %s3841_s27   ;;  %s3841_s27 = sphi %s3839_s27, %s2160_s27   ;;  %s3837_s1 = sphi %s3835_s1, %s3836_s1   ;;  %s3833_s26 = sphi %s3831_s26, %s2173_s26   ;;  %s3829_s23 = sphi %s3827_s23, %s2174_s23  }
 0x20e   : >> { %2167 = vst [vmem:[%s3829_s23] sm:$0xff] %v2166_v18  ;;  %p2169_p3 = scmp.ge.s32.totalorder %s2168_s5, %s4754_s12  ;;  %p2159_p4 = scmp.ge.s32.totalorder %s2160_s27, %s4754_s12 }
 0x210   : >> { %s4865_s5 = smov (%p2169_p3, %s2168_s5), 0  ;;  %2162 = sbr.rel (!%p2159_p4) target bundleno = 525 (0x20d), region = 276 }
 0x211   : >> { %s3092_s14 = sshll.u32 %s4865_s5, 3  ;;  %s3836_s1 = smov %s4865_s5  }
 0x212   : >> { %s2173_s26 = scalar_lea.vmem %s2154_s8, %s3092_s14 [#allocation12]   ;;  %s2174_s23 = scalar_lea.vmem %s2156_s10, %s3092_s14  }
 0x215 PF: > { %s3845_s29 = smov 1  }
 0x216   : > { %s2175_s17 = sshll.u32 %s3845_s29, %s4502_s20 }
 0x217   : > { %s3094_s30 = sadd.s32 4294967295, %s2175_s17 }
 0x218   : > { %v2185_v19 = vld [vmem:[%s2065_s2] sm:%s3094_s30] }
 0x219   : > { %2186 = vst [vmem:[%s2067_s0] sm:%s3094_s30] %v2185_v19 }
 0x21a PF: > { %p3095_p5 = scmp.ge.u32.totalorder %s4497_s18, 8 }
 0x21b   : > { %s3846_s21 = smov (!%p3095_p5), 1  }
 0x21c   : > { %1935 = sbr.rel (%p3095_p5) target bundleno = 547 (0x223), region = 92  ;;  %s1936_s22 = sshll.u32 (!%p3095_p5), %s3846_s21, %s4497_s18 }
 0x21d   : > { %s3096_s24 = sadd.s32 (!%p3095_p5), 4294967295, %s1936_s22 }
 0x221   : > { %v1946_v37 = vld [vmem:[%s4485_s16] sm:%s3096_s24] }
 0x222   : > { %1947 = vst [vmem:[%s4495_s4] sm:%s3096_s24] %v1946_v37 }
 0x223 PF: > { %s4846_s20 = sld [smem:[#allocation19_spill]]  ;;  %s4851_s27 = smov %s3761_s28 }
 0x224   : > { %s4847_s9 = sld [smem:[#allocation17_spill]] }
 0x225   : > { %s4848_s29 = sld [smem:[#allocation21_spill]] }
 0x226   : > { %s4849_s30 = sld [smem:[#allocation18_spill]] }
 0x227   : > { %s4850_s2 = sld [smem:[#allocation20_spill]] }
 0x229   : > { %s30_s10 = sadd.s32 1, %s4846_s20  }
 0x22a   : > { %p27_p6 = scmp.ge.s32.totalorder %s30_s10, 17   ;;  %s4852_s28 = smov %s4847_s9 }
 0x22c   :  { %29 = sbr.rel (!%p27_p6) target bundleno = 18 (0x12), region = 287 }
 0x22d   : > { %s4853_s9 = smov %s4850_s2 }
 0x231   :  { %2200 = vsyncpa [#allocation3], 1 }
 0x232   :  { %2202 = vsyncpa [#allocation3 + $0x1], 1 }
 0x233   :  { %2203 = vsyncpa [#allocation5], 1 }
 0x234   :  { %2205 = vsyncpa [#allocation5 + $0x1], 1 }
 0x235   :  { %2206 = vsyncpa [#allocation8], 1 }
 0x236   :  { %2208 = vsyncpa [#allocation8 + $0x1], 1 }
 0x237   :  { %2209 = vsyncpa [#allocation11], 1 }
 0x238   :  { %2211 = vsyncpa [#allocation11 + $0x1], 1 }

</bundles_post_ra>
